<compile_context>
chip_gen: v6e
topology: v6e:2x2x1
jax: 0.10.0
libtpu: 0.0.40
codegen_flags: <defaults>
</compile_context>

<pallas_src>
import functools

import numpy as np

import jax
import jax.numpy as jnp
from jax.experimental import pallas as pl
from jax.experimental.pallas import tpu as pltpu


def _mxu_supports_int8():
    """v5e/v6e (and earlier) MXUs have an int8 path; v7x does not (fp8 only)."""
    try:
        kind = jax.devices()[0].device_kind.lower()
    except Exception:
        return True
    return not ("v7" in kind or "7x" in kind)


# --------------------------------------------------------------------------
# Kernels
# --------------------------------------------------------------------------
def _qlinear_fused_kernel(multiplier, out_zp, compute_dtype, mxu_out_dtype,
                          xq_ref, wq_ref, beff_ref, oq_ref):
    """K fits in one tile: dot + requant epilogue, no accumulator scratch."""
    acc = jnp.dot(
        xq_ref[...].astype(compute_dtype),   # no-op cast on the int8 path
        wq_ref[...],                         # weights pre-cast host-side
        preferred_element_type=mxu_out_dtype,
    )
    y = acc.astype(jnp.float32) * multiplier + beff_ref[...]
    oq_ref[...] = jnp.clip(jnp.round(y) + out_zp, -128.0, 127.0).astype(jnp.int8)


def _qlinear_reduce_kernel(multiplier, out_zp, compute_dtype, mxu_out_dtype,
                           xq_ref, wq_ref, beff_ref, oq_ref, acc_ref):
    """K split over the last ("arbitrary") grid axis with an int32 accumulator."""
    k = pl.program_id(2)

    @pl.when(k == 0)
    def _init():
        acc_ref[...] = jnp.zeros_like(acc_ref)

    part = jnp.dot(
        xq_ref[...].astype(compute_dtype),
        wq_ref[...],
        preferred_element_type=mxu_out_dtype,
    )
    # int32 accumulation is exact on both paths (per-step f32 partials are
    # exact because tk <= 1024 on the bf16 path).
    acc_ref[...] += part.astype(acc_ref.dtype)

    @pl.when(k == pl.num_programs(2) - 1)
    def _finalize():
        y = acc_ref[...].astype(jnp.float32) * multiplier + beff_ref[...]
        oq_ref[...] = jnp.clip(jnp.round(y) + out_zp, -128.0, 127.0).astype(jnp.int8)


# --------------------------------------------------------------------------
# Host-side, weight-stationary prep (hoisted out of the per-forward path)
# --------------------------------------------------------------------------
def prepare_qlinear_params(wq, bias, *, x_scale, x_zp, w_scale, out_scale):
    """One-time fold of zero-point / scales / bias and weight dtype prep.

      (xq - zp)*sx @ (wq*sw) + b
        = sx*sw*(xq@wq) - sx*sw*zp*colsum(wq) + b
    so the in-kernel epilogue is one scalar multiply + one (1, N) add.
    """
    multiplier = float(x_scale) * float(w_scale) / float(out_scale)
    col_sum = jnp.sum(wq.astype(jnp.int32), axis=0, keepdims=True).astype(jnp.float32)
    bias_eff = ((bias - (float(x_scale) * float(w_scale) * float(x_zp)) * col_sum)
                / float(out_scale)).astype(jnp.float32)
    if _mxu_supports_int8():
        wq_prep = wq                          # native int8 MXU path (v5e/v6e)
    else:
        wq_prep = wq.astype(jnp.bfloat16)     # v7x: pre-cast weights once
    return wq_prep, bias_eff, multiplier


def _select_tiles(B, N, K, tm, tn, tk, int8_mxu):
    tm, tn, tk = min(tm, B), min(tn, N), min(tk, K)
    if not int8_mxu:
        # Keep each per-step f32 partial exact for int8 products on v7x.
        tk = min(tk, 1024)
    # v7x shards the parallel (i, j) grid axes over 2 TensorCores: keep >= 2
    # parallel blocks when the problem allows, without dropping tn below 128.
    while (B // tm) * (N // tn) < 2 and tn >= 256 and N % (tn // 2) == 0:
        tn //= 2
    return tm, tn, tk


# --------------------------------------------------------------------------
# _forward_tensor path: tiled, pipelined quantized matmul kernel
# --------------------------------------------------------------------------
def quantized_linear(xq, wq_prep, bias_eff, *, multiplier, out_zero_point,
                     tm=256, tn=512, tk=1024):
    B, K = xq.shape
    K2, N = wq_prep.shape
    assert K == K2 and bias_eff.shape == (1, N)

    int8_mxu = wq_prep.dtype == jnp.int8
    compute_dtype = jnp.int8 if int8_mxu else jnp.bfloat16
    mxu_out_dtype = jnp.int32 if int8_mxu else jnp.float32

    tm, tn, tk = _select_tiles(B, N, K, tm, tn, tk, int8_mxu)
    # TODO(synk): no partial-tile handling; real model shapes must divide tiles.
    assert B % tm == 0 and N % tn == 0 and K % tk == 0, "shapes must divide tiles"
    k_steps = K // tk

    # Advisory cost estimate so XLA schedules surrounding ops correctly.
    bytes_accessed = (xq.size * xq.dtype.itemsize
                      + wq_prep.size * wq_prep.dtype.itemsize
                      + bias_eff.size * 4 + B * N)
    cost = pl.CostEstimate(flops=2 * B * N * K, transcendentals=0,
                           bytes_accessed=bytes_accessed)

    # VMEM budget: 2 buffers per input + 2 output buffers + acc scratch.  Only
    # raise the scoped limit if the footprint actually needs it (keeps the
    # default double-buffering depth intact on v7x's 64 MiB part).
    footprint = (2 * tm * tk * xq.dtype.itemsize
                 + 2 * tk * tn * wq_prep.dtype.itemsize
                 + 2 * tn * 4
                 + 2 * tm * tn
                 + (tm * tn * 4 if k_steps > 1 else 0))
    vmem_limit = 2 * footprint if 2 * footprint > (32 << 20) else None

    if k_steps == 1:
        # K collapsed: no accumulator, no init/finalize path.
        kernel = functools.partial(_qlinear_fused_kernel, multiplier,
                                   float(out_zero_point), compute_dtype,
                                   mxu_out_dtype)
        return pl.pallas_call(
            kernel,
            out_shape=jax.ShapeDtypeStruct((B, N), jnp.int8),
            grid=(B // tm, N // tn),
            in_specs=[
                pl.BlockSpec((tm, K), lambda i, j: (i, 0)),   # activations
                pl.BlockSpec((K, tn), lambda i, j: (0, j)),   # weights
                pl.BlockSpec((1, tn), lambda i, j: (0, j)),   # folded bias
            ],
            out_specs=pl.BlockSpec((tm, tn), lambda i, j: (i, j)),
            compiler_params=pltpu.CompilerParams(
                dimension_semantics=("parallel", "parallel"),
                vmem_limit_bytes=vmem_limit),
            cost_estimate=cost,
        )(xq, wq_prep, bias_eff)

    # K-reduction path.
    # (Further v5e knob if DMA is exposed: pipeline_mode=pl.Buffered(3) on the
    #  weight BlockSpec.)
    kernel = functools.partial(_qlinear_reduce_kernel, multiplier,
                               float(out_zero_point), compute_dtype,
                               mxu_out_dtype)
    return pl.pallas_call(
        kernel,
        out_shape=jax.ShapeDtypeStruct((B, N), jnp.int8),
        grid=(B // tm, N // tn, k_steps),
        in_specs=[
            pl.BlockSpec((tm, tk), lambda i, j, k: (i, k)),   # activations
            pl.BlockSpec((tk, tn), lambda i, j, k: (k, j)),   # weights
            pl.BlockSpec((1, tn), lambda i, j, k: (0, j)),    # folded bias
        ],
        out_specs=pl.BlockSpec((tm, tn), lambda i, j, k: (i, j)),
        scratch_shapes=[pltpu.VMEM((tm, tn), jnp.int32)],
        compiler_params=pltpu.CompilerParams(
            dimension_semantics=("parallel", "parallel", "arbitrary"),
            vmem_limit_bytes=vmem_limit),
        cost_estimate=cost,
    )(xq, wq_prep, bias_eff)


# --------------------------------------------------------------------------
# _forward_qparams path: pure glue (no tensor compute)
# --------------------------------------------------------------------------
def forward_qparams(input_qparam, *, out_scale, out_zero_point):
    if input_qparam is None:
        return None
    return (out_scale, out_zero_point)


# --------------------------------------------------------------------------
# Demo / self-test
# --------------------------------------------------------------------------
def _reference_int8_linear(xq, wq, bias, *, x_scale, x_zp, w_scale,
                           out_scale, out_zero_point):
    """Exact integer-matmul reference (numpy, naive dequant formulation)."""
    acc = np.asarray(xq, np.int64) @ np.asarray(wq, np.int64)
    col = np.asarray(wq, np.int64).sum(axis=0, keepdims=True)
    y = (acc - x_zp * col).astype(np.float64) * (x_scale * w_scale) \
        + np.asarray(bias, np.float64)
    return np.clip(np.rint(y / out_scale) + out_zero_point, -128, 127).astype(np.int8)


def _run_case(key, B, K, N, *, x_scale, x_zp, w_scale, out_scale, out_zero_point):
    kx, kw, kb = jax.random.split(key, 3)
    xq = jax.random.randint(kx, (B, K), -128, 128, dtype=jnp.int32).astype(jnp.int8)
    wq = jax.random.randint(kw, (K, N), -128, 128, dtype=jnp.int32).astype(jnp.int8)
    bias = jax.random.normal(kb, (1, N), dtype=jnp.float32) * 0.5

    # One-time weight-stationary prep (hoisted out of the per-forward path).
    wq_prep, bias_eff, multiplier = prepare_qlinear_params(
        wq, bias, x_scale=x_scale, x_zp=x_zp, w_scale=w_scale, out_scale=out_scale)

    yq = quantized_linear(xq, wq_prep, bias_eff,
                          multiplier=multiplier, out_zero_point=out_zero_point)
    yq = jax.block_until_ready(yq)

    ref = _reference_int8_linear(np.asarray(xq), np.asarray(wq), np.asarray(bias),
                                 x_scale=x_scale, x_zp=x_zp, w_scale=w_scale,
                                 out_scale=out_scale, out_zero_point=out_zero_point)

    assert yq.shape == (B, N) and yq.dtype == jnp.int8
    max_err = int(np.max(np.abs(np.asarray(yq, np.int32) - ref.astype(np.int32))))
    assert max_err <= 1, f"({B},{K},{N}) max |err| = {max_err}"  # 1 LSB rounding slack


if __name__ == "__main__":
    key = jax.random.PRNGKey(0)
    k1, k2 = jax.random.split(key)

    # Asymmetric int8 input, symmetric per-tensor weights, asymmetric output.
    x_scale, x_zp = 0.05, 3
    w_scale = 0.02
    out_scale, out_zero_point = 0.1, -5

    # Case 1: K fits in one tile -> collapsed-K fused kernel, grid (1, 2) so
    # both v7x TensorCores get a parallel block.
    _run_case(k1, 256, 512, 1024,
              x_scale=x_scale, x_zp=x_zp, w_scale=w_scale,
              out_scale=out_scale, out_zero_point=out_zero_point)

    # Case 2: K > tile -> K-reduction kernel with int32 accumulator, grid (1, 2, 2).
    _run_case(k2, 256, 2048, 1024,
              x_scale=x_scale, x_zp=x_zp, w_scale=w_scale,
              out_scale=out_scale, out_zero_point=out_zero_point)

    # _forward_qparams path (pure glue).
    qp_out = forward_qparams((x_scale, x_zp),
                             out_scale=out_scale, out_zero_point=out_zero_point)
    assert qp_out == (out_scale, out_zero_point)
    assert forward_qparams(None, out_scale=out_scale,
                           out_zero_point=out_zero_point) is None

    print("KERNEL_OK")
</pallas_src>

<mosaic_0001>
module attributes {stable_mosaic.version = 11 : i64} {
  func.func @_qlinear_fused_kernel(%arg0: i32, %arg1: i32, %arg2: memref<256x512xi8, #tpu.memory_space<vmem>>, %arg3: memref<512x512xi8, #tpu.memory_space<vmem>>, %arg4: memref<1x512xf32, #tpu.memory_space<vmem>>, %arg5: memref<256x512xi8, #tpu.memory_space<vmem>>) attributes {dimension_semantics = [#tpu.dimension_semantics<parallel>, #tpu.dimension_semantics<parallel>], iteration_bounds = array<i64: 1, 2>, scalar_prefetch = 0 : i64, scratch_operands = 0 : i64, tpu.core_type = #tpu.core_type<tc>, window_params = [{transform_indices = @transform_0, window_bounds = array<i64: 256, 512>}, {transform_indices = @transform_1, window_bounds = array<i64: 512, 512>}, {transform_indices = @transform_2, window_bounds = array<i64: 1, 512>}, {transform_indices = @transform_3, window_bounds = array<i64: 256, 512>}]} {
    %c0 = arith.constant 0 : index
    %c0_0 = arith.constant 0 : index
    %0 = vector.load %arg2[%c0, %c0_0] : memref<256x512xi8, #tpu.memory_space<vmem>>, vector<256x512xi8>
    %c0_1 = arith.constant 0 : index
    %c0_2 = arith.constant 0 : index
    %1 = vector.load %arg3[%c0_1, %c0_2] : memref<512x512xi8, #tpu.memory_space<vmem>>, vector<512x512xi8>
    %cst = arith.constant dense<0> : vector<256x512xi32>
    %2 = tpu.matmul %0, %1, %cst {dimension_numbers = #tpu.dot_dimension_numbers<[1], [0], [0], [1], [0, 0, 1, 1], [], []>} : vector<256x512xi8>, vector<512x512xi8>, vector<256x512xi32> -> vector<256x512xi32>
    %3 = arith.sitofp %2 : vector<256x512xi32> to vector<256x512xf32>
    %cst_3 = arith.constant 0.00999999977 : f32
    %4 = vector.broadcast %cst_3 : f32 to vector<256x512xf32>
    %5 = arith.mulf %3, %4 : vector<256x512xf32>
    %c0_4 = arith.constant 0 : index
    %c0_5 = arith.constant 0 : index
    %6 = vector.load %arg4[%c0_4, %c0_5] : memref<1x512xf32, #tpu.memory_space<vmem>>, vector<1x512xf32>
    %7 = vector.broadcast %6 : vector<1x512xf32> to vector<256x512xf32>
    %8 = arith.addf %5, %7 : vector<256x512xf32>
    %9 = math.roundeven %8 : vector<256x512xf32>
    %cst_6 = arith.constant -5.000000e+00 : f32
    %10 = vector.broadcast %cst_6 : f32 to vector<256x512xf32>
    %11 = arith.addf %9, %10 : vector<256x512xf32>
    %cst_7 = arith.constant -1.280000e+02 : f32
    %cst_8 = arith.constant 1.270000e+02 : f32
    %12 = vector.broadcast %cst_7 : f32 to vector<256x512xf32>
    %13 = arith.maximumf %12, %11 : vector<256x512xf32>
    %14 = vector.broadcast %cst_8 : f32 to vector<256x512xf32>
    %15 = arith.minimumf %14, %13 : vector<256x512xf32>
    %16 = arith.fptosi %15 : vector<256x512xf32> to vector<256x512xi8>
    %c0_9 = arith.constant 0 : index
    %c0_10 = arith.constant 0 : index
    %17 = vector.load %arg5[%c0_9, %c0_10] : memref<256x512xi8, #tpu.memory_space<vmem>>, vector<256x512xi8>
    tpu.vector_store %arg5[%c0_9, %c0_10], %16 {strides = array<i32>} : memref<256x512xi8, #tpu.memory_space<vmem>>, vector<256x512xi8>,
    return
  }
  func.func @transform_0(%arg0: i32, %arg1: i32) -> (i32, i32) {
    %c0_i32 = arith.constant 0 : i32
    %c0_i32_0 = arith.constant 0 : i32
    return %arg0, %c0_i32 : i32, i32
  }
  func.func @transform_1(%arg0: i32, %arg1: i32) -> (i32, i32) {
    %c0_i32 = arith.constant 0 : i32
    %c0_i32_0 = arith.constant 0 : i32
    return %c0_i32, %arg1 : i32, i32
  }
  func.func @transform_2(%arg0: i32, %arg1: i32) -> (i32, i32) {
    %c0_i32 = arith.constant 0 : i32
    %c0_i32_0 = arith.constant 0 : i32
    return %c0_i32, %arg1 : i32, i32
  }
  func.func @transform_3(%arg0: i32, %arg1: i32) -> (i32, i32) {
    %c0_i32 = arith.constant 0 : i32
    return %arg0, %arg1 : i32, i32
  }
}

</mosaic_0001>

<bundles_post_ra>
// kernel: tpu_custom_call.1
= control target key start
LH: loop header
LB: loop body
LE: loop exit
PB: predicated region body
PF: predicated region fallthrough
CT: control target
= control target key end

     0   :  { %s5641_s0 = inlined_call_operand.hbm [shape: s8[256,512], index: 0, kind: input, shape index: {}]   ;;  %s5642_s1 = inlined_call_operand.hbm [shape: s8[512,1024], index: 1, kind: input, shape index: {}]   ;;  %s5643_s2 = inlined_call_operand.hbm [shape: f32[1,1024], index: 2, kind: input, shape index: {}]   ;;  %s5644_s3 = inlined_call_operand.hbm [shape: s8[256,1024], index: 3, kind: output, shape index: {}]  }
   0x1   :  { %5650 = sst [smem:[#allocation12_spill]] %s5642_s1 }
   0x2   :  { %8 = vsyncpa [#allocation3], 0 }
   0x3   :  { %9 = vsyncpa [#allocation6], 0 }
   0x4   :  { %11 = vsyncpa [#allocation6 + $0x1], 0 }
   0x5   :  { %12 = vsyncpa [#allocation4], 0 }
   0x6   :  { %14 = vsyncpa [#allocation4 + $0x1], 0  ;;  %s4415_s12 = smov 0   ;;  %s4417_s13 = smov 0  }
   0x7   :  { %s4419_s14 = smov 0   ;;  %s4421_s15 = smov 0  }
   0x8   :  { %s4423_s16 = smov 0   ;;  %s4425_s17 = smov 0  }
   0x9 LB: > { %s29_s18 = sadd.s32 1, %s4379_s16  ;;  %s65_s19 = sadd.s32 1, %s4371_s14  ;;  %s4383_s17 = sphi %s4425_s17, %s20_s17   ;;  %s4379_s16 = sphi %s4423_s16, %s5845_s16   ;;  %s4375_s15 = sphi %s4421_s15, %s5844_s15   ;;  %s4371_s14 = sphi %s4419_s14, %s5843_s14   ;;  %s4367_s13 = sphi %s4417_s13, %s5842_s13   ;;  %s4363_s12 = sphi %s4415_s12, %s5841_s12  }
   0xa   : > { %p30_p0 = scmp.ge.s32.totalorder %s29_s18, 2  ;;  %p72_p1 = scmp.ne.s32.totalorder %s4371_s14, %s4367_s13 }
   0xb   : > { %p73_p2 = scmp.eq.s32.totalorder %s4383_s17, 0  ;;  %p4030_p6 = scmp.lt.s32.totalorder %s4383_s17, 2 }
   0xc   : > { %s5847_s18 = smov (%p30_p0, %s29_s18), 0  ;;  %s173_s22 = sand.u32 1, %s4383_s17  }
   0xd   : > { %p4455_p3 = por %p73_p2, %p72_p1  ;;  %s62_s21 = ssub.s32 %s4379_s16, %s5847_s18 }
   0xe   : > { %p63_p5 = scmp.eq.s32.totalorder %s62_s21, 0  ;;  %s175_s23 = sand.u32 1, %s4371_s14  }
   0xf   : > { %s2577_s25 = sshll.u32 %s175_s23, 9  ;;  %s2721_s26 = sshll.u32 %s4379_s16, 9 }
  0x10   : > { %s4466_s24 = scalar_select %p63_p5, %s4371_s14, %s65_s19  }
  0x11   : > { %s5652_s1 = sld [smem:[#allocation12_spill]]  ;;  %s177_s30 = scalar_lea.vmem [#allocation5], %s2577_s25 }
  0x12   : > { %s184_s4 = sshll.u32 %s177_s30, 4  ;;  %p4476_p7 = pnand %p4030_p6, %p4455_p3  ;;  %s185_s4 = int_to_ptr.vmem [resolvable:$true] %s184_s4 }
  0x13   : > { %s4480_s6 = scalar_lea.sflag [#allocation6], %s173_s22  ;;  %s4230_s7 = scalar_lea.vmem %s185_s4, 8192 }
  0x14   : > { %p4219_p8 = pneg %p4476_p7  ;;  %p4231_p9 = scmp.ne.s32.totalorder %s185_s4, %s4230_s7 }
  0x15   : > { %s4385_s8 = smov [#allocation5]  }
  0x16   : > { %p4233_p10 = pnand %p4231_p9, %p4219_p8  ;;  %s4235_s9 = sshll.u32 %s4385_s8, 4  ;;  %s4236_s9 = int_to_ptr.vmem [resolvable:$false] %s4235_s9 }
  0x17   : > { %s183_s29 = scalar_lea.hbm %s5652_s1, %s2721_s26  ;;  %s4237_s10 = scalar_lea.vmem %s4236_s9, 16384 }
  0x18   : > { %p4234_p11 = pneg %p4233_p10  ;;  %p4238_p12 = scmp.lt.s32.totalorder %s185_s4, %s4236_s9 }
  0x19   : > { %p4239_p13 = scmp.lt.s32.totalorder %s4237_s10, %s4230_s7 }
  0x1b   : > { %p4240_p0 = por %p4239_p13, %p4238_p12 }
  0x1d   : > { %p4241_p2 = pnand %p4240_p0, %p4234_p11 }
  0x1f   : > { %4244 = shalt.err (!%p4241_p2)
}
  0x20   : > { %s4386_s11 = smov 1024   ;;  %s5645_s19 = smov 512  }
  0x21   : > { %s5646_s20 = smov 32   ;;  %s4493_s21 = sadd.s32 4294967295, %s4383_s17  }
  0x22   : > { %4021 = dma.hbm_to_vmem [thread:$0]  (!%p4476_p7), %s183_s29, 8192, %s185_s4, %s4480_s6, %s4386_s11, %s5645_s19, %s5646_s20  }
  0x23   : > { %s2573_s22 = sadd.s32 4294967294, %s4383_s17   ;;  %p78_p3 = scmp.ne.s32.totalorder %s4367_s13, %s4363_s12 }
  0x24   : > { %p5648_p5 = scmp.eq.s32.totalorder %s4493_s21, 0  ;;  %p130_p6 = scmp.eq.s32.totalorder %s4493_s21, 1 }
  0x25   : > { %p136_p9 = scmp.eq.s32.totalorder %s2573_s22, 1  ;;  %p2574_p11 = scmp.ge.s32.totalorder %s4383_s17, 1 }
  0x26   : > { %p4502_p10 = por %p5648_p5, %p78_p3  ;;  %p4510_p12 = por %p130_p6, %p72_p1 }
  0x27   : > { %p4514_p13 = por %p136_p9, %p78_p3  ;;  %p143_p0 = scmp.lt.s32.totalorder %s4383_s17, 3 }
  0x28   : > { %s5654_s25 = scalar_select %p4502_p10, 1, 0 }
  0x29   : > { %s5655_s26 = scalar_select %p4510_p12, 1, 0 }
  0x2a   : > { %s5656_s27 = scalar_select %p4514_p13, 1, 0 }
  0x2b   : > { %s2580_s28 = sshll.u32 %s175_s23, 2  ;;  %p4521_p2 = pnand %p2574_p11, %p143_p0 }
  0x2c   : > { %s4389_s30 = smov [#allocation2]   ;;  %s2722_s7 = sshll.u32 %s4379_s16, 6 }
  0x2d   : > { %s159_s4 = sshll.u32 %s4389_s30, 4  ;;  %p4014_p1 = pneg %p4521_p2  ;;  %s4525_s4 = int_to_ptr.vmem [resolvable:$true] %s159_s4 }
  0x2e   : > { %s204_s10 = scalar_lea.hbm %s5643_s2, %s2722_s7  ;;  %s198_s11 = scalar_lea.vmem [#allocation7], %s2580_s28 }
  0x2f   : > { %s206_s22 = sshll.u32 %s198_s11, 4  ;;  %p4535_p3 = pnand %p4014_p1, %p5648_p5  ;;  %s207_s22 = int_to_ptr.vmem [resolvable:$true] %s206_s22 }
  0x30   : > { %s4258_s19 = scalar_lea.vmem %s207_s22, 64  ;;  %s4390_s30 = smov [#allocation7]  }
  0x31   : > { %p4259_p6 = scmp.ne.s32.totalorder %s207_s22, %s4258_s19  ;;  %s4263_s20 = sshll.u32 %s4390_s30, 4  ;;  %s4264_s20 = int_to_ptr.vmem [resolvable:$false] %s4263_s20 }
  0x32   : > { %s4265_s1 = scalar_lea.vmem %s4264_s20, 128  ;;  %p4266_p0 = scmp.lt.s32.totalorder %s207_s22, %s4264_s20 }
  0x33   : > { %p4261_p9 = pnand %p4259_p6, %p4219_p8  ;;  %p4267_p4 = scmp.lt.s32.totalorder %s4265_s1, %s4258_s19 }
  0x35   : > { %p4262_p11 = pneg %p4261_p9  ;;  %p4268_p13 = por %p4267_p4, %p4266_p0 }
  0x37   : > { %p4269_p12 = pnand %p4268_p13, %p4262_p11 }
  0x39   : > { %4272 = shalt.err (!%p4269_p12)
}
  0x3a   : > { %4024 = dma.hbm_to_vmem [thread:$0]  (!%p4476_p7), %s204_s10, 64, %s207_s22, %s4480_s6  }
  0x3b   : > { %p4275_p8 = pneg %p4535_p3  ;;  %s4284_s28 = scalar_lea.vmem %s4525_s4, 4096 }
  0x3c   : > { %p4285_p1 = scmp.ne.s32.totalorder %s4525_s4, %s4284_s28  ;;  %p4292_p5 = scmp.lt.s32.totalorder %s4525_s4, %s4525_s4 }
  0x3d   : > { %p4293_p10 = scmp.lt.s32.totalorder %s4284_s28, %s4284_s28 }
  0x3e   : > { %p4287_p6 = pnand %p4285_p1, %p4275_p8 }
  0x3f   : > { %p4294_p4 = por %p4293_p10, %p4292_p5 }
  0x40   : > { %p4288_p9 = pneg %p4287_p6 }
  0x42   : > { %p4295_p13 = pnand %p4294_p4, %p4288_p9 }
  0x44   : > { %4298 = shalt.err (!%p4295_p13)
}
  0x45   : > { %s5659_s1 = smov 32   ;;  %s5660_s5 = smov 512  }
  0x46   : > { %4017 = dma.hbm_to_vmem [thread:$0]  (!%p4535_p3), %s5641_s0, 4096, %s4525_s4, [#allocation3], %s5660_s5, %s5660_s5, %s5659_s1  }
  0x47   : > { %215 = sbr.rel (%p4521_p2) target bundleno = 830 (0x33e), region = 32  ;;  %p5661_p7 = scmp.eq.s32.totalorder (!%p4521_p2), %s4493_s21, 0 }
  0x4c   : > { %4350 = dma.done.wait (%p5661_p7), [#allocation3], 4096   ;;  %p5662_p5 = pmov %p5661_p7 }
  0x4d   : > { %s221_s20 = sand.u32 1, %s4493_s21   ;;  %s4568_s7 = sand.u32 1, %s4367_s13  }
  0x4e   : > { %4352 = vsyncadd (%p5662_p5), [#allocation3], 4294963200  ;;  %s2585_s8 = sshll.u32 %s4568_s7, 9  ;;  %s222_s9 = scalar_lea.sflag [#allocation6], %s221_s20 }
  0x4f   : > { %s4571_s10 = scalar_lea.vmem [#allocation5], %s2585_s8  ;;  %p5663_p10 = scmp.ne.s32.totalorder %s5654_s25, 0 }
  0x51   : > { %4354 = dma.done.wait (%p5663_p10), %s222_s9, 8256  }
  0x52   : > { %4356 = vsyncadd (%p5663_p10), %s222_s9, 4294959040  ;;  %v312_v0 = vld [vmem:[%s4571_s10 + $0x68] sm:$0xff]  ;;  %v311_v2 = vld [vmem:[%s4571_s10 + $0x60] sm:$0xff]  ;;  %s2586_s21 = sshll.u32 %s4568_s7, 2  ;;  %s2587_s29 = sshll.u32 %s4568_s7, 8 }
  0x53   : > { %v344_v1 = vld [vmem:[%s4571_s10 + $0x168] sm:$0xff]  ;;  %363 = vmatprep.subr.s8.mxu0 %v312_v0  ;;  %v343_v3 = vld [vmem:[%s4571_s10 + $0x160] sm:$0xff]  ;;  %v4595_v17 = vld [vmem:[#allocation2 + $0x18] sm:$0xff]  ;;  %s4717_s25 = scalar_lea.vmem [#allocation7], %s2586_s21  ;;  %s4814_s4 = scalar_lea.vmem [#allocation8], %s2587_s29 }
  0x54   : > { %524 = vmatprep.subr.s8.mxu1 %v344_v1  ;;  %v308_v4 = vld [vmem:[%s4571_s10 + $0x48] sm:$0xff]  ;;  %364 = vmatpush1.s8.msra.mxu0 %v311_v2  ;;  %v307_v6 = vld [vmem:[%s4571_s10 + $0x40] sm:$0xff]  ;;  %v314_v34 = vld [vmem:[%s4571_s10 + $0x78] sm:$0xff]  ;;  %s2723_s11 = sshll.u32 %s4375_s15, 9  ;;  %s2454_s22 = sshll.u32 %s4814_s4, 4  ;;  %s5591_s22 = int_to_ptr.vmem [resolvable:$true] %s2454_s22 }
  0x55   : > { %v340_v5 = vld [vmem:[%s4571_s10 + $0x148] sm:$0xff]  ;;  %525 = vmatpush1.s8.msra.mxu1 %v343_v3  ;;  %365 = vmatprep.subr.s8.mxu0 %v308_v4  ;;  %v339_v7 = vld [vmem:[%s4571_s10 + $0x140] sm:$0xff]  ;;  %v346_v35 = vld [vmem:[%s4571_s10 + $0x178] sm:$0xff]  ;;  %s5589_s28 = scalar_lea.hbm %s5644_s3, %s2723_s11  ;;  %s2438_s15 = scalar_lea.sflag [#allocation4], %s4568_s7 }
  0x56   : > { %526 = vmatprep.subr.s8.mxu1 %v340_v5  ;;  %v304_v8 = vld [vmem:[%s4571_s10 + $0x28] sm:$0xff]  ;;  %v303_v10 = vld [vmem:[%s4571_s10 + $0x20] sm:$0xff]  ;;  %540 = vmatprep.mubr.s8.mxu1 %v4595_v17  ;;  %v4619_v37 = vld [vmem:[#allocation2 + $0x10] sm:$0xff]  ;;  %s4299_s1 = scalar_lea.vmem %s5591_s22, 4096  ;;  %p5838_p2 = scmp.ne.s32.totalorder %s5655_s26, 0 }
  0x57   : > { %v336_v9 = vld [vmem:[%s4571_s10 + $0x128] sm:$0xff]  ;;  %v335_v11 = vld [vmem:[%s4571_s10 + $0x120] sm:$0xff]  ;;  %v313_v38 = vld [vmem:[%s4571_s10 + $0x70] sm:$0xff]  ;;  %p4300_p12 = scmp.ne.s32.totalorder %s5591_s22, %s4299_s1  ;;  %s4391_s5 = smov [#allocation8]  }
  0x58   : > { %366 = vmatpush1.s8.msra.mxu0 %v307_v6  ;;  %v300_v12 = vld [vmem:[%s4571_s10 + $0x8] sm:$0xff]  ;;  %v299_v15 = vld [vmem:[%s4571_s10] sm:$0xff]  ;;  %v345_v39 = vld [vmem:[%s4571_s10 + $0x170] sm:$0xff]  ;;  %s4303_s19 = sshll.u32 %s4391_s5, 4  ;;  %s4304_s19 = int_to_ptr.vmem [resolvable:$false] %s4303_s19 }
  0x59   : > { %527 = vmatpush1.s8.msra.mxu1 %v339_v7  ;;  %367 = vmatprep.subr.s8.mxu0 %v304_v8  ;;  %v332_v13 = vld [vmem:[%s4571_s10 + $0x108] sm:$0xff]  ;;  %v331_v16 = vld [vmem:[%s4571_s10 + $0x100] sm:$0xff]  ;;  %v4625_v41 = vld [vmem:[#allocation2 + $0x38] sm:$0xff]  ;;  %p4301_p3 = pnand %p4300_p12, %p5838_p2  ;;  %s4305_s6 = scalar_lea.vmem %s4304_s19, 8192 }
  0x5a   : > { %528 = vmatprep.subr.s8.mxu1 %v336_v9  ;;  %v4591_v14 = vld [vmem:[#allocation2 + $0x8] sm:$0xff]  ;;  %v327_v20 = vld [vmem:[%s4571_s10 + $0xe0] sm:$0xff]  ;;  %v310_v42 = vld [vmem:[%s4571_s10 + $0x58] sm:$0xff]  ;;  %p4306_p0 = scmp.lt.s32.totalorder %s5591_s22, %s4304_s19  ;;  %p4307_p8 = scmp.lt.s32.totalorder %s4305_s6, %s4299_s1 }
  0x5b   : > { %v328_v18 = vld [vmem:[%s4571_s10 + $0xe8] sm:$0xff]  ;;  %379 = vmatprep.mubr.s8.mxu0 %v4591_v14  ;;  %v359_v21 = vld [vmem:[%s4571_s10 + $0x1e0] sm:$0xff]  ;;  %v342_v43 = vld [vmem:[%s4571_s10 + $0x158] sm:$0xff]  ;;  %p4302_p11 = pneg %p4301_p3 }
  0x5c   : > { %368 = vmatpush1.s8.msra.mxu0 %v303_v10  ;;  %v360_v19 = vld [vmem:[%s4571_s10 + $0x1e8] sm:$0xff]  ;;  %v323_v24 = vld [vmem:[%s4571_s10 + $0xc0] sm:$0xff]  ;;  %v309_v44 = vld [vmem:[%s4571_s10 + $0x50] sm:$0xff]  ;;  %p4308_p1 = por %p4307_p8, %p4306_p0 }
  0x5d   : > { %529 = vmatpush1.s8.msra.mxu1 %v335_v11  ;;  %369 = vmatprep.subr.s8.mxu0 %v300_v12  ;;  %v324_v22 = vld [vmem:[%s4571_s10 + $0xc8] sm:$0xff]  ;;  %v355_v25 = vld [vmem:[%s4571_s10 + $0x1c0] sm:$0xff]  ;;  %v341_v45 = vld [vmem:[%s4571_s10 + $0x150] sm:$0xff] }
  0x5e   : > { %530 = vmatprep.subr.s8.mxu1 %v332_v13  ;;  %v356_v23 = vld [vmem:[%s4571_s10 + $0x1c8] sm:$0xff]  ;;  %v319_v28 = vld [vmem:[%s4571_s10 + $0xa0] sm:$0xff]  ;;  %v306_v46 = vld [vmem:[%s4571_s10 + $0x38] sm:$0xff]  ;;  %p4309_p6 = pnand %p4308_p1, %p4302_p11 }
  0x5f   : > { %v320_v26 = vld [vmem:[%s4571_s10 + $0xa8] sm:$0xff]  ;;  %v351_v29 = vld [vmem:[%s4571_s10 + $0x1a0] sm:$0xff]  ;;  %v338_v47 = vld [vmem:[%s4571_s10 + $0x138] sm:$0xff] }
  0x60   : > { %370 = vmatpush1.s8.msra.mxu0 %v299_v15  ;;  %v352_v27 = vld [vmem:[%s4571_s10 + $0x1a8] sm:$0xff]  ;;  %v315_v32 = vld [vmem:[%s4571_s10 + $0x80] sm:$0xff]  ;;  %v4639_v49 = vld [vmem:[#allocation2 + $0x30] sm:$0xff] }
  0x61   : > { %531 = vmatpush1.s8.msra.mxu1 %v331_v16  ;;  %371 = vmatprep.subr.s8.mxu0 %v328_v18  ;;  %v316_v30 = vld [vmem:[%s4571_s10 + $0x88] sm:$0xff]  ;;  %v347_v33 = vld [vmem:[%s4571_s10 + $0x180] sm:$0xff]  ;;  %v4643_v51 = vld [vmem:[#allocation2 + $0x58] sm:$0xff] }
  0x62   : > { %532 = vmatprep.subr.s8.mxu1 %v360_v19  ;;  %v348_v31 = vld [vmem:[%s4571_s10 + $0x188] sm:$0xff]  ;;  %v4617_v36 = vld [vmem:[#allocation2] sm:$0xff]  ;;  %v305_v52 = vld [vmem:[%s4571_s10 + $0x30] sm:$0xff] }
  0x63   : > { %v4623_v40 = vld [vmem:[#allocation2 + $0x28] sm:$0xff]  ;;  %v4637_v48 = vld [vmem:[#allocation2 + $0x20] sm:$0xff]  ;;  %v337_v53 = vld [vmem:[%s4571_s10 + $0x130] sm:$0xff] }
  0x64   : > { %372 = vmatpush2.s8.msra.mxu0 %v327_v20  ;;  %v4641_v50 = vld [vmem:[#allocation2 + $0x48] sm:$0xff]  ;;  %v302_v54 = vld [vmem:[%s4571_s10 + $0x18] sm:$0xff]  ;;  %v301_v56 = vld [vmem:[%s4571_s10 + $0x10] sm:$0xff] }
  0x65   : > { %533 = vmatpush2.s8.msra.mxu1 %v359_v21  ;;  %373 = vmatprep.subr.s8.mxu0 %v324_v22  ;;  %v334_v55 = vld [vmem:[%s4571_s10 + $0x118] sm:$0xff]  ;;  %v333_v57 = vld [vmem:[%s4571_s10 + $0x110] sm:$0xff]  ;;  %v4657_v60 = vld [vmem:[#allocation2 + $0x40] sm:$0xff] }
  0x66   : > { %534 = vmatprep.subr.s8.mxu1 %v356_v23  ;;  %v330_v58 = vld [vmem:[%s4571_s10 + $0xf8] sm:$0xff]  ;;  %v4659_v61 = vld [vmem:[#allocation2 + $0x50] sm:$0xff]  ;;  %v4661_v62 = vld [vmem:[#allocation2 + $0x68] sm:$0xff] }
  0x67   : > { %v362_v59 = vld [vmem:[%s4571_s10 + $0x1f8] sm:$0xff]  ;;  %v329_v0 = vld [vmem:[%s4571_s10 + $0xf0] sm:$0xff]  ;;  %v4677_v8 = vld [vmem:[#allocation2 + $0x60] sm:$0xff] }
  0x68   : > { %374 = vmatpush2.s8.msra.mxu0 %v323_v24  ;;  %v4663_v63 = vld [vmem:[#allocation2 + $0x78] sm:$0xff]  ;;  %v361_v1 = vld [vmem:[%s4571_s10 + $0x1f0] sm:$0xff]  ;;  %v4681_v10 = vld [vmem:[#allocation2 + $0x88] sm:$0xff] }
  0x69   : > { %535 = vmatpush2.s8.msra.mxu1 %v355_v25  ;;  %375 = vmatprep.subr.s8.mxu0 %v320_v26  ;;  %v326_v2 = vld [vmem:[%s4571_s10 + $0xd8] sm:$0xff]  ;;  %v325_v4 = vld [vmem:[%s4571_s10 + $0xd0] sm:$0xff]  ;;  %v283_v20 = vld [vmem:[#allocation2 + $0x80] sm:$0xff] }
  0x6a   : > { %536 = vmatprep.subr.s8.mxu1 %v352_v27  ;;  %v358_v3 = vld [vmem:[%s4571_s10 + $0x1d8] sm:$0xff]  ;;  %v357_v5 = vld [vmem:[%s4571_s10 + $0x1d0] sm:$0xff]  ;;  %v288_v22 = vld [vmem:[#allocation2 + $0xa8] sm:$0xff] }
  0x6b   : > { %v322_v6 = vld [vmem:[%s4571_s10 + $0xb8] sm:$0xff]  ;;  %v4679_v9 = vld [vmem:[#allocation2 + $0x70] sm:$0xff]  ;;  %v287_v24 = vld [vmem:[#allocation2 + $0xa0] sm:$0xff] }
  0x6c   : > { %376 = vmatpush2.s8.msra.mxu0 %v319_v28  ;;  %v354_v7 = vld [vmem:[%s4571_s10 + $0x1b8] sm:$0xff]  ;;  %v321_v12 = vld [vmem:[%s4571_s10 + $0xb0] sm:$0xff]  ;;  %v292_v26 = vld [vmem:[#allocation2 + $0xc8] sm:$0xff] }
  0x6d   : > { %537 = vmatpush2.s8.msra.mxu1 %v351_v29  ;;  %377 = vmatprep.subr.s8.mxu0 %v316_v30  ;;  %v4683_v11 = vld [vmem:[#allocation2 + $0x98] sm:$0xff]  ;;  %v353_v13 = vld [vmem:[%s4571_s10 + $0x1b0] sm:$0xff]  ;;  %v291_v28 = vld [vmem:[#allocation2 + $0xc0] sm:$0xff] }
  0x6e   : > { %538 = vmatprep.subr.s8.mxu1 %v348_v31  ;;  %v318_v15 = vld [vmem:[%s4571_s10 + $0x98] sm:$0xff]  ;;  %v317_v18 = vld [vmem:[%s4571_s10 + $0x90] sm:$0xff]  ;;  %v296_v30 = vld [vmem:[#allocation2 + $0xe8] sm:$0xff] }
  0x6f   : > { %v350_v16 = vld [vmem:[%s4571_s10 + $0x198] sm:$0xff]  ;;  %v349_v19 = vld [vmem:[%s4571_s10 + $0x190] sm:$0xff] }
  0x70   : > { %378 = vmatpush2.s8.msra.mxu0 %v315_v32  ;;  %v285_v21 = vld [vmem:[#allocation2 + $0x90] sm:$0xff]  ;;  %v290_v23 = vld [vmem:[#allocation2 + $0xb8] sm:$0xff]  ;;  %v295_v32 = vld [vmem:[#allocation2 + $0xe0] sm:$0xff] }
  0x71   : > { %539 = vmatpush2.s8.msra.mxu1 %v347_v33  ;;  %685 = vmatprep.subr.s8.mxu0 %v314_v34  ;;  %v289_v25 = vld [vmem:[#allocation2 + $0xb0] sm:$0xff]  ;;  %v294_v27 = vld [vmem:[#allocation2 + $0xd8] sm:$0xff] }
  0x72   : > { %846 = vmatprep.subr.s8.mxu1 %v346_v35  ;;  %v293_v29 = vld [vmem:[#allocation2 + $0xd0] sm:$0xff]  ;;  %v298_v31 = vld [vmem:[#allocation2 + $0xf8] sm:$0xff]  ;;  %v1263_v35 = vld [vmem:[%s4717_s25] sm:$0xf] }
  0x73   : > { %380 = vmatmul.mubr.s8.vlgmr.msra.gmra.mxu0 %v4617_v36  ;;  %v297_v33 = vld [vmem:[#allocation2 + $0xf0] sm:$0xff] }
  0x74   : > { %541 = vmatmul.mubr.s8.vlgmr.msra.gmra.mxu1 %v4619_v37  ;;  %686 = vmatpush1.s8.msra.mxu0 %v313_v38 }
  0x75   : > { %847 = vmatpush1.s8.msra.mxu1 %v345_v39  ;;  %397 = vmatprep.mubr.s8.mxu0 %v4623_v40 }
  0x76   : > { %558 = vmatprep.mubr.s8.mxu1 %v4625_v41  ;;  %687 = vmatprep.subr.s8.mxu0 %v310_v42 }
  0x77   : > { %848 = vmatprep.subr.s8.mxu1 %v342_v43 }
  0x78   : > { %688 = vmatpush1.s8.msra.mxu0 %v309_v44 }
  0x79   : > { %849 = vmatpush1.s8.msra.mxu1 %v341_v45  ;;  %689 = vmatprep.subr.s8.mxu0 %v306_v46 }
  0x7a   : > { %850 = vmatprep.subr.s8.mxu1 %v338_v47 }
  0x7b   : > { %398 = vmatmul.mubr.s8.gmra.mxu0 %v4637_v48 }
  0x7c   : > { %559 = vmatmul.mubr.s8.gmra.mxu1 %v4639_v49  ;;  %415 = vmatprep.mubr.s8.mxu0 %v4641_v50 }
  0x7d   : > { %576 = vmatprep.mubr.s8.mxu1 %v4643_v51  ;;  %690 = vmatpush1.s8.msra.mxu0 %v305_v52 }
  0x7e   : > { %851 = vmatpush1.s8.msra.mxu1 %v337_v53  ;;  %691 = vmatprep.subr.s8.mxu0 %v302_v54 }
  0x7f   : > { %852 = vmatprep.subr.s8.mxu1 %v334_v55 }
  0x81   : > { %692 = vmatpush1.s8.msra.mxu0 %v301_v56 }
  0x82   : > { %853 = vmatpush1.s8.msra.mxu1 %v333_v57  ;;  %693 = vmatprep.subr.s8.mxu0 %v330_v58 }
  0x83   : > { %854 = vmatprep.subr.s8.mxu1 %v362_v59  ;;  %416 = vmatmul.mubr.s8.gmra.mxu0 %v4657_v60 }
  0x84   : > { %577 = vmatmul.mubr.s8.gmra.mxu1 %v4659_v61  ;;  %433 = vmatprep.mubr.s8.mxu0 %v4661_v62 }
  0x85   : > { %594 = vmatprep.mubr.s8.mxu1 %v4663_v63  ;;  %694 = vmatpush2.s8.msra.mxu0 %v329_v0 }
  0x86   : > { %855 = vmatpush2.s8.msra.mxu1 %v361_v1  ;;  %695 = vmatprep.subr.s8.mxu0 %v326_v2 }
  0x87   : > { %856 = vmatprep.subr.s8.mxu1 %v358_v3 }
  0x89   : > { %696 = vmatpush2.s8.msra.mxu0 %v325_v4 }
  0x8a   : > { %857 = vmatpush2.s8.msra.mxu1 %v357_v5  ;;  %697 = vmatprep.subr.s8.mxu0 %v322_v6 }
  0x8b   : > { %858 = vmatprep.subr.s8.mxu1 %v354_v7  ;;  %434 = vmatmul.mubr.s8.gmra.mxu0 %v4677_v8 }
  0x8c   : > { %595 = vmatmul.mubr.s8.gmra.mxu1 %v4679_v9  ;;  %451 = vmatprep.mubr.s8.mxu0 %v4681_v10 }
  0x8d   : > { %612 = vmatprep.mubr.s8.mxu1 %v4683_v11  ;;  %698 = vmatpush2.s8.msra.mxu0 %v321_v12 }
  0x8e   : > { %859 = vmatpush2.s8.msra.mxu1 %v353_v13  ;;  %699 = vmatprep.subr.s8.mxu0 %v318_v15 }
  0x8f   : > { %860 = vmatprep.subr.s8.mxu1 %v350_v16 }
  0x91   : > { %700 = vmatpush2.s8.msra.mxu0 %v317_v18 }
  0x92   : > { %861 = vmatpush2.s8.msra.mxu1 %v349_v19 }
  0x93   : > { %452 = vmatmul.mubr.s8.gmra.mxu0 %v283_v20 }
  0x94   : > { %613 = vmatmul.mubr.s8.gmra.mxu1 %v285_v21  ;;  %469 = vmatprep.mubr.s8.mxu0 %v288_v22 }
  0x95   : > { %630 = vmatprep.mubr.s8.mxu1 %v290_v23 }
  0x9b   : > { %470 = vmatmul.mubr.s8.gmra.mxu0 %v287_v24 }
  0x9c   : > { %631 = vmatmul.mubr.s8.gmra.mxu1 %v289_v25  ;;  %487 = vmatprep.mubr.s8.mxu0 %v292_v26 }
  0x9d   : > { %648 = vmatprep.mubr.s8.mxu1 %v294_v27 }
  0xa3   : > { %488 = vmatmul.mubr.s8.gmra.mxu0 %v291_v28 }
  0xa4   : > { %649 = vmatmul.mubr.s8.gmra.mxu1 %v293_v29  ;;  %505 = vmatprep.mubr.s8.mxu0 %v296_v30 }
  0xa5   : > { %666 = vmatprep.mubr.s8.mxu1 %v298_v31 }
  0xab   : > { %506 = vmatmul.mubr.s8.gmra.mxu0 %v295_v32 }
  0xac   : > { %667 = vmatmul.mubr.s8.gmra.mxu1 %v297_v33  ;;  %701 = vmatprep.mubr.s8.mxu0 %v4591_v14  ;;  %v1265_v14 = vlaneseq }
  0xad   : > { %862 = vmatprep.mubr.s8.mxu1 %v4595_v17 }
  0xae   : > { %v4714_v17 = vshrl.u32 %v1265_v14, 7 }
  0xb0   : > { %v1267_v34 = vsub.s32 0, %v4714_v17 }
  0xb2   : > { %v4721_v38 = vrot.slane %v1263_v35, %v1267_v34 }
  0xb3   : > { %702 = vmatmul.mubr.s8.vlgmr.msra.gmra.mxu0 %v4617_v36  ;;  %v1271_v36 = vsub.s32 1, %v4714_v17 }
  0xb4   : > { %863 = vmatmul.mubr.s8.vlgmr.msra.gmra.mxu1 %v4619_v37  ;;  %719 = vmatprep.mubr.s8.mxu0 %v4623_v40 }
  0xb5   : > { %880 = vmatprep.mubr.s8.mxu1 %v4625_v41  ;;  %v4723_v41 = vrot.slane %v1263_v35, %v1271_v36 }
  0xbb   : > { %720 = vmatmul.mubr.s8.gmra.mxu0 %v4637_v48 }
  0xbc   : > { %881 = vmatmul.mubr.s8.gmra.mxu1 %v4639_v49  ;;  %737 = vmatprep.mubr.s8.mxu0 %v4641_v50 }
  0xbd   : > { %898 = vmatprep.mubr.s8.mxu1 %v4643_v51 }
  0xc3   : > { %738 = vmatmul.mubr.s8.gmra.mxu0 %v4657_v60 }
  0xc4   : > { %899 = vmatmul.mubr.s8.gmra.mxu1 %v4659_v61  ;;  %755 = vmatprep.mubr.s8.mxu0 %v4661_v62 }
  0xc5   : > { %916 = vmatprep.mubr.s8.mxu1 %v4663_v63 }
  0xcb   : > { %756 = vmatmul.mubr.s8.gmra.mxu0 %v4677_v8 }
  0xcc   : > { %917 = vmatmul.mubr.s8.gmra.mxu1 %v4679_v9  ;;  %773 = vmatprep.mubr.s8.mxu0 %v4681_v10 }
  0xcd   : > { %934 = vmatprep.mubr.s8.mxu1 %v4683_v11 }
  0xd3   : > { %774 = vmatmul.mubr.s8.gmra.mxu0 %v283_v20 }
  0xd4   : > { %935 = vmatmul.mubr.s8.gmra.mxu1 %v285_v21  ;;  %791 = vmatprep.mubr.s8.mxu0 %v288_v22 }
  0xd5   : > { %952 = vmatprep.mubr.s8.mxu1 %v290_v23 }
  0xdb   : > { %792 = vmatmul.mubr.s8.gmra.mxu0 %v287_v24 }
  0xdc   : > { %953 = vmatmul.mubr.s8.gmra.mxu1 %v289_v25  ;;  %809 = vmatprep.mubr.s8.mxu0 %v292_v26 }
  0xdd   : > { %970 = vmatprep.mubr.s8.mxu1 %v294_v27 }
  0xe3   : > { %810 = vmatmul.mubr.s8.gmra.mxu0 %v291_v28 }
  0xe4   : > { %971 = vmatmul.mubr.s8.gmra.mxu1 %v293_v29  ;;  %827 = vmatprep.mubr.s8.mxu0 %v296_v30 }
  0xe5   : > { %988 = vmatprep.mubr.s8.mxu1 %v298_v31 }
  0xeb   : > { %828 = vmatmul.mubr.s8.gmra.mxu0 %v295_v32 }
  0xec   : > { %989 = vmatmul.mubr.s8.gmra.mxu1 %v297_v33 }
 0x12a   : > { %v4088_v37 = vpop.add.s32.mrf.mxu0.mxu1 }
 0x12b   : > { %v1007_v39 = vcvt.s32.f32 %v4088_v37  ;;  %v4089_v40 = vpop.add.s32.mrf.mxu0.mxu1 }
 0x12c   : > { %v1008_v42 = vcvt.s32.f32 %v4089_v40  ;;  %v4090_v43 = vpop.add.s32.mrf.mxu0.mxu1 }
 0x12d   : > { %v1135_v44 = vmul.f32 0.01, %v1007_v39  ;;  %v1011_v45 = vcvt.s32.f32 %v4090_v43  ;;  %v4091_v46 = vpop.add.s32.mrf.mxu0.mxu1 }
 0x12e   : > { %v1136_v47 = vmul.f32 0.01, %v1008_v42  ;;  %v1012_v48 = vcvt.s32.f32 %v4091_v46  ;;  %v4092_v49 = vpop.add.s32.mrf.mxu0.mxu1 }
 0x12f   : > { %v1285_v50 = vadd.f32 %v4721_v38, %v1135_v44  ;;  %v1139_v51 = vmul.f32 0.01, %v1011_v45  ;;  %v4093_v52 = vpop.add.s32.mrf.mxu0.mxu1  ;;  %v1015_v55 = vcvt.s32.f32 %v4092_v49 }
 0x130   : > { %v1286_v53 = vadd.f32 %v4723_v41, %v1136_v47  ;;  %v1140_v54 = vmul.f32 0.01, %v1012_v48  ;;  %v1016_v59 = vcvt.s32.f32 %v4093_v52  ;;  %v4094_v8 = vpop.add.s32.mrf.mxu0.mxu1 }
 0x131   : > { %v2724_v56 = vand.u32 2147483647, %v1285_v50  ;;  %v2726_v57 = vcvt.f32.s32 %v1285_v50  ;;  %v1289_v58 = vadd.f32 %v4721_v38, %v1139_v51  ;;  %v2729_v60 = vand.u32 2147483648, %v1285_v50  ;;  %v4095_v23 = vpop.add.s32.mrf.mxu0.mxu1 }
 0x132   : > { %v2732_v61 = vand.u32 2147483647, %v1286_v53  ;;  %v2734_v62 = vcvt.f32.s32 %v1286_v53  ;;  %v1290_v63 = vadd.f32 %v4723_v41, %v1140_v54  ;;  %v2737_v1 = vand.u32 2147483648, %v1286_v53 }
 0x133   : > { %v2727_v0 = vcvt.s32.f32 %v2726_v57  ;;  %v2756_v2 = vand.u32 2147483647, %v1289_v58  ;;  %v2758_v3 = vcvt.f32.s32 %v1289_v58  ;;  %vm4729_vm0 = vcmp.lt.f32.partialorder %v2724_v56, 8388608.0 }
 0x134   : > { %vm4733_vm1 = vcmp.lt.f32.partialorder %v2732_v61, 8388608.0  ;;  %v2735_v6 = vcvt.s32.f32 %v2734_v62  ;;  %v2764_v7 = vand.u32 2147483647, %v1290_v63  ;;  %v2761_v11 = vand.u32 2147483648, %v1289_v58 }
 0x135   : > { %v2728_v9 = vand.u32 2147483647, %v2727_v0  ;;  %v2759_v10 = vcvt.s32.f32 %v2758_v3  ;;  %v2766_v12 = vcvt.f32.s32 %v1290_v63  ;;  %vm4737_vm2 = vcmp.lt.f32.partialorder %v2756_v2, 8388608.0 }
 0x136   : > { %v2736_v13 = vand.u32 2147483647, %v2735_v6  ;;  %vm4741_vm3 = vcmp.lt.f32.partialorder %v2764_v7, 8388608.0  ;;  %v1143_v18 = vmul.f32 0.01, %v1015_v55  ;;  %v2769_v25 = vand.u32 2147483648, %v1290_v63 }
 0x137   : > { %v2730_v19 = vor.u32 %v2729_v60, %v2728_v9  ;;  %v2760_v20 = vand.u32 2147483647, %v2759_v10  ;;  %v2767_v21 = vcvt.s32.f32 %v2766_v12  ;;  %v1144_v22 = vmul.f32 0.01, %v1016_v59 }
 0x138   : > { %v2738_v24 = vor.u32 %v2737_v1, %v2736_v13  ;;  %v1293_v26 = vadd.f32 %v4721_v38, %v1143_v18  ;;  %v1019_v27 = vcvt.s32.f32 %v4094_v8  ;;  %v1020_v34 = vcvt.s32.f32 %v4095_v23 }
 0x139   : > { %v2731_v28 = vsel %vm4729_vm0, %v2730_v19, %v1285_v50  ;;  %v2762_v29 = vor.u32 %v2761_v11, %v2760_v20  ;;  %v2768_v30 = vand.u32 2147483647, %v2767_v21  ;;  %v1294_v31 = vadd.f32 %v4723_v41, %v1144_v22 }
 0x13a   : > { %v1541_v32 = vadd.f32 -5.0, %v2731_v28  ;;  %v2739_v33 = vsel %vm4733_vm1, %v2738_v24, %v1286_v53  ;;  %v2790_v14 = vcvt.f32.s32 %v1293_v26  ;;  %v2788_v39 = vand.u32 2147483647, %v1293_v26  ;;  %v4096_v53 = vpop.add.s32.mrf.mxu0.mxu1 }
 0x13b   : > { %v1542_v35 = vadd.f32 -5.0, %v2739_v33  ;;  %v2763_v36 = vsel %vm4737_vm2, %v2762_v29, %v1289_v58  ;;  %v2770_v37 = vor.u32 %v2769_v25, %v2768_v30  ;;  %v2793_v44 = vand.u32 2147483648, %v1293_v26  ;;  %v4097_v2 = vpop.add.s32.mrf.mxu0.mxu1 }
 0x13c   : > { %v2588_v40 = vclampa-f32 %v1541_v32, -128, 127  ;;  %v1545_v42 = vadd.f32 -5.0, %v2763_v36  ;;  %v2791_v43 = vcvt.s32.f32 %v2790_v14  ;;  %v2796_v47 = vand.u32 2147483647, %v1294_v31  ;;  %v4098_v25 = vpop.add.s32.mrf.mxu0.mxu1 }
 0x13d   : > { %v2589_v45 = vclampa-f32 %v1542_v35, -128, 127  ;;  %v2771_v46 = vsel %vm4741_vm3, %v2770_v37, %v1290_v63  ;;  %v2798_v48 = vcvt.f32.s32 %v1294_v31  ;;  %vm4755_vm4 = vcmp.lt.f32.partialorder %v2788_v39, 8388608.0  ;;  %v4099_v37 = vpop.add.s32.mrf.mxu0.mxu1 }
 0x13e   : > { %v3748_v49 = vtrunc.f32 %v2588_v40  ;;  %v2592_v50 = vclampa-f32 %v1545_v42, -128, 127  ;;  %v1546_v51 = vadd.f32 -5.0, %v2771_v46  ;;  %v2792_v52 = vand.u32 2147483647, %v2791_v43  ;;  %v4100_v56 = vpop.add.s32.mrf.mxu0.mxu1 }
 0x13f   : > { %v3750_v54 = vtrunc.f32 %v2589_v45  ;;  %vm4759_vm5 = vcmp.lt.f32.partialorder %v2796_v47, 8388608.0  ;;  %v2799_v57 = vcvt.s32.f32 %v2798_v48  ;;  %v2801_v61 = vand.u32 2147483648, %v1294_v31 }
 0x140   : > { %v3756_v58 = vtrunc.f32 %v2592_v50  ;;  %v2593_v59 = vclampa-f32 %v1546_v51, -128, 127  ;;  %v2794_v60 = vor.u32 %v2793_v44, %v2792_v52  ;;  %v3749_v62 = vcvt.f32.s32 %v3748_v49 }
 0x141   : > { %v2800_v63 = vand.u32 2147483647, %v2799_v57  ;;  %v1147_v0 = vmul.f32 0.01, %v1019_v27  ;;  %v1148_v1 = vmul.f32 0.01, %v1020_v34  ;;  %v1023_v6 = vcvt.s32.f32 %v4096_v53 }
 0x142   : > { %v3757_v3 = vcvt.f32.s32 %v3756_v58  ;;  %v3758_v4 = vtrunc.f32 %v2593_v59  ;;  %v2795_v5 = vsel %vm4755_vm4, %v2794_v60, %v1293_v26  ;;  %v3751_v11 = vcvt.f32.s32 %v3750_v54 }
 0x143   : > { %v1549_v7 = vadd.f32 -5.0, %v2795_v5  ;;  %v2802_v8 = vor.u32 %v2801_v61, %v2800_v63  ;;  %v1297_v9 = vadd.f32 %v4721_v38, %v1147_v0  ;;  %v1298_v10 = vadd.f32 %v4723_v41, %v1148_v1  ;;  %v4101_v5 = vpop.add.s32.mrf.mxu0.mxu1 }
 0x144   : > { %v3759_v12 = vcvt.f32.s32 %v3758_v4  ;;  %v1151_v13 = vmul.f32 0.01, %v1023_v6  ;;  %v1024_v15 = vcvt.s32.f32 %v4097_v2  ;;  %v4769_v21 = vpack.c.b16 %v3757_v3, %v3749_v62 }
 0x145   : > { %v2596_v16 = vclampa-f32 %v1549_v7, -128, 127  ;;  %v2803_v18 = vsel %vm4759_vm5, %v2802_v8, %v1294_v31  ;;  %v2820_v19 = vand.u32 2147483647, %v1297_v9  ;;  %v2822_v20 = vcvt.f32.s32 %v1297_v9 }
 0x146   : > { %v4771_v22 = vpack.c.b16 %v3759_v12, %v3751_v11  ;;  %v1550_v23 = vadd.f32 -5.0, %v2803_v18  ;;  %v2828_v24 = vand.u32 2147483647, %v1298_v10  ;;  %v2825_v28 = vand.u32 2147483648, %v1297_v9 }
 0x147   : > { %v4773_v26 = vtrunc.f32 %v2596_v16  ;;  %v2823_v27 = vcvt.s32.f32 %v2822_v20  ;;  %v2830_v29 = vcvt.f32.s32 %v1298_v10  ;;  %vm4775_vm6 = vcmp.lt.f32.partialorder %v2820_v19, 8388608.0 }
 0x148   : > { %v2597_v30 = vclampa-f32 %v1550_v23, -128, 127  ;;  %vm4779_vm7 = vcmp.lt.f32.partialorder %v2828_v24, 8388608.0  ;;  %v1301_v33 = vadd.f32 %v4721_v38, %v1151_v13  ;;  %v2833_v35 = vand.u32 2147483648, %v1298_v10 }
 0x149   : > { %v2824_v14 = vand.u32 2147483647, %v2823_v27  ;;  %v2831_v34 = vcvt.s32.f32 %v2830_v29  ;;  %v1152_v36 = vmul.f32 0.01, %v1024_v15  ;;  %v3765_v39 = vcvt.f32.s32 %v4773_v26 }
 0x14a   : > { %v3766_v40 = vtrunc.f32 %v2597_v30  ;;  %v2852_v42 = vand.u32 2147483647, %v1301_v33  ;;  %v2854_v43 = vcvt.f32.s32 %v1301_v33  ;;  %v1027_v47 = vcvt.s32.f32 %v4098_v25 }
 0x14b   : > { %v2826_v44 = vor.u32 %v2825_v28, %v2824_v14  ;;  %v2832_v45 = vand.u32 2147483647, %v2831_v34  ;;  %v1302_v46 = vadd.f32 %v4723_v41, %v1152_v36  ;;  %v2857_v50 = vand.u32 2147483648, %v1301_v33  ;;  %v4102_v14 = vpop.add.s32.mrf.mxu0.mxu1 }
 0x14c   : > { %v3767_v48 = vcvt.f32.s32 %v3766_v40  ;;  %v2855_v49 = vcvt.s32.f32 %v2854_v43  ;;  %v1028_v51 = vcvt.s32.f32 %v4099_v37  ;;  %vm4788_vm8 = vcmp.lt.f32.partialorder %v2852_v42, 8388608.0 }
 0x14d   : > { %v2827_v52 = vsel %vm4775_vm6, %v2826_v44, %v1297_v9  ;;  %v2834_v53 = vor.u32 %v2833_v35, %v2832_v45  ;;  %v2860_v54 = vand.u32 2147483647, %v1302_v46  ;;  %v2862_v55 = vcvt.f32.s32 %v1302_v46 }
 0x14e   : > { %v1553_v57 = vadd.f32 -5.0, %v2827_v52  ;;  %v2856_v59 = vand.u32 2147483647, %v2855_v49  ;;  %v1155_v60 = vmul.f32 0.01, %v1027_v47  ;;  %v2865_v63 = vand.u32 2147483648, %v1302_v46  ;;  %v4103_v49 = vpop.add.s32.mrf.mxu0.mxu1 }
 0x14f   : > { %v2835_v61 = vsel %vm4779_vm7, %v2834_v53, %v1298_v10  ;;  %v2863_v62 = vcvt.s32.f32 %v2862_v55  ;;  %v1156_v0 = vmul.f32 0.01, %v1028_v51  ;;  %vm4795_vm9 = vcmp.lt.f32.partialorder %v2860_v54, 8388608.0 }
 0x150   : > { %v2600_v1 = vclampa-f32 %v1553_v57, -128, 127  ;;  %v1554_v2 = vadd.f32 -5.0, %v2835_v61  ;;  %v2858_v3 = vor.u32 %v2857_v50, %v2856_v59  ;;  %v1305_v4 = vadd.f32 %v4721_v38, %v1155_v60 }
 0x151   : > { %v2864_v7 = vand.u32 2147483647, %v2863_v62  ;;  %v1306_v8 = vadd.f32 %v4723_v41, %v1156_v0  ;;  %v1031_v9 = vcvt.s32.f32 %v4100_v56  ;;  %v1032_v19 = vcvt.s32.f32 %v4101_v5 }
 0x152   : > { %v3772_v11 = vtrunc.f32 %v2600_v1  ;;  %v2601_v10 = vclampa-f32 %v1554_v2, -128, 127  ;;  %v2859_v12 = vsel %vm4788_vm8, %v2858_v3, %v1301_v33  ;;  %v2884_v13 = vand.u32 2147483647, %v1305_v4 }
 0x153   : > { %v1557_v15 = vadd.f32 -5.0, %v2859_v12  ;;  %v2866_v16 = vor.u32 %v2865_v63, %v2864_v7  ;;  %v2886_v18 = vcvt.f32.s32 %v1305_v4  ;;  %v2889_v24 = vand.u32 2147483648, %v1305_v4  ;;  %v4104_v63 = vpop.add.s32.mrf.mxu0.mxu1 }
 0x154   : > { %v3773_v20 = vcvt.f32.s32 %v3772_v11  ;;  %v3774_v23 = vtrunc.f32 %v2601_v10  ;;  %v2892_v25 = vand.u32 2147483647, %v1306_v8  ;;  %v2894_v29 = vcvt.f32.s32 %v1306_v8  ;;  %v4105_v12 = vpop.add.s32.mrf.mxu0.mxu1 }
 0x155   : > { %v2604_v26 = vclampa-f32 %v1557_v15, -128, 127  ;;  %v2867_v27 = vsel %vm4795_vm9, %v2866_v16, %v1302_v46  ;;  %v2887_v28 = vcvt.s32.f32 %v2886_v18  ;;  %vm4805_vm10 = vcmp.lt.f32.partialorder %v2884_v13, 8388608.0 }
 0x156   : > { %v2310_v30 = vpack.c.b16 %v3773_v20, %v3765_v39  ;;  %v3775_v32 = vcvt.f32.s32 %v3774_v23  ;;  %v1558_v31 = vadd.f32 -5.0, %v2867_v27  ;;  %vm4809_vm11 = vcmp.lt.f32.partialorder %v2892_v25, 8388608.0 }
 0x157   : > { %v3780_v34 = vtrunc.f32 %v2604_v26  ;;  %v2888_v35 = vand.u32 2147483647, %v2887_v28  ;;  %v2895_v37 = vcvt.s32.f32 %v2894_v29  ;;  %v1159_v44 = vmul.f32 0.01, %v1031_v9  ;;  %v4106_v29 = vpop.add.s32.mrf.mxu0.mxu1 }
 0x158   : > { %v2311_v40 = vpack.c.b8 %v2310_v30, %v4769_v21  ;;  %v2313_v42 = vpack.c.b16 %v3775_v32, %v3767_v48  ;;  %v2605_v43 = vclampa-f32 %v1558_v31, -128, 127  ;;  %v2897_v46 = vand.u32 2147483648, %v1306_v8 }
 0x159   : > { %v2890_v39 = vor.u32 %v2889_v24, %v2888_v35  ;;  %v2896_v45 = vand.u32 2147483647, %v2895_v37  ;;  %v1160_v47 = vmul.f32 0.01, %v1032_v19  ;;  %v3781_v51 = vcvt.f32.s32 %v3780_v34 }
 0x15a   : > { %2405 = vst [vmem:[%s4814_s4] sm:$0xff] %v2311_v40  ;;  %v2314_v50 = vpack.c.b8 %v2313_v42, %v4771_v22  ;;  %v3782_v52 = vtrunc.f32 %v2605_v43  ;;  %v1309_v53 = vadd.f32 %v4721_v38, %v1159_v44  ;;  %v1035_v55 = vcvt.s32.f32 %v4102_v14  ;;  %v4107_v44 = vpop.add.s32.mrf.mxu0.mxu1 }
 0x15b   : > { %v2891_v21 = vsel %vm4805_vm10, %v2890_v39, %v1305_v4  ;;  %v2898_v48 = vor.u32 %v2897_v46, %v2896_v45  ;;  %v1310_v54 = vadd.f32 %v4723_v41, %v1160_v47  ;;  %v1036_v59 = vcvt.s32.f32 %v4103_v49 }
 0x15c   : > { %2406 = vst [vmem:[%s4814_s4 + $0x8] sm:$0xff] %v2314_v50  ;;  %v1561_v56 = vadd.f32 -5.0, %v2891_v21  ;;  %v2916_v57 = vand.u32 2147483647, %v1309_v53  ;;  %v2918_v58 = vcvt.f32.s32 %v1309_v53  ;;  %v3783_v60 = vcvt.f32.s32 %v3782_v52 }
 0x15d   : > { %v2899_v22 = vsel %vm4809_vm11, %v2898_v48, %v1306_v8  ;;  %v2924_v61 = vand.u32 2147483647, %v1310_v54  ;;  %v2926_v62 = vcvt.f32.s32 %v1310_v54  ;;  %v2921_v3 = vand.u32 2147483648, %v1309_v53 }
 0x15e   : > { %v2608_v0 = vclampa-f32 %v1561_v56, -128, 127  ;;  %v1562_v1 = vadd.f32 -5.0, %v2899_v22  ;;  %v2919_v2 = vcvt.s32.f32 %v2918_v58  ;;  %vm4825_vm12 = vcmp.lt.f32.partialorder %v2916_v57, 8388608.0 }
 0x15f   : > { %vm4829_vm13 = vcmp.lt.f32.partialorder %v2924_v61, 8388608.0  ;;  %v2927_v6 = vcvt.s32.f32 %v2926_v62  ;;  %v1163_v7 = vmul.f32 0.01, %v1035_v55  ;;  %v1164_v10 = vmul.f32 0.01, %v1036_v59 }
 0x160   : > { %v3788_v9 = vtrunc.f32 %v2608_v0  ;;  %v2609_v11 = vclampa-f32 %v1562_v1, -128, 127  ;;  %v2920_v8 = vand.u32 2147483647, %v2919_v2  ;;  %v2929_v15 = vand.u32 2147483648, %v1310_v54 }
 0x161   : > { %v2928_v13 = vand.u32 2147483647, %v2927_v6  ;;  %v1313_v16 = vadd.f32 %v4721_v38, %v1163_v7  ;;  %v1039_v18 = vcvt.s32.f32 %v4104_v63  ;;  %v1314_v24 = vadd.f32 %v4723_v41, %v1164_v10 }
 0x162   : > { %v3789_v19 = vcvt.f32.s32 %v3788_v9  ;;  %v3790_v20 = vtrunc.f32 %v2609_v11  ;;  %v2922_v23 = vor.u32 %v2921_v3, %v2920_v8  ;;  %v1040_v28 = vcvt.s32.f32 %v4105_v12 }
 0x163   : > { %v2930_v25 = vor.u32 %v2929_v15, %v2928_v13  ;;  %v2948_v26 = vand.u32 2147483647, %v1313_v16  ;;  %v2950_v27 = vcvt.f32.s32 %v1313_v16  ;;  %v2953_v33 = vand.u32 2147483648, %v1313_v16  ;;  %v4108_v13 = vpop.add.s32.mrf.mxu0.mxu1 }
 0x164   : > { %v4835_v30 = vpack.c.b16 %v3789_v19, %v3781_v51  ;;  %v3791_v32 = vcvt.f32.s32 %v3790_v20  ;;  %v2923_v31 = vsel %vm4825_vm12, %v2922_v23, %v1309_v53  ;;  %v2956_v36 = vand.u32 2147483647, %v1314_v24 }
 0x165   : > { %v1565_v14 = vadd.f32 -5.0, %v2923_v31  ;;  %v2931_v34 = vsel %vm4829_vm13, %v2930_v25, %v1310_v54  ;;  %v2951_v35 = vcvt.s32.f32 %v2950_v27  ;;  %vm4843_vm14 = vcmp.lt.f32.partialorder %v2948_v26, 8388608.0 }
 0x166   : > { %v4841_v37 = vpack.c.b16 %v3791_v32, %v3783_v60  ;;  %v1566_v40 = vadd.f32 -5.0, %v2931_v34  ;;  %v2958_v43 = vcvt.f32.s32 %v1314_v24  ;;  %v2961_v46 = vand.u32 2147483648, %v1314_v24  ;;  %v4109_v32 = vpop.add.s32.mrf.mxu0.mxu1 }
 0x167   : > { %v2612_v39 = vclampa-f32 %v1565_v14, -128, 127  ;;  %v2952_v45 = vand.u32 2147483647, %v2951_v35  ;;  %v1043_v47 = vcvt.s32.f32 %v4106_v29  ;;  %v1167_v51 = vmul.f32 0.01, %v1039_v18 }
 0x168   : > { %v2613_v49 = vclampa-f32 %v1566_v40, -128, 127  ;;  %v2959_v50 = vcvt.s32.f32 %v2958_v43  ;;  %v1168_v52 = vmul.f32 0.01, %v1040_v28  ;;  %v1044_v54 = vcvt.s32.f32 %v4107_v44 }
 0x169   : > { %v3796_v53 = vtrunc.f32 %v2612_v39  ;;  %v2954_v21 = vor.u32 %v2953_v33, %v2952_v45  ;;  %v1171_v48 = vmul.f32 0.01, %v1043_v47  ;;  %v1317_v57 = vadd.f32 %v4721_v38, %v1167_v51 }
 0x16a   : > { %v3798_v55 = vtrunc.f32 %v2613_v49  ;;  %v2960_v56 = vand.u32 2147483647, %v2959_v50  ;;  %v1318_v58 = vadd.f32 %v4723_v41, %v1168_v52  ;;  %vm2957_vm15 = vcmp.lt.f32.partialorder %v2956_v36, 8388608.0 }
 0x16b   : > { %v3797_v59 = vcvt.f32.s32 %v3796_v53  ;;  %v2955_v60 = vsel %vm4843_vm14, %v2954_v21, %v1313_v16  ;;  %v1321_v22 = vadd.f32 %v4721_v38, %v1171_v48  ;;  %v2980_v63 = vand.u32 2147483647, %v1317_v57 }
 0x16c   : > { %v1569_v61 = vadd.f32 -5.0, %v2955_v60  ;;  %v2962_v62 = vor.u32 %v2961_v46, %v2960_v56  ;;  %v1172_v0 = vmul.f32 0.01, %v1044_v54  ;;  %v3799_v1 = vcvt.f32.s32 %v3798_v55  ;;  %v4110_v46 = vpop.add.s32.mrf.mxu0.mxu1 }
 0x16d   : > { %v2982_v2 = vcvt.f32.s32 %v1317_v57  ;;  %v2988_v3 = vand.u32 2147483647, %v1318_v58  ;;  %v2990_v4 = vcvt.f32.s32 %v1318_v58  ;;  %vm4852_vm0 = vcmp.lt.f32.partialorder %v2980_v63, 8388608.0 }
 0x16e   : > { %v2616_v5 = vclampa-f32 %v1569_v61, -128, 127  ;;  %v2963_v6 = vsel %vm2957_vm15, %v2962_v62, %v1314_v24  ;;  %v2985_v9 = vand.u32 2147483648, %v1317_v57  ;;  %v2993_v12 = vand.u32 2147483648, %v1318_v58 }
 0x16f   : > { %v1570_v11 = vadd.f32 -5.0, %v2963_v6  ;;  %v2983_v8 = vcvt.s32.f32 %v2982_v2  ;;  %v2991_v10 = vcvt.s32.f32 %v2990_v4  ;;  %vm4856_vm1 = vcmp.lt.f32.partialorder %v2988_v3, 8388608.0 }
 0x170   : > { %v3804_v15 = vtrunc.f32 %v2616_v5  ;;  %v3012_v18 = vand.u32 2147483647, %v1321_v22  ;;  %v3014_v19 = vcvt.f32.s32 %v1321_v22  ;;  %v1322_v25 = vadd.f32 %v4723_v41, %v1172_v0  ;;  %v4111_v0 = vpop.add.s32.mrf.mxu0.mxu1 }
 0x171   : > { %v2617_v20 = vclampa-f32 %v1570_v11, -128, 127  ;;  %v2984_v23 = vand.u32 2147483647, %v2983_v8  ;;  %v2992_v24 = vand.u32 2147483647, %v2991_v10  ;;  %v1047_v34 = vcvt.s32.f32 %v4108_v13  ;;  %v4112_v8 = vpop.add.s32.mrf.mxu0.mxu1 }
 0x172   : > { %v3805_v26 = vcvt.f32.s32 %v3804_v15  ;;  %vm4861_vm2 = vcmp.lt.f32.partialorder %v3012_v18, 8388608.0  ;;  %v3015_v28 = vcvt.s32.f32 %v3014_v19  ;;  %v3017_v29 = vand.u32 2147483648, %v1321_v22 }
 0x173   : > { %v3806_v31 = vtrunc.f32 %v2617_v20  ;;  %v2986_v33 = vor.u32 %v2985_v9, %v2984_v23  ;;  %v2994_v14 = vor.u32 %v2993_v12, %v2992_v24  ;;  %v3020_v40 = vand.u32 2147483647, %v1322_v25 }
 0x174   : > { %v2322_v35 = vpack.c.b16 %v3805_v26, %v3797_v59  ;;  %v3016_v36 = vand.u32 2147483647, %v3015_v28  ;;  %v3022_v42 = vcvt.f32.s32 %v1322_v25  ;;  %v3025_v45 = vand.u32 2147483648, %v1322_v25  ;;  %v4113_v28 = vpop.add.s32.mrf.mxu0.mxu1 }
 0x175   : > { %v3807_v43 = vcvt.f32.s32 %v3806_v31  ;;  %v2987_v44 = vsel %vm4852_vm0, %v2986_v33, %v1317_v57  ;;  %v2995_v39 = vsel %vm4856_vm1, %v2994_v14, %v1318_v58  ;;  %v1175_v21 = vmul.f32 0.01, %v1047_v34 }
 0x176   : > { %v2323_v47 = vpack.c.b8 %v2322_v35, %v4835_v30  ;;  %v1573_v49 = vadd.f32 -5.0, %v2987_v44  ;;  %v1574_v50 = vadd.f32 -5.0, %v2995_v39  ;;  %v3018_v51 = vor.u32 %v3017_v29, %v3016_v36  ;;  %v4114_v44 = vpop.add.s32.mrf.mxu0.mxu1 }
 0x177   : > { %v2325_v52 = vpack.c.b16 %v3807_v43, %v3799_v1  ;;  %v3023_v53 = vcvt.s32.f32 %v3022_v42  ;;  %v1048_v48 = vcvt.s32.f32 %v4109_v32  ;;  %v1051_v57 = vcvt.s32.f32 %v4110_v46 }
 0x178   : > { %2409 = vst [vmem:[%s4814_s4 + $0x20] sm:$0xff] %v2323_v47  ;;  %v2620_v54 = vclampa-f32 %v1573_v49, -128, 127  ;;  %v2621_v55 = vclampa-f32 %v1574_v50, -128, 127  ;;  %v3019_v56 = vsel %vm4861_vm2, %v3018_v51, %v1321_v22  ;;  %v1325_v30 = vadd.f32 %v4721_v38, %v1175_v21 }
 0x179   : > { %v2326_v58 = vpack.c.b8 %v2325_v52, %v4841_v37  ;;  %v1577_v59 = vadd.f32 -5.0, %v3019_v56  ;;  %v3024_v60 = vand.u32 2147483647, %v3023_v53  ;;  %v1176_v63 = vmul.f32 0.01, %v1048_v48 }
 0x17a   : > { %v3812_v61 = vtrunc.f32 %v2620_v54  ;;  %v3814_v62 = vtrunc.f32 %v2621_v55  ;;  %v3046_v3 = vcvt.f32.s32 %v1325_v30  ;;  %v1179_v4 = vmul.f32 0.01, %v1051_v57  ;;  %v4115_v55 = vpop.add.s32.mrf.mxu0.mxu1 }
 0x17b   : > { %2410 = vst [vmem:[%s4814_s4 + $0x28] sm:$0xff] %v2326_v58  ;;  %v2624_v1 = vclampa-f32 %v1577_v59, -128, 127  ;;  %v3026_v2 = vor.u32 %v3025_v45, %v3024_v60  ;;  %vm3021_vm3 = vcmp.lt.f32.partialorder %v3020_v40, 8388608.0  ;;  %v3044_v6 = vand.u32 2147483647, %v1325_v30 }
 0x17c   : > { %v3813_v5 = vcvt.f32.s32 %v3812_v61  ;;  %v1326_v22 = vadd.f32 %v4723_v41, %v1176_v63  ;;  %v3815_v7 = vcvt.f32.s32 %v3814_v62  ;;  %v3047_v11 = vcvt.s32.f32 %v3046_v3  ;;  %v4116_v3 = vpop.add.s32.mrf.mxu0.mxu1 }
 0x17d   : > { %v3820_v37 = vtrunc.f32 %v2624_v1  ;;  %v3027_v9 = vsel %vm3021_vm3, %v3026_v2, %v1322_v25  ;;  %v3049_v12 = vand.u32 2147483648, %v1325_v30  ;;  %v1329_v19 = vadd.f32 %v4721_v38, %v1179_v4  ;;  %v4117_v14 = vpop.add.s32.mrf.mxu0.mxu1 }
 0x17e   : > { %v1578_v10 = vadd.f32 -5.0, %v3027_v9  ;;  %v3052_v13 = vand.u32 2147483647, %v1326_v22  ;;  %v3054_v15 = vcvt.f32.s32 %v1326_v22  ;;  %v3048_v18 = vand.u32 2147483647, %v3047_v11 }
 0x17f   : > { %v3821_v16 = vcvt.f32.s32 %v3820_v37  ;;  %v1052_v20 = vcvt.s32.f32 %v4111_v0  ;;  %vm4878_vm4 = vcmp.lt.f32.partialorder %v3044_v6, 8388608.0  ;;  %v1055_v27 = vcvt.s32.f32 %v4112_v8 }
 0x180   : > { %v2625_v23 = vclampa-f32 %v1578_v10, -128, 127  ;;  %v3055_v26 = vcvt.s32.f32 %v3054_v15  ;;  %v3050_v25 = vor.u32 %v3049_v12, %v3048_v18  ;;  %v3057_v29 = vand.u32 2147483648, %v1326_v22 }
 0x181   : > { %v3076_v32 = vand.u32 2147483647, %v1329_v19  ;;  %v3078_v31 = vcvt.f32.s32 %v1329_v19  ;;  %vm4882_vm5 = vcmp.lt.f32.partialorder %v3052_v13, 8388608.0  ;;  %v1180_v35 = vmul.f32 0.01, %v1052_v20 }
 0x182   : > { %v3822_v33 = vtrunc.f32 %v2625_v23  ;;  %v3056_v34 = vand.u32 2147483647, %v3055_v26  ;;  %v4886_v36 = vpack.c.b16 %v3821_v16, %v3813_v5  ;;  %v3051_v40 = vsel %vm4878_vm4, %v3050_v25, %v1325_v30 }
 0x183   : > { %v3079_v42 = vcvt.s32.f32 %v3078_v31  ;;  %v1183_v43 = vmul.f32 0.01, %v1055_v27  ;;  %v1581_v45 = vadd.f32 -5.0, %v3051_v40  ;;  %v1330_v47 = vadd.f32 %v4723_v41, %v1180_v35 }
 0x184   : > { %v3823_v39 = vcvt.f32.s32 %v3822_v33  ;;  %v3058_v46 = vor.u32 %v3057_v29, %v3056_v34  ;;  %vm4891_vm6 = vcmp.lt.f32.partialorder %v3076_v32, 8388608.0  ;;  %v3081_v51 = vand.u32 2147483648, %v1329_v19 }
 0x185   : > { %v3080_v50 = vand.u32 2147483647, %v3079_v42  ;;  %v1333_v52 = vadd.f32 %v4721_v38, %v1183_v43  ;;  %v2628_v53 = vclampa-f32 %v1581_v45, -128, 127  ;;  %v3084_v48 = vand.u32 2147483647, %v1330_v47 }
 0x186   : > { %v3059_v21 = vsel %vm4882_vm5, %v3058_v46, %v1326_v22  ;;  %v1056_v54 = vcvt.s32.f32 %v4113_v28  ;;  %v3086_v58 = vcvt.f32.s32 %v1330_v47  ;;  %v1059_v59 = vcvt.s32.f32 %v4114_v44 }
 0x187   : > { %v1582_v56 = vadd.f32 -5.0, %v3059_v21  ;;  %v3082_v57 = vor.u32 %v3081_v51, %v3080_v50  ;;  %v4898_v60 = vpack.c.b16 %v3823_v39, %v3815_v7  ;;  %v3828_v30 = vtrunc.f32 %v2628_v53  ;;  %v4118_v51 = vpop.add.s32.mrf.mxu0.mxu1 }
 0x188   : > { %v3089_v61 = vand.u32 2147483648, %v1330_v47  ;;  %v3110_v62 = vcvt.f32.s32 %v1333_v52  ;;  %vm4902_vm7 = vcmp.lt.f32.partialorder %v3084_v48, 8388608.0  ;;  %v3087_v2 = vcvt.s32.f32 %v3086_v58 }
 0x189   : > { %v2629_v63 = vclampa-f32 %v1582_v56, -128, 127  ;;  %v3083_v0 = vsel %vm4891_vm6, %v3082_v57, %v1329_v19  ;;  %v3108_v5 = vand.u32 2147483647, %v1333_v52  ;;  %v3113_v22 = vand.u32 2147483648, %v1333_v52 }
 0x18a   : > { %v1585_v4 = vadd.f32 -5.0, %v3083_v0  ;;  %v3111_v6 = vcvt.s32.f32 %v3110_v62  ;;  %v3088_v7 = vand.u32 2147483647, %v3087_v2  ;;  %v1184_v9 = vmul.f32 0.01, %v1056_v54 }
 0x18b   : > { %v3830_v37 = vtrunc.f32 %v2629_v63  ;;  %v1187_v11 = vmul.f32 0.01, %v1059_v59  ;;  %v1060_v12 = vcvt.s32.f32 %v4115_v55  ;;  %v1063_v13 = vcvt.s32.f32 %v4116_v3 }
 0x18c   : > { %v2632_v8 = vclampa-f32 %v1585_v4, -128, 127  ;;  %v3112_v10 = vand.u32 2147483647, %v3111_v6  ;;  %v3829_v15 = vcvt.f32.s32 %v3828_v30  ;;  %v3090_v16 = vor.u32 %v3089_v61, %v3088_v7  ;;  %v4119_v61 = vpop.add.s32.mrf.mxu0.mxu1 }
 0x18d   : > { %v1334_v18 = vadd.f32 %v4723_v41, %v1184_v9  ;;  %v1337_v19 = vadd.f32 %v4721_v38, %v1187_v11  ;;  %v3831_v20 = vcvt.f32.s32 %v3830_v37  ;;  %vm3109_vm8 = vcmp.lt.f32.partialorder %v3108_v5, 8388608.0  ;;  %v4120_v7 = vpop.add.s32.mrf.mxu0.mxu1 }
 0x18e   : > { %v3836_v23 = vtrunc.f32 %v2632_v8  ;;  %v3114_v24 = vor.u32 %v3113_v22, %v3112_v10  ;;  %v3091_v26 = vsel %vm4902_vm7, %v3090_v16, %v1330_v47  ;;  %v1188_v28 = vmul.f32 0.01, %v1060_v12 }
 0x18f   : > { %v3118_v27 = vcvt.f32.s32 %v1334_v18  ;;  %v1191_v25 = vmul.f32 0.01, %v1063_v13  ;;  %v1586_v32 = vadd.f32 -5.0, %v3091_v26  ;;  %v3116_v33 = vand.u32 2147483647, %v1334_v18 }
 0x190   : > { %v3837_v29 = vcvt.f32.s32 %v3836_v23  ;;  %v3115_v31 = vsel %vm3109_vm8, %v3114_v24, %v1333_v52  ;;  %v3121_v40 = vand.u32 2147483648, %v1334_v18  ;;  %v3142_v42 = vcvt.f32.s32 %v1337_v19 }
 0x191   : > { %v1589_v34 = vadd.f32 -5.0, %v3115_v31  ;;  %v3119_v35 = vcvt.s32.f32 %v3118_v27  ;;  %v2633_v44 = vclampa-f32 %v1586_v32, -128, 127  ;;  %v3140_v39 = vand.u32 2147483647, %v1337_v19 }
 0x192   : > { %v2334_v43 = vpack.c.b16 %v3837_v29, %v3829_v15  ;;  %v3145_v45 = vand.u32 2147483648, %v1337_v19  ;;  %v3143_v47 = vcvt.s32.f32 %v3142_v42  ;;  %v1338_v50 = vadd.f32 %v4723_v41, %v1188_v28 }
 0x193   : > { %v2636_v46 = vclampa-f32 %v1589_v34, -128, 127  ;;  %v3120_v49 = vand.u32 2147483647, %v3119_v35  ;;  %v3838_v52 = vtrunc.f32 %v2633_v44  ;;  %v1341_v21 = vadd.f32 %v4721_v38, %v1191_v25  ;;  %v4121_v35 = vpop.add.s32.mrf.mxu0.mxu1 }
 0x194   : > { %v2335_v53 = vpack.c.b8 %v2334_v43, %v4886_v36  ;;  %v1064_v48 = vcvt.s32.f32 %v4117_v14  ;;  %v3144_v56 = vand.u32 2147483647, %v3143_v47  ;;  %v3148_v57 = vand.u32 2147483647, %v1338_v50 }
 0x195   : > { %v4913_v54 = vtrunc.f32 %v2636_v46  ;;  %v3122_v55 = vor.u32 %v3121_v40, %v3120_v49  ;;  %v3839_v58 = vcvt.f32.s32 %v3838_v52  ;;  %vm3117_vm9 = vcmp.lt.f32.partialorder %v3116_v33, 8388608.0 }
 0x196   : > { %2413 = vst [vmem:[%s4814_s4 + $0x40] sm:$0xff] %v2335_v53  ;;  %vm4916_vm10 = vcmp.lt.f32.partialorder %v3140_v39, 8388608.0  ;;  %v3150_v30 = vcvt.f32.s32 %v1338_v50  ;;  %v3146_v36 = vor.u32 %v3145_v45, %v3144_v56  ;;  %v3153_v63 = vand.u32 2147483648, %v1338_v50 }
 0x197   : > { %v3123_v62 = vsel %vm3117_vm9, %v3122_v55, %v1334_v18  ;;  %v3172_v0 = vand.u32 2147483647, %v1341_v21  ;;  %v2337_v1 = vpack.c.b16 %v3839_v58, %v3831_v20  ;;  %v3845_v2 = vcvt.f32.s32 %v4913_v54 }
 0x198   : > { %v1590_v3 = vadd.f32 -5.0, %v3123_v62  ;;  %v3151_v4 = vcvt.s32.f32 %v3150_v30  ;;  %v3147_v5 = vsel %vm4916_vm10, %v3146_v36, %v1337_v19  ;;  %vm4923_vm11 = vcmp.lt.f32.partialorder %v3148_v57, 8388608.0  ;;  %v4122_v36 = vpop.add.s32.mrf.mxu0.mxu1 }
 0x199   : > { %v3174_v22 = vcvt.f32.s32 %v1341_v21  ;;  %v1192_v37 = vmul.f32 0.01, %v1064_v48  ;;  %v2338_v9 = vpack.c.b8 %v2337_v1, %v4898_v60  ;;  %v1593_v8 = vadd.f32 -5.0, %v3147_v5 }
 0x19a   : > { %v2637_v11 = vclampa-f32 %v1590_v3, -128, 127  ;;  %v3152_v10 = vand.u32 2147483647, %v3151_v4  ;;  %vm4928_vm12 = vcmp.lt.f32.partialorder %v3172_v0, 8388608.0  ;;  %v1067_v16 = vcvt.s32.f32 %v4118_v51 }
 0x19b   : > { %v3175_v13 = vcvt.s32.f32 %v3174_v22  ;;  %v1342_v15 = vadd.f32 %v4723_v41, %v1192_v37  ;;  %2414 = vst [vmem:[%s4814_s4 + $0x48] sm:$0xff] %v2338_v9  ;;  %v2640_v18 = vclampa-f32 %v1593_v8, -128, 127  ;;  %v1068_v20 = vcvt.s32.f32 %v4119_v61 }
 0x19c   : > { %v3154_v19 = vor.u32 %v3153_v63, %v3152_v10  ;;  %v1071_v23 = vcvt.s32.f32 %v4120_v7  ;;  %v3846_v24 = vtrunc.f32 %v2637_v11  ;;  %v3177_v27 = vand.u32 2147483648, %v1341_v21  ;;  %v4123_v11 = vpop.add.s32.mrf.mxu0.mxu1 }
 0x19d   : > { %v3176_v26 = vand.u32 2147483647, %v3175_v13  ;;  %v3182_v60 = vcvt.f32.s32 %v1342_v15  ;;  %v3852_v28 = vtrunc.f32 %v2640_v18  ;;  %v3180_v29 = vand.u32 2147483647, %v1342_v15 }
 0x19e   : > { %v3155_v25 = vsel %vm4923_vm11, %v3154_v19, %v1338_v50  ;;  %v1195_v32 = vmul.f32 0.01, %v1067_v16  ;;  %v3185_v34 = vand.u32 2147483648, %v1342_v15  ;;  %v1196_v43 = vmul.f32 0.01, %v1068_v20 }
 0x19f   : > { %v1594_v31 = vadd.f32 -5.0, %v3155_v25  ;;  %v3178_v33 = vor.u32 %v3177_v27, %v3176_v26  ;;  %v3183_v14 = vcvt.s32.f32 %v3182_v60  ;;  %v3853_v40 = vcvt.f32.s32 %v3852_v28 }
 0x1a0   : > { %v1345_v42 = vadd.f32 %v4721_v38, %v1195_v32  ;;  %v1199_v44 = vmul.f32 0.01, %v1071_v23  ;;  %v3847_v39 = vcvt.f32.s32 %v3846_v24  ;;  %vm4939_vm13 = vcmp.lt.f32.partialorder %v3180_v29, 8388608.0  ;;  %v4124_v29 = vpop.add.s32.mrf.mxu0.mxu1 }
 0x1a1   : > { %v2641_v45 = vclampa-f32 %v1594_v31, -128, 127  ;;  %v3179_v46 = vsel %vm4928_vm12, %v3178_v33, %v1341_v21  ;;  %v3184_v49 = vand.u32 2147483647, %v3183_v14  ;;  %v1072_v53 = vcvt.s32.f32 %v4121_v35 }
 0x1a2   : > { %v1597_v47 = vadd.f32 -5.0, %v3179_v46  ;;  %v3206_v51 = vcvt.f32.s32 %v1345_v42  ;;  %v3204_v54 = vand.u32 2147483647, %v1345_v42  ;;  %v1346_v55 = vadd.f32 %v4723_v41, %v1196_v43 }
 0x1a3   : > { %v3854_v52 = vtrunc.f32 %v2641_v45  ;;  %v3186_v48 = vor.u32 %v3185_v34, %v3184_v49  ;;  %v4944_v56 = vpack.c.b16 %v3853_v40, %v3845_v2  ;;  %v1349_v59 = vadd.f32 %v4721_v38, %v1199_v44 }
 0x1a4   : > { %v2644_v57 = vclampa-f32 %v1597_v47, -128, 127  ;;  %v3207_v58 = vcvt.s32.f32 %v3206_v51  ;;  %v3212_v61 = vand.u32 2147483647, %v1346_v55  ;;  %v3214_v62 = vcvt.f32.s32 %v1346_v55 }
 0x1a5   : > { %v3855_v21 = vcvt.f32.s32 %v3854_v52  ;;  %v3187_v30 = vsel %vm4939_vm13, %v3186_v48, %v1342_v15  ;;  %v3209_v3 = vand.u32 2147483648, %v1345_v42  ;;  %vm4951_vm14 = vcmp.lt.f32.partialorder %v3204_v54, 8388608.0  ;;  %v4125_v54 = vpop.add.s32.mrf.mxu0.mxu1 }
 0x1a6   : > { %v3860_v63 = vtrunc.f32 %v2644_v57  ;;  %v1598_v0 = vadd.f32 -5.0, %v3187_v30  ;;  %v3208_v1 = vand.u32 2147483647, %v3207_v58  ;;  %v3215_v5 = vcvt.s32.f32 %v3214_v62 }
 0x1a7   : > { %v4949_v4 = vpack.c.b16 %v3855_v21, %v3847_v39  ;;  %v3217_v6 = vand.u32 2147483648, %v1346_v55  ;;  %v3236_v7 = vand.u32 2147483647, %v1349_v59  ;;  %v3238_v9 = vcvt.f32.s32 %v1349_v59 }
 0x1a8   : > { %v2645_v22 = vclampa-f32 %v1598_v0, -128, 127  ;;  %v3210_v37 = vor.u32 %v3209_v3, %v3208_v1  ;;  %v3861_v8 = vcvt.f32.s32 %v3860_v63  ;;  %vm4955_vm15 = vcmp.lt.f32.partialorder %v3212_v61, 8388608.0  ;;  %v4126_v3 = vpop.add.s32.mrf.mxu0.mxu1 }
 0x1a9   : > { %v3216_v12 = vand.u32 2147483647, %v3215_v5  ;;  %v1200_v13 = vmul.f32 0.01, %v1072_v53  ;;  %v3239_v18 = vcvt.s32.f32 %v3238_v9  ;;  %v1075_v19 = vcvt.s32.f32 %v4122_v36 }
 0x1aa   : > { %v3862_v15 = vtrunc.f32 %v2645_v22  ;;  %v3211_v16 = vsel %vm4951_vm14, %v3210_v37, %v1345_v42  ;;  %v1076_v26 = vcvt.s32.f32 %v4123_v11  ;;  %vm4962_vm0 = vcmp.lt.f32.partialorder %v3236_v7, 8388608.0 }
 0x1ab   : > { %v1601_v20 = vadd.f32 -5.0, %v3211_v16  ;;  %v3218_v23 = vor.u32 %v3217_v6, %v3216_v12  ;;  %v1350_v24 = vadd.f32 %v4723_v41, %v1200_v13  ;;  %v3240_v60 = vand.u32 2147483647, %v3239_v18  ;;  %v4127_v13 = vpop.add.s32.mrf.mxu0.mxu1 }
 0x1ac   : > { %v3241_v28 = vand.u32 2147483648, %v1349_v59  ;;  %v1203_v25 = vmul.f32 0.01, %v1075_v19  ;;  %v3863_v32 = vcvt.f32.s32 %v3862_v15  ;;  %v1204_v39 = vmul.f32 0.01, %v1076_v26 }
 0x1ad   : > { %v2648_v31 = vclampa-f32 %v1601_v20, -128, 127  ;;  %v3219_v33 = vsel %vm4955_vm15, %v3218_v23, %v1346_v55  ;;  %v3246_v14 = vcvt.f32.s32 %v1350_v24  ;;  %v3244_v40 = vand.u32 2147483647, %v1350_v24 }
 0x1ae   : > { %v1602_v34 = vadd.f32 -5.0, %v3219_v33  ;;  %v3242_v35 = vor.u32 %v3241_v28, %v3240_v60  ;;  %v1353_v42 = vadd.f32 %v4721_v38, %v1203_v25  ;;  %v1079_v45 = vcvt.s32.f32 %v4124_v29  ;;  %v4128_v29 = vpop.add.s32.mrf.mxu0.mxu1 }
 0x1af   : > { %v3868_v43 = vtrunc.f32 %v2648_v31  ;;  %v3247_v44 = vcvt.s32.f32 %v3246_v14  ;;  %v3249_v47 = vand.u32 2147483648, %v1350_v24  ;;  %vm4971_vm1 = vcmp.lt.f32.partialorder %v3244_v40, 8388608.0 }
 0x1b0   : > { %v2649_v46 = vclampa-f32 %v1602_v34, -128, 127  ;;  %v3243_v49 = vsel %vm4962_vm0, %v3242_v35, %v1349_v59  ;;  %v3270_v50 = vcvt.f32.s32 %v1353_v42  ;;  %v3268_v48 = vand.u32 2147483647, %v1353_v42 }
 0x1b1   : > { %v3869_v51 = vcvt.f32.s32 %v3868_v43  ;;  %v1605_v53 = vadd.f32 -5.0, %v3243_v49  ;;  %v3248_v52 = vand.u32 2147483647, %v3247_v44  ;;  %v1354_v21 = vadd.f32 %v4723_v41, %v1204_v39 }
 0x1b2   : > { %v3870_v55 = vtrunc.f32 %v2649_v46  ;;  %v3271_v58 = vcvt.s32.f32 %v3270_v50  ;;  %v1207_v59 = vmul.f32 0.01, %v1079_v45  ;;  %v3273_v0 = vand.u32 2147483648, %v1353_v42  ;;  %v4129_v45 = vpop.add.s32.mrf.mxu0.mxu1 }
 0x1b3   : > { %v2346_v30 = vpack.c.b16 %v3869_v51, %v3861_v8  ;;  %v2652_v61 = vclampa-f32 %v1605_v53, -128, 127  ;;  %v3250_v62 = vor.u32 %v3249_v47, %v3248_v52  ;;  %v3278_v1 = vcvt.f32.s32 %v1354_v21 }
 0x1b4   : > { %v3871_v36 = vcvt.f32.s32 %v3870_v55  ;;  %v3272_v63 = vand.u32 2147483647, %v3271_v58  ;;  %vm4979_vm2 = vcmp.lt.f32.partialorder %v3268_v48, 8388608.0  ;;  %v3276_v22 = vand.u32 2147483647, %v1354_v21 }
 0x1b5   : > { %v2347_v2 = vpack.c.b8 %v2346_v30, %v4944_v56  ;;  %v3251_v5 = vsel %vm4971_vm1, %v3250_v62, %v1350_v24  ;;  %v4983_v7 = vtrunc.f32 %v2652_v61  ;;  %v3279_v8 = vcvt.s32.f32 %v3278_v1  ;;  %v4130_v30 = vpop.add.s32.mrf.mxu0.mxu1 }
 0x1b6   : > { %v2349_v37 = vpack.c.b16 %v3871_v36, %v3863_v32  ;;  %v1606_v9 = vadd.f32 -5.0, %v3251_v5  ;;  %v3274_v11 = vor.u32 %v3273_v0, %v3272_v63  ;;  %v3281_v10 = vand.u32 2147483648, %v1354_v21  ;;  %v4131_v60 = vpop.add.s32.mrf.mxu0.mxu1 }
 0x1b7   : > { %2417 = vst [vmem:[%s4814_s4 + $0x60] sm:$0xff] %v2347_v2  ;;  %v1357_v12 = vadd.f32 %v4721_v38, %v1207_v59  ;;  %v1080_v56 = vcvt.s32.f32 %v4125_v54  ;;  %v1083_v19 = vcvt.s32.f32 %v4126_v3  ;;  %v3280_v23 = vand.u32 2147483647, %v3279_v8 }
 0x1b8   : > { %v2350_v15 = vpack.c.b8 %v2349_v37, %v4949_v4  ;;  %v2653_v16 = vclampa-f32 %v1606_v9, -128, 127  ;;  %v3275_v18 = vsel %vm4979_vm2, %v3274_v11, %v1353_v42  ;;  %vm4991_vm3 = vcmp.lt.f32.partialorder %v3276_v22, 8388608.0 }
 0x1b9   : > { %v1609_v20 = vadd.f32 -5.0, %v3275_v18  ;;  %v3300_v24 = vand.u32 2147483647, %v1357_v12  ;;  %v3302_v26 = vcvt.f32.s32 %v1357_v12  ;;  %v1208_v28 = vmul.f32 0.01, %v1080_v56 }
 0x1ba   : > { %2418 = vst [vmem:[%s4814_s4 + $0x68] sm:$0xff] %v2350_v15  ;;  %v3878_v27 = vtrunc.f32 %v2653_v16  ;;  %v1211_v25 = vmul.f32 0.01, %v1083_v19  ;;  %v3877_v4 = vcvt.f32.s32 %v4983_v7  ;;  %v3282_v31 = vor.u32 %v3281_v10, %v3280_v23 }
 0x1bb   : > { %v2656_v32 = vclampa-f32 %v1609_v20, -128, 127  ;;  %v3303_v33 = vcvt.s32.f32 %v3302_v26  ;;  %vm4996_vm4 = vcmp.lt.f32.partialorder %v3300_v24, 8388608.0  ;;  %v3305_v34 = vand.u32 2147483648, %v1357_v12 }
 0x1bc   : > { %v1358_v35 = vadd.f32 %v4723_v41, %v1208_v28  ;;  %v1361_v40 = vadd.f32 %v4721_v38, %v1211_v25  ;;  %v3879_v42 = vcvt.f32.s32 %v3878_v27  ;;  %v3283_v44 = vsel %vm4991_vm3, %v3282_v31, %v1354_v21 }
 0x1bd   : > { %v3884_v43 = vtrunc.f32 %v2656_v32  ;;  %v3304_v39 = vand.u32 2147483647, %v3303_v33  ;;  %v1610_v46 = vadd.f32 -5.0, %v3283_v44  ;;  %v1084_v50 = vcvt.s32.f32 %v4127_v13 }
 0x1be   : > { %v3308_v49 = vand.u32 2147483647, %v1358_v35  ;;  %v3310_v47 = vcvt.f32.s32 %v1358_v35  ;;  %v3313_v53 = vand.u32 2147483648, %v1358_v35  ;;  %v3334_v52 = vcvt.f32.s32 %v1361_v40 }
 0x1bf   : > { %v3306_v51 = vor.u32 %v3305_v34, %v3304_v39  ;;  %v1087_v48 = vcvt.s32.f32 %v4128_v29  ;;  %v3885_v54 = vcvt.f32.s32 %v3884_v43  ;;  %v2657_v55 = vclampa-f32 %v1610_v46, -128, 127  ;;  %v4132_v43 = vpop.add.s32.mrf.mxu0.mxu1 }
 0x1c0   : > { %v3311_v57 = vcvt.s32.f32 %v3310_v47  ;;  %v3332_v58 = vand.u32 2147483647, %v1361_v40  ;;  %vm5006_vm5 = vcmp.lt.f32.partialorder %v3308_v49, 8388608.0  ;;  %v3335_v62 = vcvt.s32.f32 %v3334_v52 }
 0x1c1   : > { %v3307_v61 = vsel %vm4996_vm4, %v3306_v51, %v1357_v12  ;;  %v3337_v59 = vand.u32 2147483648, %v1361_v40  ;;  %v3886_v36 = vtrunc.f32 %v2657_v55  ;;  %v1212_v1 = vmul.f32 0.01, %v1084_v50  ;;  %v4133_v55 = vpop.add.s32.mrf.mxu0.mxu1 }
 0x1c2   : > { %v1613_v63 = vadd.f32 -5.0, %v3307_v61  ;;  %v3312_v0 = vand.u32 2147483647, %v3311_v57  ;;  %v3336_v3 = vand.u32 2147483647, %v3335_v62  ;;  %v1088_v5 = vcvt.s32.f32 %v4129_v45 }
 0x1c3   : > { %v1215_v2 = vmul.f32 0.01, %v1087_v48  ;;  %v1091_v6 = vcvt.s32.f32 %v4130_v30  ;;  %v3887_v22 = vcvt.f32.s32 %v3886_v36  ;;  %v1362_v9 = vadd.f32 %v4723_v41, %v1212_v1 }
 0x1c4   : > { %v2660_v37 = vclampa-f32 %v1613_v63, -128, 127  ;;  %v3314_v7 = vor.u32 %v3313_v53, %v3312_v0  ;;  %vm3333_vm6 = vcmp.lt.f32.partialorder %v3332_v58, 8388608.0  ;;  %v3338_v11 = vor.u32 %v3337_v59, %v3336_v3 }
 0x1c5   : > { %v1365_v8 = vadd.f32 %v4721_v38, %v1215_v2  ;;  %v1216_v10 = vmul.f32 0.01, %v1088_v5  ;;  %v3340_v13 = vand.u32 2147483647, %v1362_v9  ;;  %v1219_v15 = vmul.f32 0.01, %v1091_v6 }
 0x1c6   : > { %v3892_v12 = vtrunc.f32 %v2660_v37  ;;  %v3315_v56 = vsel %vm5006_vm5, %v3314_v7, %v1358_v35  ;;  %v2357_v16 = vpack.c.b16 %v3885_v54, %v3877_v4  ;;  %v3339_v19 = vsel %vm3333_vm6, %v3338_v11, %v1361_v40 }
 0x1c7   : > { %v1614_v18 = vadd.f32 -5.0, %v3315_v56  ;;  %v3342_v20 = vcvt.f32.s32 %v1362_v9  ;;  %v5014_v23 = vpack.c.b16 %v3887_v22, %v3879_v42  ;;  %v1617_v24 = vadd.f32 -5.0, %v3339_v19 }
 0x1c8   : > { %v3345_v26 = vand.u32 2147483648, %v1362_v9  ;;  %v3364_v27 = vand.u32 2147483647, %v1365_v8  ;;  %v3893_v28 = vcvt.f32.s32 %v3892_v12  ;;  %v3366_v32 = vcvt.f32.s32 %v1365_v8 }
 0x1c9   : > { %v2661_v25 = vclampa-f32 %v1614_v18, -128, 127  ;;  %v3343_v29 = vcvt.s32.f32 %v3342_v20  ;;  %v2664_v31 = vclampa-f32 %v1617_v24, -128, 127  ;;  %vm5016_vm7 = vcmp.lt.f32.partialorder %v3340_v13, 8388608.0 }
 0x1ca   : > { %v1366_v4 = vadd.f32 %v4723_v41, %v1216_v10  ;;  %v1369_v14 = vadd.f32 %v4721_v38, %v1219_v15  ;;  %v3367_v40 = vcvt.s32.f32 %v3366_v32  ;;  %v3369_v42 = vand.u32 2147483648, %v1365_v8 }
 0x1cb   : > { %v3894_v34 = vtrunc.f32 %v2661_v25  ;;  %v3344_v35 = vand.u32 2147483647, %v3343_v29  ;;  %v3900_v44 = vtrunc.f32 %v2664_v31  ;;  %vm5022_vm8 = vcmp.lt.f32.partialorder %v3364_v27, 8388608.0 }
 0x1cc   : > { %v3372_v45 = vand.u32 2147483647, %v1366_v4  ;;  %v3374_v46 = vcvt.f32.s32 %v1366_v4  ;;  %v3368_v47 = vand.u32 2147483647, %v3367_v40  ;;  %v3377_v50 = vand.u32 2147483648, %v1366_v4 }
 0x1cd   : > { %v3346_v49 = vor.u32 %v3345_v26, %v3344_v35  ;;  %v1092_v51 = vcvt.s32.f32 %v4131_v60  ;;  %v3895_v53 = vcvt.f32.s32 %v3894_v34  ;;  %v3901_v52 = vcvt.f32.s32 %v3900_v44 }
 0x1ce   : > { %v3375_v48 = vcvt.s32.f32 %v3374_v46  ;;  %v3398_v54 = vcvt.f32.s32 %v1369_v14  ;;  %v3370_v58 = vor.u32 %v3369_v42, %v3368_v47  ;;  %vm5028_vm9 = vcmp.lt.f32.partialorder %v3372_v45, 8388608.0 }
 0x1cf   : > { %v3347_v57 = vsel %vm5016_vm7, %v3346_v49, %v1362_v9  ;;  %v3396_v61 = vand.u32 2147483647, %v1369_v14  ;;  %v2358_v21 = vpack.c.b16 %v3901_v52, %v3893_v28  ;;  %v1220_v0 = vmul.f32 0.01, %v1092_v51 }
 0x1d0   : > { %v1618_v62 = vadd.f32 -5.0, %v3347_v57  ;;  %v3376_v59 = vand.u32 2147483647, %v3375_v48  ;;  %v3399_v36 = vcvt.s32.f32 %v3398_v54  ;;  %v3371_v63 = vsel %vm5022_vm8, %v3370_v58, %v1365_v8  ;;  %v4134_v8 = vpop.add.s32.mrf.mxu0.mxu1 }
 0x1d1   : > { %v1095_v1 = vcvt.s32.f32 %v4132_v43  ;;  %v1096_v3 = vcvt.s32.f32 %v4133_v55  ;;  %v2359_v2 = vpack.c.b8 %v2358_v21, %v2357_v16  ;;  %v1621_v6 = vadd.f32 -5.0, %v3371_v63  ;;  %v4135_v39 = vpop.add.s32.mrf.mxu0.mxu1 }
 0x1d2   : > { %v2665_v5 = vclampa-f32 %v1618_v62, -128, 127  ;;  %v3378_v22 = vor.u32 %v3377_v50, %v3376_v59  ;;  %v3400_v37 = vand.u32 2147483647, %v3399_v36  ;;  %v3401_v7 = vand.u32 2147483648, %v1369_v14  ;;  %v4136_v57 = vpop.add.s32.mrf.mxu0.mxu1 }
 0x1d3   : > { %v1370_v9 = vadd.f32 %v4723_v41, %v1220_v0  ;;  %v1223_v11 = vmul.f32 0.01, %v1095_v1  ;;  %2421 = vst [vmem:[%s4814_s4 + $0x80] sm:$0xff] %v2359_v2  ;;  %v2668_v12 = vclampa-f32 %v1621_v6, -128, 127  ;;  %vm3397_vm10 = vcmp.lt.f32.partialorder %v3396_v61, 8388608.0 }
 0x1d4   : > { %v3902_v10 = vtrunc.f32 %v2665_v5  ;;  %v3379_v56 = vsel %vm5028_vm9, %v3378_v22, %v1366_v4  ;;  %v3402_v15 = vor.u32 %v3401_v7, %v3400_v37  ;;  %v1224_v26 = vmul.f32 0.01, %v1096_v3  ;;  %v4137_v5 = vpop.add.s32.mrf.mxu0.mxu1 }
 0x1d5   : > { %v1622_v13 = vadd.f32 -5.0, %v3379_v56  ;;  %v3404_v18 = vand.u32 2147483647, %v1370_v9  ;;  %v3406_v16 = vcvt.f32.s32 %v1370_v9  ;;  %v3908_v20 = vtrunc.f32 %v2668_v12 }
 0x1d6   : > { %v3903_v19 = vcvt.f32.s32 %v3902_v10  ;;  %v1373_v24 = vadd.f32 %v4721_v38, %v1223_v11  ;;  %v3403_v60 = vsel %vm3397_vm10, %v3402_v15, %v1369_v14  ;;  %v1099_v25 = vcvt.s32.f32 %v4134_v8 }
 0x1d7   : > { %v2669_v27 = vclampa-f32 %v1622_v13, -128, 127  ;;  %v3407_v28 = vcvt.s32.f32 %v3406_v16  ;;  %v1625_v32 = vadd.f32 -5.0, %v3403_v60  ;;  %v3409_v31 = vand.u32 2147483648, %v1370_v9 }
 0x1d8   : > { %v2361_v29 = vpack.c.b16 %v3903_v19, %v3895_v53  ;;  %v3428_v33 = vand.u32 2147483647, %v1373_v24  ;;  %v3909_v4 = vcvt.f32.s32 %v3908_v20  ;;  %vm5039_vm11 = vcmp.lt.f32.partialorder %v3404_v18, 8388608.0  ;;  %v4138_v18 = vpop.add.s32.mrf.mxu0.mxu1 }
 0x1d9   : > { %v3408_v35 = vand.u32 2147483647, %v3407_v28  ;;  %v3430_v40 = vcvt.f32.s32 %v1373_v24  ;;  %v3910_v43 = vtrunc.f32 %v2669_v27  ;;  %v2672_v44 = vclampa-f32 %v1625_v32, -128, 127 }
 0x1da   : > { %v2362_v42 = vpack.c.b8 %v2361_v29, %v5014_v23  ;;  %v1374_v14 = vadd.f32 %v4723_v41, %v1224_v26  ;;  %v3433_v49 = vand.u32 2147483648, %v1373_v24  ;;  %v1227_v47 = vmul.f32 0.01, %v1099_v25 }
 0x1db   : > { %v3410_v45 = vor.u32 %v3409_v31, %v3408_v35  ;;  %v3431_v46 = vcvt.s32.f32 %v3430_v40  ;;  %v3916_v50 = vtrunc.f32 %v2672_v44  ;;  %vm5046_vm12 = vcmp.lt.f32.partialorder %v3428_v33, 8388608.0 }
 0x1dc   : > { %2422 = vst [vmem:[%s4814_s4 + $0x88] sm:$0xff] %v2362_v42  ;;  %v3436_v53 = vand.u32 2147483647, %v1374_v14  ;;  %v3438_v52 = vcvt.f32.s32 %v1374_v14  ;;  %v1377_v54 = vadd.f32 %v4721_v38, %v1227_v47  ;;  %v1100_v55 = vcvt.s32.f32 %v4135_v39 }
 0x1dd   : > { %v3411_v23 = vsel %vm5039_vm11, %v3410_v45, %v1370_v9  ;;  %v3432_v48 = vand.u32 2147483647, %v3431_v46  ;;  %v3917_v58 = vcvt.f32.s32 %v3916_v50  ;;  %v3441_v21 = vand.u32 2147483648, %v1374_v14  ;;  %v4139_v46 = vpop.add.s32.mrf.mxu0.mxu1 }
 0x1de   : > { %v1626_v30 = vadd.f32 -5.0, %v3411_v23  ;;  %v3439_v61 = vcvt.s32.f32 %v3438_v52  ;;  %vm5053_vm13 = vcmp.lt.f32.partialorder %v3436_v53, 8388608.0  ;;  %v3460_v36 = vand.u32 2147483647, %v1377_v54 }
 0x1df   : > { %v3434_v62 = vor.u32 %v3433_v49, %v3432_v48  ;;  %v3462_v63 = vcvt.f32.s32 %v1377_v54  ;;  %v3911_v0 = vcvt.f32.s32 %v3910_v43  ;;  %v1228_v2 = vmul.f32 0.01, %v1100_v55 }
 0x1e0   : > { %v2673_v1 = vclampa-f32 %v1626_v30, -128, 127  ;;  %v3440_v3 = vand.u32 2147483647, %v3439_v61  ;;  %v3465_v37 = vand.u32 2147483648, %v1377_v54  ;;  %v1103_v7 = vcvt.s32.f32 %v4136_v57  ;;  %v4140_v30 = vpop.add.s32.mrf.mxu0.mxu1 }
 0x1e1   : > { %v3435_v6 = vsel %vm5046_vm12, %v3434_v62, %v1373_v24  ;;  %v3463_v22 = vcvt.s32.f32 %v3462_v63  ;;  %v1378_v12 = vadd.f32 %v4723_v41, %v1228_v2  ;;  %v5060_v56 = vpack.c.b16 %v3917_v58, %v3909_v4 }
 0x1e2   : > { %v3918_v9 = vtrunc.f32 %v2673_v1  ;;  %v1629_v11 = vadd.f32 -5.0, %v3435_v6  ;;  %v3442_v10 = vor.u32 %v3441_v21, %v3440_v3  ;;  %v1231_v13 = vmul.f32 0.01, %v1103_v7 }
 0x1e3   : > { %v3464_v8 = vand.u32 2147483647, %v3463_v22  ;;  %v1104_v15 = vcvt.s32.f32 %v4137_v5  ;;  %vm3461_vm14 = vcmp.lt.f32.partialorder %v3460_v36, 8388608.0  ;;  %v3468_v27 = vand.u32 2147483647, %v1378_v12  ;;  %v4141_v22 = vpop.add.s32.mrf.mxu0.mxu1 }
 0x1e4   : > { %v3919_v16 = vcvt.f32.s32 %v3918_v9  ;;  %v2676_v19 = vclampa-f32 %v1629_v11, -128, 127  ;;  %v3443_v20 = vsel %vm5053_vm13, %v3442_v10, %v1374_v14  ;;  %v3470_v60 = vcvt.f32.s32 %v1378_v12 }
 0x1e5   : > { %v1630_v24 = vadd.f32 -5.0, %v3443_v20  ;;  %v3466_v26 = vor.u32 %v3465_v37, %v3464_v8  ;;  %v3473_v25 = vand.u32 2147483648, %v1378_v12  ;;  %v1381_v29 = vadd.f32 %v4721_v38, %v1231_v13 }
 0x1e6   : > { %v3924_v28 = vtrunc.f32 %v2676_v19  ;;  %v1107_v32 = vcvt.s32.f32 %v4138_v18  ;;  %v3471_v4 = vcvt.s32.f32 %v3470_v60  ;;  %v1232_v34 = vmul.f32 0.01, %v1104_v15 }
 0x1e7   : > { %v2677_v31 = vclampa-f32 %v1630_v24, -128, 127  ;;  %v3467_v33 = vsel %vm3461_vm14, %v3466_v26, %v1377_v54  ;;  %v5065_v35 = vpack.c.b16 %v3919_v16, %v3911_v0  ;;  %v3492_v42 = vand.u32 2147483647, %v1381_v29 }
 0x1e8   : > { %v1633_v40 = vadd.f32 -5.0, %v3467_v33  ;;  %v3494_v43 = vcvt.f32.s32 %v1381_v29  ;;  %vm5067_vm15 = vcmp.lt.f32.partialorder %v3468_v27, 8388608.0  ;;  %v3472_v39 = vand.u32 2147483647, %v3471_v4 }
 0x1e9   : > { %v3926_v44 = vtrunc.f32 %v2677_v31  ;;  %v1382_v45 = vadd.f32 %v4723_v41, %v1232_v34  ;;  %v3925_v49 = vcvt.f32.s32 %v3924_v28  ;;  %v1235_v51 = vmul.f32 0.01, %v1107_v32  ;;  %v4142_v32 = vpop.add.s32.mrf.mxu0.mxu1 }
 0x1ea   : > { %v2680_v47 = vclampa-f32 %v1633_v40, -128, 127  ;;  %v3495_v50 = vcvt.s32.f32 %v3494_v43  ;;  %v3474_v53 = vor.u32 %v3473_v25, %v3472_v39  ;;  %v3497_v52 = vand.u32 2147483648, %v1381_v29 }
 0x1eb   : > { %v3500_v23 = vand.u32 2147483647, %v1382_v45  ;;  %v3502_v48 = vcvt.f32.s32 %v1382_v45  ;;  %vm5072_vm0 = vcmp.lt.f32.partialorder %v3492_v42, 8388608.0  ;;  %v1385_v58 = vadd.f32 %v4721_v38, %v1235_v51  ;;  %v4143_v51 = vpop.add.s32.mrf.mxu0.mxu1 }
 0x1ec   : > { %v3932_v54 = vtrunc.f32 %v2680_v47  ;;  %v3496_v57 = vand.u32 2147483647, %v3495_v50  ;;  %v3927_v61 = vcvt.f32.s32 %v3926_v44  ;;  %v3475_v21 = vsel %vm5067_vm15, %v3474_v53, %v1378_v12 }
 0x1ed   : > { %v3503_v62 = vcvt.s32.f32 %v3502_v48  ;;  %v1108_v59 = vcvt.s32.f32 %v4139_v46  ;;  %v1634_v63 = vadd.f32 -5.0, %v3475_v21  ;;  %v3505_v1 = vand.u32 2147483648, %v1382_v45 }
 0x1ee   : > { %v3933_v36 = vcvt.f32.s32 %v3932_v54  ;;  %v3498_v0 = vor.u32 %v3497_v52, %v3496_v57  ;;  %vm5079_vm1 = vcmp.lt.f32.partialorder %v3500_v23, 8388608.0  ;;  %v3526_v5 = vcvt.f32.s32 %v1385_v58 }
 0x1ef   : > { %v3504_v2 = vand.u32 2147483647, %v3503_v62  ;;  %v1236_v6 = vmul.f32 0.01, %v1108_v59  ;;  %v2681_v7 = vclampa-f32 %v1634_v63, -128, 127  ;;  %v1111_v16 = vcvt.s32.f32 %v4140_v30  ;;  %v4144_v62 = vpop.add.s32.mrf.mxu0.mxu1 }
 0x1f0   : > { %v2370_v37 = vpack.c.b16 %v3933_v36, %v3925_v49  ;;  %v3499_v9 = vsel %vm5072_vm0, %v3498_v0, %v1381_v29  ;;  %v3524_v11 = vand.u32 2147483647, %v1385_v58  ;;  %v3527_v8 = vcvt.s32.f32 %v3526_v5 }
 0x1f1   : > { %v1637_v10 = vadd.f32 -5.0, %v3499_v9  ;;  %v3506_v12 = vor.u32 %v3505_v1, %v3504_v2  ;;  %v1386_v13 = vadd.f32 %v4723_v41, %v1236_v6  ;;  %v3934_v18 = vtrunc.f32 %v2681_v7  ;;  %v4145_v9 = vpop.add.s32.mrf.mxu0.mxu1 }
 0x1f2   : > { %v2371_v15 = vpack.c.b8 %v2370_v37, %v5060_v56  ;;  %v1112_v19 = vcvt.s32.f32 %v4141_v22  ;;  %v3528_v26 = vand.u32 2147483647, %v3527_v8  ;;  %v3529_v27 = vand.u32 2147483648, %v1385_v58 }
 0x1f3   : > { %v2684_v20 = vclampa-f32 %v1637_v10, -128, 127  ;;  %v3507_v24 = vsel %vm5079_vm1, %v3506_v12, %v1382_v45  ;;  %v3935_v60 = vcvt.f32.s32 %v3934_v18  ;;  %vm5090_vm2 = vcmp.lt.f32.partialorder %v3524_v11, 8388608.0 }
 0x1f4   : > { %2425 = vst [vmem:[%s4814_s4 + $0xa0] sm:$0xff] %v2371_v15  ;;  %v1638_v28 = vadd.f32 -5.0, %v3507_v24  ;;  %v3534_v29 = vcvt.f32.s32 %v1386_v13  ;;  %v3530_v56 = vor.u32 %v3529_v27, %v3528_v26  ;;  %v3532_v33 = vand.u32 2147483647, %v1386_v13  ;;  %v4146_v27 = vpop.add.s32.mrf.mxu0.mxu1 }
 0x1f5   : > { %v3940_v31 = vtrunc.f32 %v2684_v20  ;;  %v1239_v4 = vmul.f32 0.01, %v1111_v16  ;;  %v2373_v34 = vpack.c.b16 %v3935_v60, %v3927_v61  ;;  %v1240_v43 = vmul.f32 0.01, %v1112_v19 }
 0x1f6   : > { %v2685_v40 = vclampa-f32 %v1638_v28, -128, 127  ;;  %v3535_v42 = vcvt.s32.f32 %v3534_v29  ;;  %v3531_v44 = vsel %vm5090_vm2, %v3530_v56, %v1385_v58  ;;  %v3537_v14 = vand.u32 2147483648, %v1386_v13 }
 0x1f7   : > { %v1389_v39 = vadd.f32 %v4721_v38, %v1239_v4  ;;  %v1115_v45 = vcvt.s32.f32 %v4142_v32  ;;  %v2374_v46 = vpack.c.b8 %v2373_v34, %v5065_v35  ;;  %v1641_v47 = vadd.f32 -5.0, %v3531_v44 }
 0x1f8   : > { %v3942_v49 = vtrunc.f32 %v2685_v40  ;;  %v3536_v50 = vand.u32 2147483647, %v3535_v42  ;;  %vm5098_vm3 = vcmp.lt.f32.partialorder %v3532_v33, 8388608.0  ;;  %v1390_v48 = vadd.f32 %v4723_v41, %v1240_v43  ;;  %v4147_v42 = vpop.add.s32.mrf.mxu0.mxu1 }
 0x1f9   : > { %v3556_v52 = vand.u32 2147483647, %v1389_v39  ;;  %v3558_v23 = vcvt.f32.s32 %v1389_v39  ;;  %2426 = vst [vmem:[%s4814_s4 + $0xa8] sm:$0xff] %v2374_v46  ;;  %v3941_v54 = vcvt.f32.s32 %v3940_v31  ;;  %v2688_v55 = vclampa-f32 %v1641_v47, -128, 127 }
 0x1fa   : > { %v3538_v57 = vor.u32 %v3537_v14, %v3536_v50  ;;  %v1243_v58 = vmul.f32 0.01, %v1115_v45  ;;  %v3943_v30 = vcvt.f32.s32 %v3942_v49  ;;  %v3561_v35 = vand.u32 2147483648, %v1389_v39 }
 0x1fb   : > { %v3559_v61 = vcvt.s32.f32 %v3558_v23  ;;  %v3566_v21 = vcvt.f32.s32 %v1390_v48  ;;  %v3948_v59 = vtrunc.f32 %v2688_v55  ;;  %v3564_v63 = vand.u32 2147483647, %v1390_v48  ;;  %v4148_v23 = vpop.add.s32.mrf.mxu0.mxu1 }
 0x1fc   : > { %v3539_v36 = vsel %vm5098_vm3, %v3538_v57, %v1386_v13  ;;  %v1393_v0 = vadd.f32 %v4721_v38, %v1243_v58  ;;  %vm5107_vm4 = vcmp.lt.f32.partialorder %v3556_v52, 8388608.0  ;;  %v3569_v22 = vand.u32 2147483648, %v1390_v48 }
 0x1fd   : > { %v1642_v1 = vadd.f32 -5.0, %v3539_v36  ;;  %v3560_v2 = vand.u32 2147483647, %v3559_v61  ;;  %v3567_v5 = vcvt.s32.f32 %v3566_v21  ;;  %v3949_v6 = vcvt.f32.s32 %v3948_v59 }
 0x1fe   : > { %v3588_v37 = vand.u32 2147483647, %v1393_v0  ;;  %v3590_v7 = vcvt.f32.s32 %v1393_v0  ;;  %v1116_v8 = vcvt.s32.f32 %v4143_v51  ;;  %vm5111_vm5 = vcmp.lt.f32.partialorder %v3564_v63, 8388608.0 }
 0x1ff   : > { %v2689_v11 = vclampa-f32 %v1642_v1, -128, 127  ;;  %v3562_v10 = vor.u32 %v3561_v35, %v3560_v2  ;;  %v3568_v12 = vand.u32 2147483647, %v3567_v5  ;;  %v3593_v18 = vand.u32 2147483648, %v1393_v0  ;;  %v4149_v2 = vpop.add.s32.mrf.mxu0.mxu1 }
 0x200   : > { %v3591_v15 = vcvt.s32.f32 %v3590_v7  ;;  %v1119_v16 = vcvt.s32.f32 %v4144_v62  ;;  %v1244_v26 = vmul.f32 0.01, %v1116_v8  ;;  %v5117_v60 = vpack.c.b16 %v3949_v6, %v3941_v54 }
 0x201   : > { %v3950_v19 = vtrunc.f32 %v2689_v11  ;;  %v3563_v20 = vsel %vm5107_vm4, %v3562_v10, %v1389_v39  ;;  %v3570_v24 = vor.u32 %v3569_v22, %v3568_v12  ;;  %vm3589_vm6 = vcmp.lt.f32.partialorder %v3588_v37, 8388608.0 }
 0x202   : > { %v1645_v28 = vadd.f32 -5.0, %v3563_v20  ;;  %v3592_v25 = vand.u32 2147483647, %v3591_v15  ;;  %v1247_v29 = vmul.f32 0.01, %v1119_v16  ;;  %v1394_v56 = vadd.f32 %v4723_v41, %v1244_v26 }
 0x203   : > { %v3951_v32 = vcvt.f32.s32 %v3950_v19  ;;  %v3571_v31 = vsel %vm5111_vm5, %v3570_v24, %v1390_v48  ;;  %v1120_v14 = vcvt.s32.f32 %v4145_v9  ;;  %v1123_v39 = vcvt.s32.f32 %v4146_v27 }
 0x204   : > { %v2692_v33 = vclampa-f32 %v1645_v28, -128, 127  ;;  %v1646_v4 = vadd.f32 -5.0, %v3571_v31  ;;  %v3594_v34 = vor.u32 %v3593_v18, %v3592_v25  ;;  %v1397_v40 = vadd.f32 %v4721_v38, %v1247_v29 }
 0x205   : > { %v3596_v43 = vand.u32 2147483647, %v1394_v56  ;;  %v3598_v44 = vcvt.f32.s32 %v1394_v56  ;;  %v5123_v45 = vpack.c.b16 %v3951_v32, %v3943_v30  ;;  %v3601_v53 = vand.u32 2147483648, %v1394_v56 }
 0x206   : > { %v3956_v46 = vtrunc.f32 %v2692_v33  ;;  %v2693_v49 = vclampa-f32 %v1646_v4, -128, 127  ;;  %v3595_v47 = vsel %vm3589_vm6, %v3594_v34, %v1393_v0  ;;  %v3622_v52 = vcvt.f32.s32 %v1397_v40 }
 0x207   : > { %v1649_v50 = vadd.f32 -5.0, %v3595_v47  ;;  %v3599_v51 = vcvt.s32.f32 %v3598_v44  ;;  %vm5125_vm7 = vcmp.lt.f32.partialorder %v3596_v43, 8388608.0  ;;  %v3620_v57 = vand.u32 2147483647, %v1397_v40 }
 0x208   : > { %v3957_v48 = vcvt.f32.s32 %v3956_v46  ;;  %v3958_v54 = vtrunc.f32 %v2693_v49  ;;  %v3623_v35 = vcvt.s32.f32 %v3622_v52  ;;  %v1248_v30 = vmul.f32 0.01, %v1120_v14  ;;  %v4150_v49 = vpop.add.s32.mrf.mxu0.mxu1 }
 0x209   : > { %v2696_v58 = vclampa-f32 %v1649_v50, -128, 127  ;;  %v3600_v61 = vand.u32 2147483647, %v3599_v51  ;;  %v3625_v21 = vand.u32 2147483648, %v1397_v40  ;;  %v1124_v59 = vcvt.s32.f32 %v4147_v42 }
 0x20a   : > { %v1251_v62 = vmul.f32 0.01, %v1123_v39  ;;  %v1127_v36 = vcvt.s32.f32 %v4148_v23  ;;  %v3624_v1 = vand.u32 2147483647, %v3623_v35  ;;  %v1398_v3 = vadd.f32 %v4723_v41, %v1248_v30  ;;  %v4151_v35 = vpop.add.s32.mrf.mxu0.mxu1 }
 0x20b   : > { %v3964_v63 = vtrunc.f32 %v2696_v58  ;;  %v3602_v0 = vor.u32 %v3601_v53, %v3600_v61  ;;  %v3959_v5 = vcvt.f32.s32 %v3958_v54  ;;  %vm5130_vm8 = vcmp.lt.f32.partialorder %v3620_v57, 8388608.0 }
 0x20c   : > { %v1401_v22 = vadd.f32 %v4721_v38, %v1251_v62  ;;  %v1252_v37 = vmul.f32 0.01, %v1124_v59  ;;  %v3626_v11 = vor.u32 %v3625_v21, %v3624_v1  ;;  %v3628_v10 = vand.u32 2147483647, %v1398_v3 }
 0x20d   : > { %v3965_v7 = vcvt.f32.s32 %v3964_v63  ;;  %v3603_v9 = vsel %vm5125_vm7, %v3602_v0, %v1394_v56  ;;  %v3630_v8 = vcvt.f32.s32 %v1398_v3  ;;  %v1255_v13 = vmul.f32 0.01, %v1127_v36 }
 0x20e   : > { %v1650_v12 = vadd.f32 -5.0, %v3603_v9  ;;  %v1128_v15 = vcvt.s32.f32 %v4149_v2  ;;  %v3627_v16 = vsel %vm5130_vm8, %v3626_v11, %v1397_v40  ;;  %v3633_v19 = vand.u32 2147483648, %v1398_v3 }
 0x20f   : > { %v2382_v18 = vpack.c.b16 %v3965_v7, %v3957_v48  ;;  %v3654_v20 = vcvt.f32.s32 %v1401_v22  ;;  %v1653_v26 = vadd.f32 -5.0, %v3627_v16  ;;  %v3631_v27 = vcvt.s32.f32 %v3630_v8  ;;  %v4152_v16 = vpop.add.s32.mrf.mxu0.mxu1 }
 0x210   : > { %v2697_v24 = vclampa-f32 %v1650_v12, -128, 127  ;;  %v3652_v28 = vand.u32 2147483647, %v1401_v22  ;;  %vm5140_vm9 = vcmp.lt.f32.partialorder %v3628_v10, 8388608.0  ;;  %v1402_v31 = vadd.f32 %v4723_v41, %v1252_v37 }
 0x211   : > { %v2383_v25 = vpack.c.b8 %v2382_v18, %v5117_v60  ;;  %v3655_v32 = vcvt.s32.f32 %v3654_v20  ;;  %v2700_v33 = vclampa-f32 %v1653_v26, -128, 127  ;;  %v3632_v4 = vand.u32 2147483647, %v3631_v27 }
 0x212   : > { %v3966_v56 = vtrunc.f32 %v2697_v24  ;;  %v1405_v34 = vadd.f32 %v4721_v38, %v1255_v13  ;;  %v3657_v42 = vand.u32 2147483648, %v1401_v22  ;;  %v3660_v43 = vand.u32 2147483647, %v1402_v31 }
 0x213   : > { %2429 = vst [vmem:[%s4814_s4 + $0xc0] sm:$0xff] %v2383_v25  ;;  %v3656_v40 = vand.u32 2147483647, %v3655_v32  ;;  %v3662_v44 = vcvt.f32.s32 %v1402_v31  ;;  %v3634_v39 = vor.u32 %v3633_v19, %v3632_v4  ;;  %vm5147_vm10 = vcmp.lt.f32.partialorder %v3652_v28, 8388608.0 }
 0x214   : > { %v3967_v14 = vcvt.f32.s32 %v3966_v56  ;;  %v3665_v46 = vand.u32 2147483648, %v1402_v31  ;;  %v5151_v47 = vtrunc.f32 %v2700_v33  ;;  %v3686_v53 = vcvt.f32.s32 %v1405_v34 }
 0x215   : > { %v3658_v50 = vor.u32 %v3657_v42, %v3656_v40  ;;  %v3663_v51 = vcvt.s32.f32 %v3662_v44  ;;  %v3635_v23 = vsel %vm5140_vm9, %v3634_v39, %v1398_v3  ;;  %vm5155_vm11 = vcmp.lt.f32.partialorder %v3660_v43, 8388608.0  ;;  %v4216_v42 = vld [vmem:[%s4717_s25] sm:$0xf] }
 0x216   : > { %v2385_v52 = vpack.c.b16 %v3967_v14, %v3959_v5  ;;  %v3684_v54 = vand.u32 2147483647, %v1405_v34  ;;  %v1654_v55 = vadd.f32 -5.0, %v3635_v23  ;;  %v3687_v61 = vcvt.s32.f32 %v3686_v53 }
 0x217   : > { %v3659_v57 = vsel %vm5147_vm10, %v3658_v50, %v1401_v22  ;;  %v3664_v58 = vand.u32 2147483647, %v3663_v51  ;;  %v3689_v62 = vand.u32 2147483648, %v1405_v34  ;;  %v1256_v59 = vmul.f32 0.01, %v1128_v15 }
 0x218   : > { %v2386_v30 = vpack.c.b8 %v2385_v52, %v5123_v45  ;;  %v1657_v21 = vadd.f32 -5.0, %v3659_v57  ;;  %v2701_v36 = vclampa-f32 %v1654_v55, -128, 127  ;;  %v3688_v0 = vand.u32 2147483647, %v3687_v61 }
 0x219   : > { %v3666_v63 = vor.u32 %v3665_v46, %v3664_v58  ;;  %v1131_v1 = vcvt.s32.f32 %v4150_v49  ;;  %vm5163_vm12 = vcmp.lt.f32.partialorder %v3684_v54, 8388608.0  ;;  %v1406_v5 = vadd.f32 %v4723_v41, %v1256_v59 }
 0x21a   : > { %2430 = vst [vmem:[%s4814_s4 + $0xc8] sm:$0xff] %v2386_v30  ;;  %v2704_v3 = vclampa-f32 %v1657_v21, -128, 127  ;;  %v1132_v6 = vcvt.s32.f32 %v4151_v35  ;;  %v3974_v22 = vtrunc.f32 %v2701_v36  ;;  %v3690_v37 = vor.u32 %v3689_v62, %v3688_v0 }
 0x21b   : > { %v3667_v45 = vsel %vm5155_vm11, %v3666_v63, %v1402_v31  ;;  %v1259_v7 = vmul.f32 0.01, %v1131_v1  ;;  %v3692_v10 = vand.u32 2147483647, %v1406_v5  ;;  %v3694_v12 = vcvt.f32.s32 %v1406_v5 }
 0x21c   : > { %v3980_v9 = vtrunc.f32 %v2704_v3  ;;  %v1658_v11 = vadd.f32 -5.0, %v3667_v45  ;;  %v3973_v8 = vcvt.f32.s32 %v5151_v47  ;;  %v3691_v13 = vsel %vm5163_vm12, %v3690_v37, %v1405_v34 }
 0x21d   : > { %v1409_v15 = vadd.f32 %v4721_v38, %v1259_v7  ;;  %v1275_v18 = vsub.s32 2, %v4714_v17  ;;  %v3975_v19 = vcvt.f32.s32 %v3974_v22  ;;  %v1661_v24 = vadd.f32 -5.0, %v3691_v13  ;;  %v4153_v38 = vpop.add.s32.mrf.mxu0.mxu1 }
 0x21e   : > { %v2705_v20 = vclampa-f32 %v1658_v11, -128, 127  ;;  %v3697_v26 = vand.u32 2147483648, %v1406_v5  ;;  %v3981_v27 = vcvt.f32.s32 %v3980_v9  ;;  %vm5175_vm13 = vcmp.lt.f32.partialorder %v3692_v10, 8388608.0  ;;  %v4154_v51 = vpop.add.s32.mrf.mxu0.mxu1 }
 0x21f   : > { %v3695_v25 = vcvt.s32.f32 %v3694_v12  ;;  %v3718_v29 = vcvt.f32.s32 %v1409_v15  ;;  %v2708_v31 = vclampa-f32 %v1661_v24, -128, 127  ;;  %v3716_v56 = vand.u32 2147483647, %v1409_v15  ;;  %v4155_v30 = vpop.add.s32.mrf.mxu0.mxu1 }
 0x220   : > { %v3982_v32 = vtrunc.f32 %v2705_v20  ;;  %v1260_v33 = vmul.f32 0.01, %v1132_v6  ;;  %v3721_v40 = vand.u32 2147483648, %v1409_v15  ;;  %v5180_v43 = vrot.slane %v4216_v42, %v1275_v18 }
 0x221   : > { %v3696_v4 = vand.u32 2147483647, %v3695_v25  ;;  %v3719_v34 = vcvt.s32.f32 %v3718_v29  ;;  %v3988_v14 = vtrunc.f32 %v2708_v31  ;;  %v1009_v60 = vcvt.s32.f32 %v4152_v16  ;;  %v4156_v16 = vpop.add.s32.mrf.mxu0.mxu1 }
 0x222   : > { %v3983_v44 = vcvt.f32.s32 %v3982_v32  ;;  %v1410_v39 = vadd.f32 %v4723_v41, %v1260_v33  ;;  %v1279_v47 = vsub.s32 3, %v4714_v17  ;;  %v1010_v50 = vcvt.s32.f32 %v4153_v38  ;;  %v4157_v38 = vpop.add.s32.mrf.mxu0.mxu1 }
 0x223   : > { %v3698_v46 = vor.u32 %v3697_v26, %v3696_v4  ;;  %v3720_v49 = vand.u32 2147483647, %v3719_v34  ;;  %v5184_v53 = vpack.c.b16 %v3981_v27, %v3973_v8  ;;  %vm5188_vm14 = vcmp.lt.f32.partialorder %v3716_v56, 8388608.0 }
 0x224   : > { %v5186_v52 = vpack.c.b16 %v3983_v44, %v3975_v19  ;;  %v3726_v48 = vcvt.f32.s32 %v1410_v39  ;;  %v3989_v54 = vcvt.f32.s32 %v3988_v14  ;;  %v1137_v57 = vmul.f32 0.01, %v1009_v60 }
 0x225   : > { %v3699_v41 = vsel %vm5175_vm13, %v3698_v46, %v1406_v5  ;;  %v3722_v55 = vor.u32 %v3721_v40, %v3720_v49  ;;  %v3724_v61 = vand.u32 2147483647, %v1410_v39  ;;  %v5194_v35 = vrot.slane %v4216_v42, %v1279_v47 }
 0x226   : > { %v1662_v58 = vadd.f32 -5.0, %v3699_v41  ;;  %v3727_v17 = vcvt.s32.f32 %v3726_v48  ;;  %v1287_v62 = vadd.f32 %v5180_v43, %v1137_v57  ;;  %v1138_v59 = vmul.f32 0.01, %v1010_v50 }
 0x227   : > { %v3723_v21 = vsel %vm5188_vm14, %v3722_v55, %v1409_v15  ;;  %v1013_v36 = vcvt.s32.f32 %v4154_v51  ;;  %v3729_v3 = vand.u32 2147483648, %v1410_v39  ;;  %v1014_v22 = vcvt.s32.f32 %v4155_v30  ;;  %v4158_v51 = vpop.add.s32.mrf.mxu0.mxu1 }
 0x228   : > { %v2709_v63 = vclampa-f32 %v1662_v58, -128, 127  ;;  %v1665_v0 = vadd.f32 -5.0, %v3723_v21  ;;  %v3728_v1 = vand.u32 2147483647, %v3727_v17  ;;  %v2742_v5 = vcvt.f32.s32 %v1287_v62 }
 0x229   : > { %v2740_v2 = vand.u32 2147483647, %v1287_v62  ;;  %v1288_v6 = vadd.f32 %v5194_v35, %v1138_v59  ;;  %v1141_v9 = vmul.f32 0.01, %v1013_v36  ;;  %vm3725_vm15 = vcmp.lt.f32.partialorder %v3724_v61, 8388608.0 }
 0x22a   : > { %v3990_v45 = vtrunc.f32 %v2709_v63  ;;  %v2712_v37 = vclampa-f32 %v1665_v0, -128, 127  ;;  %v3730_v7 = vor.u32 %v3729_v3, %v3728_v1  ;;  %v2743_v11 = vcvt.s32.f32 %v2742_v5 }
 0x22b   : > { %v2748_v10 = vand.u32 2147483647, %v1288_v6  ;;  %v2750_v12 = vcvt.f32.s32 %v1288_v6  ;;  %vm5200_vm0 = vcmp.lt.f32.partialorder %v2740_v2, 8388608.0  ;;  %v2745_v18 = vand.u32 2147483648, %v1287_v62 }
 0x22c   : > { %v3996_v8 = vtrunc.f32 %v2712_v37  ;;  %v3731_v13 = vsel %vm3725_vm15, %v3730_v7, %v1410_v39  ;;  %v3991_v19 = vcvt.f32.s32 %v3990_v45  ;;  %v2744_v24 = vand.u32 2147483647, %v2743_v11 }
 0x22d   : > { %v1666_v20 = vadd.f32 -5.0, %v3731_v13  ;;  %v2751_v26 = vcvt.s32.f32 %v2750_v12  ;;  %v2753_v28 = vand.u32 2147483648, %v1288_v6  ;;  %v1291_v25 = vadd.f32 %v5180_v43, %v1141_v9 }
 0x22e   : > { %v3997_v27 = vcvt.f32.s32 %v3996_v8  ;;  %v1142_v29 = vmul.f32 0.01, %v1014_v22  ;;  %v2746_v31 = vor.u32 %v2745_v18, %v2744_v24  ;;  %vm5205_vm1 = vcmp.lt.f32.partialorder %v2748_v10, 8388608.0 }
 0x22f   : > { %v2713_v32 = vclampa-f32 %v1666_v20, -128, 127  ;;  %v2752_v33 = vand.u32 2147483647, %v2751_v26  ;;  %v2772_v34 = vand.u32 2147483647, %v1291_v25  ;;  %v2774_v40 = vcvt.f32.s32 %v1291_v25 }
 0x230   : > { %v2394_v4 = vpack.c.b16 %v3997_v27, %v3989_v54  ;;  %v1017_v42 = vcvt.s32.f32 %v4156_v16  ;;  %v2747_v14 = vsel %vm5200_vm0, %v2746_v31, %v1287_v62  ;;  %v1292_v60 = vadd.f32 %v5194_v35, %v1142_v29  ;;  %v4159_v62 = vpop.add.s32.mrf.mxu0.mxu1 }
 0x231   : > { %v3998_v44 = vtrunc.f32 %v2713_v32  ;;  %v2754_v39 = vor.u32 %v2753_v28, %v2752_v33  ;;  %v1543_v49 = vadd.f32 -5.0, %v2747_v14  ;;  %v2775_v47 = vcvt.s32.f32 %v2774_v40  ;;  %v4160_v7 = vpop.add.s32.mrf.mxu0.mxu1 }
 0x232   : > { %v2395_v46 = vpack.c.b8 %v2394_v4, %v5184_v53  ;;  %v1018_v50 = vcvt.s32.f32 %v4157_v38  ;;  %v2780_v54 = vand.u32 2147483647, %v1292_v60  ;;  %v2782_v41 = vcvt.f32.s32 %v1292_v60  ;;  %v4161_v24 = vpop.add.s32.mrf.mxu0.mxu1 }
 0x233   : > { %v3999_v23 = vcvt.f32.s32 %v3998_v44  ;;  %v2755_v48 = vsel %vm5205_vm1, %v2754_v39, %v1288_v6  ;;  %v2590_v55 = vclampa-f32 %v1543_v49, -128, 127  ;;  %v2776_v58 = vand.u32 2147483647, %v2775_v47 }
 0x234   : > { %2433 = vst [vmem:[%s4814_s4 + $0xe0] sm:$0xff] %v2395_v46  ;;  %v1544_v57 = vadd.f32 -5.0, %v2755_v48  ;;  %v2777_v61 = vand.u32 2147483648, %v1291_v25  ;;  %vm5216_vm2 = vcmp.lt.f32.partialorder %v2772_v34, 8388608.0  ;;  %v2783_v53 = vcvt.s32.f32 %v2782_v41 }
 0x235   : > { %v2397_v17 = vpack.c.b16 %v3999_v23, %v3991_v19  ;;  %v1145_v21 = vmul.f32 0.01, %v1017_v42  ;;  %v3752_v59 = vtrunc.f32 %v2590_v55  ;;  %v1146_v0 = vmul.f32 0.01, %v1018_v50 }
 0x236   : > { %v2591_v36 = vclampa-f32 %v1544_v57, -128, 127  ;;  %v2778_v63 = vor.u32 %v2777_v61, %v2776_v58  ;;  %v2784_v3 = vand.u32 2147483647, %v2783_v53  ;;  %v2785_v2 = vand.u32 2147483648, %v1292_v60 }
 0x237   : > { %v2398_v1 = vpack.c.b8 %v2397_v17, %v5186_v52  ;;  %v1295_v5 = vadd.f32 %v5180_v43, %v1145_v21  ;;  %vm5226_vm3 = vcmp.lt.f32.partialorder %v2780_v54, 8388608.0  ;;  %v1296_v37 = vadd.f32 %v5194_v35, %v1146_v0 }
 0x238   : > { %v5222_v6 = vtrunc.f32 %v2591_v36  ;;  %v2779_v22 = vsel %vm5216_vm2, %v2778_v63, %v1291_v25  ;;  %v2786_v11 = vor.u32 %v2785_v2, %v2784_v3  ;;  %v1021_v10 = vcvt.s32.f32 %v4158_v51  ;;  %v4162_v51 = vpop.add.s32.mrf.mxu0.mxu1 }
 0x239   : > { %2434 = vst [vmem:[%s4814_s4 + $0xe8] sm:$0xff] %v2398_v1  ;;  %v1547_v9 = vadd.f32 -5.0, %v2779_v22  ;;  %v2806_v52 = vcvt.f32.s32 %v1295_v5  ;;  %v3753_v12 = vcvt.f32.s32 %v3752_v59  ;;  %v2804_v13 = vand.u32 2147483647, %v1295_v5 }
 0x23a   : > { %v3755_v8 = vcvt.f32.s32 %v5222_v6  ;;  %v2814_v15 = vcvt.f32.s32 %v1296_v37  ;;  %v2787_v16 = vsel %vm5226_vm3, %v2786_v11, %v1292_v60  ;;  %v2809_v20 = vand.u32 2147483648, %v1295_v5 }
 0x23b   : > { %v2594_v18 = vclampa-f32 %v1547_v9, -128, 127  ;;  %v2807_v19 = vcvt.s32.f32 %v2806_v52  ;;  %v1548_v26 = vadd.f32 -5.0, %v2787_v16  ;;  %v2812_v27 = vand.u32 2147483647, %v1296_v37 }
 0x23c   : > { %v2815_v28 = vcvt.s32.f32 %v2814_v15  ;;  %v2817_v25 = vand.u32 2147483648, %v1296_v37  ;;  %v1149_v31 = vmul.f32 0.01, %v1021_v10  ;;  %v1022_v56 = vcvt.s32.f32 %v4159_v62  ;;  %v4163_v62 = vpop.add.s32.mrf.mxu0.mxu1 }
 0x23d   : > { %v3760_v29 = vtrunc.f32 %v2594_v18  ;;  %v2808_v32 = vand.u32 2147483647, %v2807_v19  ;;  %v2595_v33 = vclampa-f32 %v1548_v26, -128, 127  ;;  %v1025_v4 = vcvt.s32.f32 %v4160_v7  ;;  %v4164_v7 = vpop.add.s32.mrf.mxu0.mxu1 }
 0x23e   : > { %v2816_v38 = vand.u32 2147483647, %v2815_v28  ;;  %v1026_v34 = vcvt.s32.f32 %v4161_v24  ;;  %v1299_v44 = vadd.f32 %v5180_v43, %v1149_v31  ;;  %v1150_v14 = vmul.f32 0.01, %v1022_v56  ;;  %v4165_v24 = vpop.add.s32.mrf.mxu0.mxu1 }
 0x23f   : > { %v3761_v40 = vcvt.f32.s32 %v3760_v29  ;;  %v2810_v42 = vor.u32 %v2809_v20, %v2808_v32  ;;  %v3762_v39 = vtrunc.f32 %v2595_v33  ;;  %vm2805_vm4 = vcmp.lt.f32.partialorder %v2804_v13, 8388608.0 }
 0x240   : > { %v2818_v60 = vor.u32 %v2817_v25, %v2816_v38  ;;  %v1153_v46 = vmul.f32 0.01, %v1025_v4  ;;  %vm2813_vm5 = vcmp.lt.f32.partialorder %v2812_v27, 8388608.0  ;;  %v2836_v47 = vand.u32 2147483647, %v1299_v44 }
 0x241   : > { %v2811_v49 = vsel %vm2805_vm4, %v2810_v42, %v1295_v5  ;;  %v2838_v50 = vcvt.f32.s32 %v1299_v44  ;;  %v5236_v23 = vpack.c.b16 %v3761_v40, %v3753_v12  ;;  %v1154_v41 = vmul.f32 0.01, %v1026_v34 }
 0x242   : > { %v1551_v48 = vadd.f32 -5.0, %v2811_v49  ;;  %v2819_v54 = vsel %vm2813_vm5, %v2818_v60, %v1296_v37  ;;  %v3763_v55 = vcvt.f32.s32 %v3762_v39  ;;  %v1300_v61 = vadd.f32 %v5194_v35, %v1150_v14 }
 0x243   : > { %v1552_v57 = vadd.f32 -5.0, %v2819_v54  ;;  %v2839_v58 = vcvt.s32.f32 %v2838_v50  ;;  %vm5239_vm6 = vcmp.lt.f32.partialorder %v2836_v47, 8388608.0  ;;  %v2841_v53 = vand.u32 2147483648, %v1299_v44 }
 0x244   : > { %v2598_v17 = vclampa-f32 %v1551_v48, -128, 127  ;;  %v1303_v21 = vadd.f32 %v5180_v43, %v1153_v46  ;;  %v2844_v63 = vand.u32 2147483647, %v1300_v61  ;;  %v2846_v0 = vcvt.f32.s32 %v1300_v61 }
 0x245   : > { %v2599_v59 = vclampa-f32 %v1552_v57, -128, 127  ;;  %v2840_v36 = vand.u32 2147483647, %v2839_v58  ;;  %v1304_v5 = vadd.f32 %v5194_v35, %v1154_v41  ;;  %v5245_v6 = vpack.c.b16 %v3763_v55, %v3755_v8  ;;  %v4166_v57 = vpop.add.s32.mrf.mxu0.mxu1 }
 0x246   : > { %v3768_v1 = vtrunc.f32 %v2598_v17  ;;  %v2868_v3 = vand.u32 2147483647, %v1303_v21  ;;  %v2870_v2 = vcvt.f32.s32 %v1303_v21  ;;  %v2847_v45 = vcvt.s32.f32 %v2846_v0 }
 0x247   : > { %v2842_v22 = vor.u32 %v2841_v53, %v2840_v36  ;;  %v2849_v37 = vand.u32 2147483648, %v1300_v61  ;;  %v3770_v11 = vtrunc.f32 %v2599_v59  ;;  %vm5247_vm7 = vcmp.lt.f32.partialorder %v2844_v63, 8388608.0 }
 0x248   : > { %v3769_v9 = vcvt.f32.s32 %v3768_v1  ;;  %v2871_v10 = vcvt.s32.f32 %v2870_v2  ;;  %v2848_v13 = vand.u32 2147483647, %v2847_v45  ;;  %vm5253_vm8 = vcmp.lt.f32.partialorder %v2868_v3, 8388608.0  ;;  %v4167_v3 = vpop.add.s32.mrf.mxu0.mxu1 }
 0x249   : > { %v2843_v12 = vsel %vm5239_vm6, %v2842_v22, %v1299_v44  ;;  %v2873_v8 = vand.u32 2147483648, %v1303_v21  ;;  %v2876_v19 = vand.u32 2147483647, %v1304_v5  ;;  %v2878_v20 = vcvt.f32.s32 %v1304_v5 }
 0x24a   : > { %v1555_v18 = vadd.f32 -5.0, %v2843_v12  ;;  %v2872_v16 = vand.u32 2147483647, %v2871_v10  ;;  %v2850_v26 = vor.u32 %v2849_v37, %v2848_v13  ;;  %v2881_v27 = vand.u32 2147483648, %v1304_v5 }
 0x24b   : > { %v1029_v28 = vcvt.s32.f32 %v4162_v51  ;;  %v1030_v25 = vcvt.s32.f32 %v4163_v62  ;;  %v2879_v31 = vcvt.s32.f32 %v2878_v20  ;;  %v1033_v56 = vcvt.s32.f32 %v4164_v7 }
 0x24c   : > { %v2602_v29 = vclampa-f32 %v1555_v18, -128, 127  ;;  %v2874_v32 = vor.u32 %v2873_v8, %v2872_v16  ;;  %v2851_v33 = vsel %vm5247_vm7, %v2850_v26, %v1300_v61  ;;  %v1034_v34 = vcvt.s32.f32 %v4165_v24 }
 0x24d   : > { %v1157_v38 = vmul.f32 0.01, %v1029_v28  ;;  %v1158_v4 = vmul.f32 0.01, %v1030_v25  ;;  %v1556_v42 = vadd.f32 -5.0, %v2851_v33  ;;  %v3771_v39 = vcvt.f32.s32 %v3770_v11 }
 0x24e   : > { %v3776_v40 = vtrunc.f32 %v2602_v29  ;;  %v2875_v44 = vsel %vm5253_vm8, %v2874_v32, %v1303_v21  ;;  %v2880_v14 = vand.u32 2147483647, %v2879_v31  ;;  %vm2877_vm9 = vcmp.lt.f32.partialorder %v2876_v19, 8388608.0 }
 0x24f   : > { %v1559_v60 = vadd.f32 -5.0, %v2875_v44  ;;  %v1307_v46 = vadd.f32 %v5180_v43, %v1157_v38  ;;  %v1308_v49 = vadd.f32 %v5194_v35, %v1158_v4  ;;  %v2603_v50 = vclampa-f32 %v1556_v42, -128, 127 }
 0x250   : > { %v3777_v47 = vcvt.f32.s32 %v3776_v40  ;;  %v2882_v51 = vor.u32 %v2881_v27, %v2880_v14  ;;  %v1161_v55 = vmul.f32 0.01, %v1033_v56  ;;  %v1162_v30 = vmul.f32 0.01, %v1034_v34 }
 0x251   : > { %v2606_v48 = vclampa-f32 %v1559_v60, -128, 127  ;;  %v2900_v54 = vand.u32 2147483647, %v1307_v46  ;;  %v2902_v41 = vcvt.f32.s32 %v1307_v46  ;;  %v3778_v61 = vtrunc.f32 %v2603_v50 }
 0x252   : > { %v2316_v58 = vpack.c.b16 %v3777_v47, %v3769_v9  ;;  %v2883_v17 = vsel %vm2877_vm9, %v2882_v51, %v1304_v5  ;;  %v2905_v62 = vand.u32 2147483648, %v1307_v46  ;;  %v2908_v59 = vand.u32 2147483647, %v1308_v49 }
 0x253   : > { %v1560_v53 = vadd.f32 -5.0, %v2883_v17  ;;  %v2903_v21 = vcvt.s32.f32 %v2902_v41  ;;  %v3779_v63 = vcvt.f32.s32 %v3778_v61  ;;  %v5264_v0 = vtrunc.f32 %v2606_v48 }
 0x254   : > { %v2317_v36 = vpack.c.b8 %v2316_v58, %v5236_v23  ;;  %v2910_v1 = vcvt.f32.s32 %v1308_v49  ;;  %vm5266_vm10 = vcmp.lt.f32.partialorder %v2900_v54, 8388608.0  ;;  %v2913_v37 = vand.u32 2147483648, %v1308_v49 }
 0x255   : > { %v2607_v2 = vclampa-f32 %v1560_v53, -128, 127  ;;  %v2904_v45 = vand.u32 2147483647, %v2903_v21  ;;  %v2319_v5 = vpack.c.b16 %v3779_v63, %v3771_v39  ;;  %v1311_v9 = vadd.f32 %v5180_v43, %v1161_v55 }
 0x256   : > { %2407 = vst [vmem:[%s4814_s4 + $0x10] sm:$0xff] %v2317_v36  ;;  %v2911_v7 = vcvt.s32.f32 %v2910_v1  ;;  %v1312_v23 = vadd.f32 %v5194_v35, %v1162_v30  ;;  %v1037_v10 = vcvt.s32.f32 %v4166_v57  ;;  %v1038_v12 = vcvt.s32.f32 %v4167_v3 }
 0x257   : > { %v5273_v11 = vtrunc.f32 %v2607_v2  ;;  %v2906_v52 = vor.u32 %v2905_v62, %v2904_v45  ;;  %v2320_v13 = vpack.c.b8 %v2319_v5, %v5245_v6  ;;  %v2932_v8 = vand.u32 2147483647, %v1311_v9  ;;  %v4168_v6 = vpop.add.s32.mrf.mxu0.mxu1 }
 0x258   : > { %v2912_v15 = vand.u32 2147483647, %v2911_v7  ;;  %v2934_v18 = vcvt.f32.s32 %v1311_v9  ;;  %v3785_v16 = vcvt.f32.s32 %v5264_v0  ;;  %vm5279_vm11 = vcmp.lt.f32.partialorder %v2908_v59, 8388608.0  ;;  %v4169_v39 = vpop.add.s32.mrf.mxu0.mxu1 }
 0x259   : > { %v2907_v19 = vsel %vm5266_vm10, %v2906_v52, %v1307_v46  ;;  %v2940_v24 = vand.u32 2147483647, %v1312_v23  ;;  %2408 = vst [vmem:[%s4814_s4 + $0x18] sm:$0xff] %v2320_v13  ;;  %v3787_v26 = vcvt.f32.s32 %v5273_v11  ;;  %vm5285_vm12 = vcmp.lt.f32.partialorder %v2932_v8, 8388608.0  ;;  %v4170_v21 = vpop.add.s32.mrf.mxu0.mxu1 }
 0x25a   : > { %v1563_v27 = vadd.f32 -5.0, %v2907_v19  ;;  %v2914_v28 = vor.u32 %v2913_v37, %v2912_v15  ;;  %v2935_v25 = vcvt.s32.f32 %v2934_v18  ;;  %v2937_v32 = vand.u32 2147483648, %v1311_v9  ;;  %v4171_v7 = vpop.add.s32.mrf.mxu0.mxu1 }
 0x25b   : > { %v2942_v31 = vcvt.f32.s32 %v1312_v23  ;;  %v1165_v56 = vmul.f32 0.01, %v1037_v10  ;;  %v1166_v34 = vmul.f32 0.01, %v1038_v12  ;;  %vm5291_vm13 = vcmp.lt.f32.partialorder %v2940_v24, 8388608.0 }
 0x25c   : > { %v2610_v33 = vclampa-f32 %v1563_v27, -128, 127  ;;  %v2915_v38 = vsel %vm5279_vm11, %v2914_v28, %v1308_v49  ;;  %v2936_v4 = vand.u32 2147483647, %v2935_v25  ;;  %v2945_v47 = vand.u32 2147483648, %v1312_v23 }
 0x25d   : > { %v1564_v40 = vadd.f32 -5.0, %v2915_v38  ;;  %v2943_v44 = vcvt.s32.f32 %v2942_v31  ;;  %v1315_v14 = vadd.f32 %v5180_v43, %v1165_v56  ;;  %v1316_v50 = vadd.f32 %v5194_v35, %v1166_v34  ;;  %v4172_v34 = vpop.add.s32.mrf.mxu0.mxu1 }
 0x25e   : > { %v3792_v60 = vtrunc.f32 %v2610_v33  ;;  %v2938_v46 = vor.u32 %v2937_v32, %v2936_v4  ;;  %v1041_v57 = vcvt.s32.f32 %v4168_v6  ;;  %v1042_v58 = vcvt.s32.f32 %v4169_v39 }
 0x25f   : > { %v2611_v51 = vclampa-f32 %v1564_v40, -128, 127  ;;  %v2944_v48 = vand.u32 2147483647, %v2943_v44  ;;  %v2964_v54 = vand.u32 2147483647, %v1315_v14  ;;  %v2966_v49 = vcvt.f32.s32 %v1315_v14 }
 0x260   : > { %v3793_v41 = vcvt.f32.s32 %v3792_v60  ;;  %v2939_v55 = vsel %vm5285_vm12, %v2938_v46, %v1311_v9  ;;  %v2969_v53 = vand.u32 2147483648, %v1315_v14  ;;  %v2972_v36 = vand.u32 2147483647, %v1316_v50 }
 0x261   : > { %v3794_v61 = vtrunc.f32 %v2611_v51  ;;  %v1567_v17 = vadd.f32 -5.0, %v2939_v55  ;;  %v2946_v30 = vor.u32 %v2945_v47, %v2944_v48  ;;  %vm5299_vm14 = vcmp.lt.f32.partialorder %v2964_v54, 8388608.0 }
 0x262   : > { %v2967_v59 = vcvt.s32.f32 %v2966_v49  ;;  %v2974_v63 = vcvt.f32.s32 %v1316_v50  ;;  %v5303_v0 = vpack.c.b16 %v3793_v41, %v3785_v16  ;;  %v1169_v5 = vmul.f32 0.01, %v1041_v57 }
 0x263   : > { %v3795_v1 = vcvt.f32.s32 %v3794_v61  ;;  %v2614_v3 = vclampa-f32 %v1567_v17, -128, 127  ;;  %v2947_v2 = vsel %vm5291_vm13, %v2946_v30, %v1312_v23  ;;  %v2977_v52 = vand.u32 2147483648, %v1316_v50 }
 0x264   : > { %v1568_v22 = vadd.f32 -5.0, %v2947_v2  ;;  %v2968_v45 = vand.u32 2147483647, %v2967_v59  ;;  %v2975_v37 = vcvt.s32.f32 %v2974_v63  ;;  %v1170_v10 = vmul.f32 0.01, %v1042_v58 }
 0x265   : > { %v3800_v9 = vtrunc.f32 %v2614_v3  ;;  %v1045_v12 = vcvt.s32.f32 %v4170_v21  ;;  %v1319_v18 = vadd.f32 %v5180_v43, %v1169_v5  ;;  %vm5308_vm15 = vcmp.lt.f32.partialorder %v2972_v36, 8388608.0  ;;  %v4173_v21 = vpop.add.s32.mrf.mxu0.mxu1 }
 0x266   : > { %v2615_v13 = vclampa-f32 %v1568_v22, -128, 127  ;;  %v2970_v15 = vor.u32 %v2969_v53, %v2968_v45  ;;  %v2976_v8 = vand.u32 2147483647, %v2975_v37  ;;  %v1320_v23 = vadd.f32 %v5194_v35, %v1170_v10 }
 0x267   : > { %v1173_v19 = vmul.f32 0.01, %v1045_v12  ;;  %v1046_v20 = vcvt.s32.f32 %v4171_v7  ;;  %v2996_v25 = vand.u32 2147483647, %v1319_v18  ;;  %v2330_v6 = vpack.c.b16 %v3795_v1, %v3787_v26 }
 0x268   : > { %v3802_v24 = vtrunc.f32 %v2615_v13  ;;  %v2971_v27 = vsel %vm5299_vm14, %v2970_v15, %v1315_v14  ;;  %v2978_v28 = vor.u32 %v2977_v52, %v2976_v8  ;;  %v3801_v29 = vcvt.f32.s32 %v3800_v9  ;;  %v4174_v9 = vpop.add.s32.mrf.mxu0.mxu1 }
 0x269   : > { %v1571_v32 = vadd.f32 -5.0, %v2971_v27  ;;  %v2998_v31 = vcvt.f32.s32 %v1319_v18  ;;  %v3001_v33 = vand.u32 2147483648, %v1319_v18  ;;  %v3004_v38 = vand.u32 2147483647, %v1320_v23 }
 0x26a   : > { %v2979_v56 = vsel %vm5308_vm15, %v2978_v28, %v1316_v50  ;;  %v3006_v4 = vcvt.f32.s32 %v1320_v23  ;;  %v3803_v40 = vcvt.f32.s32 %v3802_v24  ;;  %vm5319_vm0 = vcmp.lt.f32.partialorder %v2996_v25, 8388608.0  ;;  %v4175_v28 = vpop.add.s32.mrf.mxu0.mxu1 }
 0x26b   : > { %v2618_v42 = vclampa-f32 %v1571_v32, -128, 127  ;;  %v1572_v44 = vadd.f32 -5.0, %v2979_v56  ;;  %v2999_v39 = vcvt.s32.f32 %v2998_v31  ;;  %v1323_v26 = vadd.f32 %v5180_v43, %v1173_v19 }
 0x26c   : > { %v3007_v11 = vcvt.s32.f32 %v3006_v4  ;;  %v1174_v60 = vmul.f32 0.01, %v1046_v20  ;;  %v1049_v50 = vcvt.s32.f32 %v4172_v34  ;;  %v3009_v54 = vand.u32 2147483648, %v1320_v23 }
 0x26d   : > { %v3808_v46 = vtrunc.f32 %v2618_v42  ;;  %v2619_v47 = vclampa-f32 %v1572_v44, -128, 127  ;;  %v3000_v51 = vand.u32 2147483647, %v2999_v39  ;;  %v3028_v49 = vand.u32 2147483647, %v1323_v26  ;;  %v4176_v42 = vpop.add.s32.mrf.mxu0.mxu1 }
 0x26e   : > { %v3008_v48 = vand.u32 2147483647, %v3007_v11  ;;  %v3030_v41 = vcvt.f32.s32 %v1323_v26  ;;  %v1324_v61 = vadd.f32 %v5194_v35, %v1174_v60  ;;  %vm3005_vm1 = vcmp.lt.f32.partialorder %v3004_v38, 8388608.0 }
 0x26f   : > { %v3809_v55 = vcvt.f32.s32 %v3808_v46  ;;  %v3810_v57 = vtrunc.f32 %v2619_v47  ;;  %v3002_v58 = vor.u32 %v3001_v33, %v3000_v51  ;;  %v3033_v53 = vand.u32 2147483648, %v1323_v26 }
 0x270   : > { %v3010_v17 = vor.u32 %v3009_v54, %v3008_v48  ;;  %v3031_v30 = vcvt.s32.f32 %v3030_v41  ;;  %v1177_v63 = vmul.f32 0.01, %v1049_v50  ;;  %v3038_v22 = vcvt.f32.s32 %v1324_v61 }
 0x271   : > { %v2328_v62 = vpack.c.b16 %v3809_v55, %v3801_v29  ;;  %v3811_v59 = vcvt.f32.s32 %v3810_v57  ;;  %v3003_v36 = vsel %vm5319_vm0, %v3002_v58, %v1319_v18  ;;  %vm5328_vm2 = vcmp.lt.f32.partialorder %v3028_v49, 8388608.0  ;;  %v4177_v57 = vpop.add.s32.mrf.mxu0.mxu1 }
 0x272   : > { %v1575_v1 = vadd.f32 -5.0, %v3003_v36  ;;  %v3011_v3 = vsel %vm3005_vm1, %v3010_v17, %v1320_v23  ;;  %v3032_v2 = vand.u32 2147483647, %v3031_v30  ;;  %v3036_v12 = vand.u32 2147483647, %v1324_v61 }
 0x273   : > { %v2329_v45 = vpack.c.b8 %v2328_v62, %v5303_v0  ;;  %v2331_v37 = vpack.c.b16 %v3811_v59, %v3803_v40  ;;  %v1576_v5 = vadd.f32 -5.0, %v3011_v3  ;;  %v3039_v13 = vcvt.s32.f32 %v3038_v22 }
 0x274   : > { %v2622_v52 = vclampa-f32 %v1575_v1, -128, 127  ;;  %v3034_v10 = vor.u32 %v3033_v53, %v3032_v2  ;;  %v1327_v18 = vadd.f32 %v5180_v43, %v1177_v63  ;;  %v1050_v16 = vcvt.s32.f32 %v4173_v21  ;;  %v4178_v2 = vpop.add.s32.mrf.mxu0.mxu1 }
 0x275   : > { %2411 = vst [vmem:[%s4814_s4 + $0x30] sm:$0xff] %v2329_v45  ;;  %v2332_v15 = vpack.c.b8 %v2331_v37, %v2330_v6  ;;  %v2623_v8 = vclampa-f32 %v1576_v5, -128, 127  ;;  %v3040_v23 = vand.u32 2147483647, %v3039_v13  ;;  %v3041_v19 = vand.u32 2147483648, %v1324_v61 }
 0x276   : > { %v3035_v0 = vsel %vm5328_vm2, %v3034_v10, %v1323_v26  ;;  %v1053_v20 = vcvt.s32.f32 %v4174_v9  ;;  %v3062_v27 = vcvt.f32.s32 %v1327_v18  ;;  %v3816_v25 = vtrunc.f32 %v2622_v52 }
 0x277   : > { %2412 = vst [vmem:[%s4814_s4 + $0x38] sm:$0xff] %v2332_v15  ;;  %v1579_v24 = vadd.f32 -5.0, %v3035_v0  ;;  %vm3037_vm3 = vcmp.lt.f32.partialorder %v3036_v12, 8388608.0  ;;  %v3042_v29 = vor.u32 %v3041_v19, %v3040_v23  ;;  %v1178_v32 = vmul.f32 0.01, %v1050_v16 }
 0x278   : > { %v5337_v31 = vtrunc.f32 %v2623_v8  ;;  %v3060_v56 = vand.u32 2147483647, %v1327_v18  ;;  %v3063_v33 = vcvt.s32.f32 %v3062_v27  ;;  %v1181_v34 = vmul.f32 0.01, %v1053_v20 }
 0x279   : > { %v2626_v6 = vclampa-f32 %v1579_v24, -128, 127  ;;  %v3043_v38 = vsel %vm3037_vm3, %v3042_v29, %v1324_v61  ;;  %v1328_v4 = vadd.f32 %v5194_v35, %v1178_v32  ;;  %v1054_v40 = vcvt.s32.f32 %v4175_v28  ;;  %v4179_v32 = vpop.add.s32.mrf.mxu0.mxu1 }
 0x27a   : > { %v1580_v39 = vadd.f32 -5.0, %v3043_v38  ;;  %v3064_v14 = vand.u32 2147483647, %v3063_v33  ;;  %v3065_v11 = vand.u32 2147483648, %v1327_v18  ;;  %v3817_v26 = vcvt.f32.s32 %v3816_v25 }
 0x27b   : > { %v3824_v44 = vtrunc.f32 %v2626_v6  ;;  %v3068_v60 = vand.u32 2147483647, %v1328_v4  ;;  %v3070_v46 = vcvt.f32.s32 %v1328_v4  ;;  %v1331_v47 = vadd.f32 %v5180_v43, %v1181_v34 }
 0x27c   : > { %v2627_v51 = vclampa-f32 %v1580_v39, -128, 127  ;;  %v3066_v50 = vor.u32 %v3065_v11, %v3064_v14  ;;  %v1182_v48 = vmul.f32 0.01, %v1054_v40  ;;  %v1057_v54 = vcvt.s32.f32 %v4176_v42 }
 0x27d   : > { %v3819_v49 = vcvt.f32.s32 %v5337_v31  ;;  %vm3061_vm4 = vcmp.lt.f32.partialorder %v3060_v56, 8388608.0  ;;  %v3071_v41 = vcvt.s32.f32 %v3070_v46  ;;  %v3094_v55 = vcvt.f32.s32 %v1331_v47 }
 0x27e   : > { %v3825_v58 = vcvt.f32.s32 %v3824_v44  ;;  %v3067_v61 = vsel %vm3061_vm4, %v3066_v50, %v1327_v18  ;;  %v3073_v17 = vand.u32 2147483648, %v1328_v4  ;;  %v3092_v30 = vand.u32 2147483647, %v1331_v47 }
 0x27f   : > { %v1583_v53 = vadd.f32 -5.0, %v3067_v61  ;;  %vm5342_vm5 = vcmp.lt.f32.partialorder %v3068_v60, 8388608.0  ;;  %v3072_v62 = vand.u32 2147483647, %v3071_v41  ;;  %v3095_v59 = vcvt.s32.f32 %v3094_v55 }
 0x280   : > { %v5346_v36 = vtrunc.f32 %v2627_v51  ;;  %v1332_v63 = vadd.f32 %v5194_v35, %v1182_v48  ;;  %v1185_v1 = vmul.f32 0.01, %v1057_v54  ;;  %v1058_v3 = vcvt.s32.f32 %v4177_v57  ;;  %v4180_v51 = vpop.add.s32.mrf.mxu0.mxu1 }
 0x281   : > { %v2630_v22 = vclampa-f32 %v1583_v53, -128, 127  ;;  %v3074_v45 = vor.u32 %v3073_v17, %v3072_v62  ;;  %v3096_v37 = vand.u32 2147483647, %v3095_v59  ;;  %v3097_v5 = vand.u32 2147483648, %v1331_v47  ;;  %v4181_v62 = vpop.add.s32.mrf.mxu0.mxu1 }
 0x282   : > { %v5349_v7 = vpack.c.b16 %v3825_v58, %v3817_v26  ;;  %vm3093_vm6 = vcmp.lt.f32.partialorder %v3092_v30, 8388608.0  ;;  %v3100_v9 = vand.u32 2147483647, %v1332_v63  ;;  %v3102_v52 = vcvt.f32.s32 %v1332_v63 }
 0x283   : > { %v3075_v10 = vsel %vm5342_vm5, %v3074_v45, %v1328_v4  ;;  %v3098_v12 = vor.u32 %v3097_v5, %v3096_v37  ;;  %v1335_v13 = vadd.f32 %v5180_v43, %v1185_v1  ;;  %v1061_v15 = vcvt.s32.f32 %v4178_v2 }
 0x284   : > { %v3832_v8 = vtrunc.f32 %v2630_v22  ;;  %v1584_v18 = vadd.f32 -5.0, %v3075_v10  ;;  %v3103_v16 = vcvt.s32.f32 %v3102_v52  ;;  %v1186_v0 = vmul.f32 0.01, %v1058_v3  ;;  %v4182_v10 = vpop.add.s32.mrf.mxu0.mxu1 }
 0x285   : > { %v3827_v23 = vcvt.f32.s32 %v5346_v36  ;;  %v3099_v19 = vsel %vm3093_vm6, %v3098_v12, %v1331_v47  ;;  %v3105_v20 = vand.u32 2147483648, %v1332_v63  ;;  %v3126_v24 = vcvt.f32.s32 %v1335_v13 }
 0x286   : > { %v1587_v27 = vadd.f32 -5.0, %v3099_v19  ;;  %vm5355_vm7 = vcmp.lt.f32.partialorder %v3100_v9, 8388608.0  ;;  %v3104_v25 = vand.u32 2147483647, %v3103_v16  ;;  %v3124_v29 = vand.u32 2147483647, %v1335_v13 }
 0x287   : > { %v2631_v6 = vclampa-f32 %v1584_v18, -128, 127  ;;  %v3127_v56 = vcvt.s32.f32 %v3126_v24  ;;  %v1336_v33 = vadd.f32 %v5194_v35, %v1186_v0  ;;  %v1189_v38 = vmul.f32 0.01, %v1061_v15 }
 0x288   : > { %v3833_v4 = vcvt.f32.s32 %v3832_v8  ;;  %v2634_v34 = vclampa-f32 %v1587_v27, -128, 127  ;;  %v3106_v40 = vor.u32 %v3105_v20, %v3104_v25  ;;  %v3129_v42 = vand.u32 2147483648, %v1335_v13  ;;  %v4183_v27 = vpop.add.s32.mrf.mxu0.mxu1 }
 0x289   : > { %v3128_v44 = vand.u32 2147483647, %v3127_v56  ;;  %v3132_v39 = vand.u32 2147483647, %v1336_v33  ;;  %v3134_v14 = vcvt.f32.s32 %v1336_v33  ;;  %v1062_v11 = vcvt.s32.f32 %v4179_v32 }
 0x28a   : > { %v3840_v26 = vtrunc.f32 %v2634_v34  ;;  %v3107_v60 = vsel %vm5355_vm7, %v3106_v40, %v1332_v63  ;;  %vm5362_vm8 = vcmp.lt.f32.partialorder %v3124_v29, 8388608.0  ;;  %v1339_v47 = vadd.f32 %v5180_v43, %v1189_v38  ;;  %v4184_v38 = vpop.add.s32.mrf.mxu0.mxu1 }
 0x28b   : > { %v3834_v50 = vtrunc.f32 %v2631_v6  ;;  %v1588_v48 = vadd.f32 -5.0, %v3107_v60  ;;  %v3130_v54 = vor.u32 %v3129_v42, %v3128_v44  ;;  %v3135_v41 = vcvt.s32.f32 %v3134_v14 }
 0x28c   : > { %v3841_v55 = vcvt.f32.s32 %v3840_v26  ;;  %vm5367_vm9 = vcmp.lt.f32.partialorder %v3132_v39, 8388608.0  ;;  %v3137_v58 = vand.u32 2147483648, %v1336_v33  ;;  %v3158_v61 = vcvt.f32.s32 %v1339_v47 }
 0x28d   : > { %v2635_v17 = vclampa-f32 %v1588_v48, -128, 127  ;;  %v3131_v30 = vsel %vm5362_vm8, %v3130_v54, %v1335_v13  ;;  %v3136_v53 = vand.u32 2147483647, %v3135_v41  ;;  %v1190_v21 = vmul.f32 0.01, %v1062_v11 }
 0x28e   : > { %v2340_v59 = vpack.c.b16 %v3841_v55, %v3833_v4  ;;  %v1591_v36 = vadd.f32 -5.0, %v3131_v30  ;;  %v3156_v63 = vand.u32 2147483647, %v1339_v47  ;;  %v3159_v1 = vcvt.s32.f32 %v3158_v61 }
 0x28f   : > { %v3842_v3 = vtrunc.f32 %v2635_v17  ;;  %v3138_v2 = vor.u32 %v3137_v58, %v3136_v53  ;;  %v1340_v22 = vadd.f32 %v5194_v35, %v1190_v21  ;;  %v1065_v45 = vcvt.s32.f32 %v4180_v51 }
 0x290   : > { %v2341_v37 = vpack.c.b8 %v2340_v59, %v5349_v7  ;;  %v3160_v5 = vand.u32 2147483647, %v3159_v1  ;;  %v3161_v9 = vand.u32 2147483648, %v1339_v47  ;;  %v1066_v52 = vcvt.s32.f32 %v4181_v62 }
 0x291   : > { %v3835_v12 = vcvt.f32.s32 %v3834_v50  ;;  %v3843_v13 = vcvt.f32.s32 %v3842_v3  ;;  %v3139_v15 = vsel %vm5367_vm9, %v3138_v2, %v1336_v33  ;;  %v3166_v8 = vcvt.f32.s32 %v1340_v22 }
 0x292   : > { %v2342_v18 = vpack.c.b16 %v3827_v23, %v3819_v49  ;;  %2415 = vst [vmem:[%s4814_s4 + $0x50] sm:$0xff] %v2341_v37  ;;  %v2638_v16 = vclampa-f32 %v1591_v36, -128, 127  ;;  %vm3157_vm10 = vcmp.lt.f32.partialorder %v3156_v63, 8388608.0  ;;  %v3162_v0 = vor.u32 %v3161_v9, %v3160_v5 }
 0x293   : > { %v2343_v19 = vpack.c.b16 %v3843_v13, %v3835_v12  ;;  %v3164_v7 = vand.u32 2147483647, %v1340_v22  ;;  %v3167_v20 = vcvt.s32.f32 %v3166_v8  ;;  %v1193_v24 = vmul.f32 0.01, %v1065_v45 }
 0x294   : > { %v1592_v28 = vadd.f32 -5.0, %v3139_v15  ;;  %v3163_v25 = vsel %vm3157_vm10, %v3162_v0, %v1339_v47  ;;  %v3169_v29 = vand.u32 2147483648, %v1340_v22  ;;  %v1194_v32 = vmul.f32 0.01, %v1066_v52  ;;  %v4185_v47 = vpop.add.s32.mrf.mxu0.mxu1 }
 0x295   : > { %v2344_v6 = vpack.c.b8 %v2343_v19, %v2342_v18  ;;  %v1595_v56 = vadd.f32 -5.0, %v3163_v25  ;;  %v3168_v33 = vand.u32 2147483647, %v3167_v20  ;;  %v1343_v31 = vadd.f32 %v5180_v43, %v1193_v24  ;;  %v4186_v45 = vpop.add.s32.mrf.mxu0.mxu1 }
 0x296   : > { %v5381_v49 = vtrunc.f32 %v2638_v16  ;;  %v1344_v23 = vadd.f32 %v5194_v35, %v1194_v32  ;;  %v1069_v40 = vcvt.s32.f32 %v4182_v10  ;;  %v1070_v42 = vcvt.s32.f32 %v4183_v27  ;;  %v4187_v19 = vpop.add.s32.mrf.mxu0.mxu1 }
 0x297   : > { %2416 = vst [vmem:[%s4814_s4 + $0x58] sm:$0xff] %v2344_v6  ;;  %v3170_v4 = vor.u32 %v3169_v29, %v3168_v33  ;;  %v3190_v34 = vcvt.f32.s32 %v1343_v31  ;;  %v2639_v44 = vclampa-f32 %v1592_v28, -128, 127  ;;  %v2642_v39 = vclampa-f32 %v1595_v56, -128, 127 }
 0x298   : > { %vm3165_vm11 = vcmp.lt.f32.partialorder %v3164_v7, 8388608.0  ;;  %v3198_v14 = vcvt.f32.s32 %v1344_v23  ;;  %v3188_v26 = vand.u32 2147483647, %v1343_v31  ;;  %v3193_v46 = vand.u32 2147483648, %v1343_v31 }
 0x299   : > { %v3171_v11 = vsel %vm3165_vm11, %v3170_v4, %v1340_v22  ;;  %v3191_v60 = vcvt.s32.f32 %v3190_v34  ;;  %v3196_v50 = vand.u32 2147483647, %v1344_v23  ;;  %v3201_v54 = vand.u32 2147483648, %v1344_v23 }
 0x29a   : > { %v1596_v51 = vadd.f32 -5.0, %v3171_v11  ;;  %v3199_v48 = vcvt.s32.f32 %v3198_v14  ;;  %v1197_v55 = vmul.f32 0.01, %v1069_v40  ;;  %v1198_v57 = vmul.f32 0.01, %v1070_v42 }
 0x29b   : > { %v3192_v41 = vand.u32 2147483647, %v3191_v60  ;;  %v1073_v17 = vcvt.s32.f32 %v4184_v38  ;;  %v1074_v30 = vcvt.s32.f32 %v4185_v47  ;;  %v3849_v53 = vcvt.f32.s32 %v5381_v49 }
 0x29c   : > { %v2643_v58 = vclampa-f32 %v1596_v51, -128, 127  ;;  %v3200_v61 = vand.u32 2147483647, %v3199_v48  ;;  %v1347_v62 = vadd.f32 %v5180_v43, %v1197_v55  ;;  %v1348_v59 = vadd.f32 %v5194_v35, %v1198_v57  ;;  %v4188_v51 = vpop.add.s32.mrf.mxu0.mxu1 }
 0x29d   : > { %v3194_v21 = vor.u32 %v3193_v46, %v3192_v41  ;;  %v3850_v36 = vtrunc.f32 %v2639_v44  ;;  %v3856_v63 = vtrunc.f32 %v2642_v39  ;;  %vm3189_vm12 = vcmp.lt.f32.partialorder %v3188_v26, 8388608.0 }
 0x29e   : > { %v3202_v1 = vor.u32 %v3201_v54, %v3200_v61  ;;  %vm3197_vm13 = vcmp.lt.f32.partialorder %v3196_v50, 8388608.0  ;;  %v3222_v2 = vcvt.f32.s32 %v1347_v62  ;;  %v1201_v22 = vmul.f32 0.01, %v1073_v17 }
 0x29f   : > { %v3195_v3 = vsel %vm3189_vm12, %v3194_v21, %v1343_v31  ;;  %v3858_v37 = vtrunc.f32 %v2643_v58  ;;  %v1202_v52 = vmul.f32 0.01, %v1074_v30  ;;  %v3220_v12 = vand.u32 2147483647, %v1347_v62 }
 0x2a0   : > { %v1599_v5 = vadd.f32 -5.0, %v3195_v3  ;;  %v3203_v9 = vsel %vm3197_vm13, %v3202_v1, %v1344_v23  ;;  %v3223_v13 = vcvt.s32.f32 %v3222_v2  ;;  %v3230_v15 = vcvt.f32.s32 %v1348_v59 }
 0x2a1   : > { %v1600_v10 = vadd.f32 -5.0, %v3203_v9  ;;  %v3851_v8 = vcvt.f32.s32 %v3850_v36  ;;  %v3225_v16 = vand.u32 2147483648, %v1347_v62  ;;  %v3228_v0 = vand.u32 2147483647, %v1348_v59 }
 0x2a2   : > { %v2646_v18 = vclampa-f32 %v1599_v5, -128, 127  ;;  %v3224_v20 = vand.u32 2147483647, %v3223_v13  ;;  %v3231_v24 = vcvt.s32.f32 %v3230_v15  ;;  %v5389_v27 = vadd.f32 %v5180_v43, %v1201_v22 }
 0x2a3   : > { %v2647_v7 = vclampa-f32 %v1600_v10, -128, 127  ;;  %v3857_v28 = vcvt.f32.s32 %v3856_v63  ;;  %v3859_v25 = vcvt.f32.s32 %v3858_v37  ;;  %v3233_v29 = vand.u32 2147483648, %v1348_v59 }
 0x2a4   : > { %v5392_v32 = vadd.f32 %v5194_v35, %v1202_v52  ;;  %v3226_v6 = vor.u32 %v3225_v16, %v3224_v20  ;;  %v3232_v56 = vand.u32 2147483647, %v3231_v24  ;;  %v1077_v33 = vcvt.s32.f32 %v4186_v45 }
 0x2a5   : > { %v1078_v31 = vcvt.s32.f32 %v4187_v19  ;;  %v3864_v49 = vtrunc.f32 %v2646_v18  ;;  %vm3221_vm14 = vcmp.lt.f32.partialorder %v3220_v12, 8388608.0  ;;  %vm5394_vm15 = vcmp.lt.f32.partialorder %v3228_v0, 8388608.0 }
 0x2a6   : > { %v3254_v38 = vcvt.f32.s32 %v5389_v27  ;;  %v3866_v4 = vtrunc.f32 %v2647_v7  ;;  %v3227_v34 = vsel %vm3221_vm14, %v3226_v6, %v1347_v62  ;;  %v3234_v40 = vor.u32 %v3233_v29, %v3232_v56 }
 0x2a7   : > { %v3252_v42 = vand.u32 2147483647, %v5389_v27  ;;  %v1603_v44 = vadd.f32 -5.0, %v3227_v34  ;;  %v3257_v14 = vand.u32 2147483648, %v5389_v27  ;;  %v3262_v11 = vcvt.f32.s32 %v5392_v32 }
 0x2a8   : > { %v3255_v39 = vcvt.s32.f32 %v3254_v38  ;;  %v3235_v26 = vsel %vm5394_vm15, %v3234_v40, %v1348_v59  ;;  %v3260_v60 = vand.u32 2147483647, %v5392_v32  ;;  %v1205_v46 = vmul.f32 0.01, %v1077_v33  ;;  %v4189_v59 = vpop.add.s32.mrf.mxu0.mxu1 }
 0x2a9   : > { %v1206_v47 = vmul.f32 0.01, %v1078_v31  ;;  %v2650_v50 = vclampa-f32 %v1603_v44, -128, 127  ;;  %v1604_v48 = vadd.f32 -5.0, %v3235_v26  ;;  %v3263_v41 = vcvt.s32.f32 %v3262_v11  ;;  %v4190_v10 = vpop.add.s32.mrf.mxu0.mxu1 }
 0x2aa   : > { %v3256_v54 = vand.u32 2147483647, %v3255_v39  ;;  %v2351_v55 = vpack.c.b16 %v3857_v28, %v3849_v53  ;;  %v2354_v57 = vpack.c.b16 %v3859_v25, %v3851_v8  ;;  %v3865_v58 = vcvt.f32.s32 %v3864_v49  ;;  %v4191_v25 = vpop.add.s32.mrf.mxu0.mxu1 }
 0x2ab   : > { %v1355_v61 = vadd.f32 %v5180_v43, %v1205_v46  ;;  %v3872_v17 = vtrunc.f32 %v2650_v50  ;;  %v2651_v30 = vclampa-f32 %v1604_v48, -128, 127  ;;  %v1356_v62 = vadd.f32 %v5194_v35, %v1206_v47  ;;  %v4192_v34 = vpop.add.s32.mrf.mxu0.mxu1 }
 0x2ac   : > { %v3258_v21 = vor.u32 %v3257_v14, %v3256_v54  ;;  %v3867_v36 = vcvt.f32.s32 %v3866_v4  ;;  %vm5407_vm0 = vcmp.lt.f32.partialorder %v3252_v42, 8388608.0  ;;  %v3264_v1 = vand.u32 2147483647, %v3263_v41 }
 0x2ad   : > { %v3286_v3 = vcvt.f32.s32 %v1355_v61  ;;  %v3873_v2 = vcvt.f32.s32 %v3872_v17  ;;  %v3874_v22 = vtrunc.f32 %v2651_v30  ;;  %vm5411_vm1 = vcmp.lt.f32.partialorder %v3260_v60, 8388608.0 }
 0x2ae   : > { %v1081_v45 = vcvt.s32.f32 %v4188_v51  ;;  %v3265_v37 = vand.u32 2147483648, %v5392_v32  ;;  %v3284_v5 = vand.u32 2147483647, %v1355_v61  ;;  %v1082_v52 = vcvt.s32.f32 %v4189_v59  ;;  %v4193_v51 = vpop.add.s32.mrf.mxu0.mxu1 }
 0x2af   : > { %v3287_v9 = vcvt.s32.f32 %v3286_v3  ;;  %v2352_v12 = vpack.c.b16 %v3873_v2, %v3865_v58  ;;  %v3875_v13 = vcvt.f32.s32 %v3874_v22  ;;  %v3259_v15 = vsel %vm5407_vm0, %v3258_v21, %v5389_v27 }
 0x2b0   : > { %v3294_v8 = vcvt.f32.s32 %v1356_v62  ;;  %v3266_v18 = vor.u32 %v3265_v37, %v3264_v1  ;;  %v3289_v0 = vand.u32 2147483648, %v1355_v61  ;;  %v3292_v19 = vand.u32 2147483647, %v1356_v62 }
 0x2b1   : > { %v3288_v16 = vand.u32 2147483647, %v3287_v9  ;;  %v2353_v7 = vpack.c.b8 %v2352_v12, %v2351_v55  ;;  %v2355_v20 = vpack.c.b16 %v3875_v13, %v3867_v36  ;;  %v1209_v28 = vmul.f32 0.01, %v1081_v45 }
 0x2b2   : > { %v3295_v24 = vcvt.s32.f32 %v3294_v8  ;;  %v1607_v29 = vadd.f32 -5.0, %v3259_v15  ;;  %vm3285_vm2 = vcmp.lt.f32.partialorder %v3284_v5, 8388608.0  ;;  %v1210_v56 = vmul.f32 0.01, %v1082_v52  ;;  %v4194_v15 = vpop.add.s32.mrf.mxu0.mxu1 }
 0x2b3   : > { %v3290_v6 = vor.u32 %v3289_v0, %v3288_v16  ;;  %2419 = vst [vmem:[%s4814_s4 + $0x70] sm:$0xff] %v2353_v7  ;;  %v2356_v33 = vpack.c.b8 %v2355_v20, %v2354_v57  ;;  %v3297_v49 = vand.u32 2147483648, %v1356_v62  ;;  %v1359_v27 = vadd.f32 %v5180_v43, %v1209_v28 }
 0x2b4   : > { %v3296_v31 = vand.u32 2147483647, %v3295_v24  ;;  %v3267_v23 = vsel %vm5411_vm1, %v3266_v18, %v5392_v32  ;;  %v1360_v4 = vadd.f32 %v5194_v35, %v1210_v56  ;;  %v1085_v39 = vcvt.s32.f32 %v4190_v10 }
 0x2b5   : > { %v3291_v38 = vsel %vm3285_vm2, %v3290_v6, %v1355_v61  ;;  %2420 = vst [vmem:[%s4814_s4 + $0x78] sm:$0xff] %v2356_v33  ;;  %v3318_v44 = vcvt.f32.s32 %v1359_v27  ;;  %v2654_v14 = vclampa-f32 %v1607_v29, -128, 127  ;;  %vm3293_vm3 = vcmp.lt.f32.partialorder %v3292_v19, 8388608.0  ;;  %v4195_v6 = vpop.add.s32.mrf.mxu0.mxu1 }
 0x2b6   : > { %v1611_v40 = vadd.f32 -5.0, %v3291_v38  ;;  %v3298_v42 = vor.u32 %v3297_v49, %v3296_v31  ;;  %v3326_v11 = vcvt.f32.s32 %v1360_v4  ;;  %v1608_v26 = vadd.f32 -5.0, %v3267_v23 }
 0x2b7   : > { %v3316_v46 = vand.u32 2147483647, %v1359_v27  ;;  %v3319_v47 = vcvt.s32.f32 %v3318_v44  ;;  %v3321_v48 = vand.u32 2147483648, %v1359_v27  ;;  %v3324_v32 = vand.u32 2147483647, %v1360_v4  ;;  %v4196_v44 = vpop.add.s32.mrf.mxu0.mxu1 }
 0x2b8   : > { %v3299_v60 = vsel %vm3293_vm3, %v3298_v42, %v1356_v62  ;;  %v3327_v54 = vcvt.s32.f32 %v3326_v11  ;;  %v2658_v41 = vclampa-f32 %v1611_v40, -128, 127  ;;  %v1213_v57 = vmul.f32 0.01, %v1085_v39 }
 0x2b9   : > { %v1612_v50 = vadd.f32 -5.0, %v3299_v60  ;;  %v3320_v55 = vand.u32 2147483647, %v3319_v47  ;;  %v1086_v58 = vcvt.s32.f32 %v4191_v25  ;;  %v3329_v17 = vand.u32 2147483648, %v1360_v4 }
 0x2ba   : > { %v3328_v61 = vand.u32 2147483647, %v3327_v54  ;;  %v1089_v30 = vcvt.s32.f32 %v4192_v34  ;;  %v1090_v21 = vcvt.s32.f32 %v4193_v51  ;;  %v2655_v59 = vclampa-f32 %v1608_v26, -128, 127  ;;  %v4197_v54 = vpop.add.s32.mrf.mxu0.mxu1 }
 0x2bb   : > { %v3322_v36 = vor.u32 %v3321_v48, %v3320_v55  ;;  %v1363_v63 = vadd.f32 %v5180_v43, %v1213_v57  ;;  %v1214_v62 = vmul.f32 0.01, %v1086_v58  ;;  %v2659_v1 = vclampa-f32 %v1612_v50, -128, 127 }
 0x2bc   : > { %vm3317_vm4 = vcmp.lt.f32.partialorder %v3316_v46, 8388608.0  ;;  %v3330_v3 = vor.u32 %v3329_v17, %v3328_v61  ;;  %v1217_v2 = vmul.f32 0.01, %v1089_v30  ;;  %v3888_v22 = vtrunc.f32 %v2658_v41 }
 0x2bd   : > { %v3323_v53 = vsel %vm3317_vm4, %v3322_v36, %v1359_v27  ;;  %v3350_v45 = vcvt.f32.s32 %v1363_v63  ;;  %v3880_v37 = vtrunc.f32 %v2654_v14  ;;  %vm3325_vm5 = vcmp.lt.f32.partialorder %v3324_v32, 8388608.0 }
 0x2be   : > { %v1615_v5 = vadd.f32 -5.0, %v3323_v53  ;;  %v1218_v9 = vmul.f32 0.01, %v1090_v21  ;;  %v3882_v52 = vtrunc.f32 %v2655_v59  ;;  %v3331_v10 = vsel %vm3325_vm5, %v3330_v3, %v1360_v4 }
 0x2bf   : > { %v3351_v12 = vcvt.s32.f32 %v3350_v45  ;;  %v1364_v13 = vadd.f32 %v5194_v35, %v1214_v62  ;;  %v3890_v8 = vtrunc.f32 %v2659_v1  ;;  %v3348_v18 = vand.u32 2147483647, %v1363_v63 }
 0x2c0   : > { %v5429_v16 = vadd.f32 %v5180_v43, %v1217_v2  ;;  %v3889_v0 = vcvt.f32.s32 %v3888_v22  ;;  %v3353_v7 = vand.u32 2147483648, %v1363_v63  ;;  %v2662_v24 = vclampa-f32 %v1615_v5, -128, 127 }
 0x2c1   : > { %v3352_v19 = vand.u32 2147483647, %v3351_v12  ;;  %v3358_v20 = vcvt.f32.s32 %v1364_v13  ;;  %v1616_v28 = vadd.f32 -5.0, %v3331_v10  ;;  %v5433_v29 = vadd.f32 %v5194_v35, %v1218_v9 }
 0x2c2   : > { %v3382_v25 = vcvt.f32.s32 %v5429_v16  ;;  %v3881_v56 = vcvt.f32.s32 %v3880_v37  ;;  %v3883_v33 = vcvt.f32.s32 %v3882_v52  ;;  %v3891_v27 = vcvt.f32.s32 %v3890_v8 }
 0x2c3   : > { %v3354_v31 = vor.u32 %v3353_v7, %v3352_v19  ;;  %v3359_v49 = vcvt.s32.f32 %v3358_v20  ;;  %vm3349_vm6 = vcmp.lt.f32.partialorder %v3348_v18, 8388608.0  ;;  %v3356_v23 = vand.u32 2147483647, %v1364_v13 }
 0x2c4   : > { %v3383_v38 = vcvt.s32.f32 %v3382_v25  ;;  %v2363_v4 = vpack.c.b16 %v3889_v0, %v3881_v56  ;;  %v3361_v42 = vand.u32 2147483648, %v1364_v13  ;;  %v3896_v39 = vtrunc.f32 %v2662_v24 }
 0x2c5   : > { %v3355_v34 = vsel %vm3349_vm6, %v3354_v31, %v1363_v63  ;;  %v3360_v40 = vand.u32 2147483647, %v3359_v49  ;;  %v2663_v14 = vclampa-f32 %v1616_v28, -128, 127  ;;  %v3390_v26 = vcvt.f32.s32 %v5433_v29 }
 0x2c6   : > { %v1619_v11 = vadd.f32 -5.0, %v3355_v34  ;;  %v3380_v46 = vand.u32 2147483647, %v5429_v16  ;;  %v1093_v47 = vcvt.s32.f32 %v4194_v15  ;;  %v1094_v51 = vcvt.s32.f32 %v4195_v6 }
 0x2c7   : > { %v3362_v60 = vor.u32 %v3361_v42, %v3360_v40  ;;  %v2366_v50 = vpack.c.b16 %v3891_v27, %v3883_v33  ;;  %vm3357_vm7 = vcmp.lt.f32.partialorder %v3356_v23, 8388608.0  ;;  %v3384_v32 = vand.u32 2147483647, %v3383_v38 }
 0x2c8   : > { %v2666_v48 = vclampa-f32 %v1619_v11, -128, 127  ;;  %v3391_v55 = vcvt.s32.f32 %v3390_v26  ;;  %v1221_v57 = vmul.f32 0.01, %v1093_v47  ;;  %v1222_v58 = vmul.f32 0.01, %v1094_v51 }
 0x2c9   : > { %v3363_v41 = vsel %vm3357_vm7, %v3362_v60, %v1364_v13  ;;  %v3898_v61 = vtrunc.f32 %v2663_v14  ;;  %v1097_v21 = vcvt.s32.f32 %v4196_v44  ;;  %v3897_v59 = vcvt.f32.s32 %v3896_v39  ;;  %v4198_v13 = vpop.add.s32.mrf.mxu0.mxu1 }
 0x2ca   : > { %v3904_v17 = vtrunc.f32 %v2666_v48  ;;  %v1620_v30 = vadd.f32 -5.0, %v3363_v41  ;;  %v3385_v36 = vand.u32 2147483648, %v5429_v16  ;;  %v1371_v63 = vadd.f32 %v5180_v43, %v1221_v57  ;;  %v4199_v33 = vpop.add.s32.mrf.mxu0.mxu1 }
 0x2cb   : > { %v1098_v62 = vcvt.s32.f32 %v4197_v54  ;;  %v3388_v2 = vand.u32 2147483647, %v5433_v29  ;;  %v5441_v22 = vadd.f32 %v5194_v35, %v1222_v58  ;;  %vm5443_vm8 = vcmp.lt.f32.partialorder %v3380_v46, 8388608.0  ;;  %v4200_v54 = vpop.add.s32.mrf.mxu0.mxu1 }
 0x2cc   : > { %v3905_v1 = vcvt.f32.s32 %v3904_v17  ;;  %v2667_v3 = vclampa-f32 %v1620_v30, -128, 127  ;;  %v3386_v45 = vor.u32 %v3385_v36, %v3384_v32  ;;  %v3392_v37 = vand.u32 2147483647, %v3391_v55 }
 0x2cd   : > { %v3414_v5 = vcvt.f32.s32 %v1371_v63  ;;  %v3412_v10 = vand.u32 2147483647, %v1371_v63  ;;  %v1225_v12 = vmul.f32 0.01, %v1097_v21  ;;  %v3899_v15 = vcvt.f32.s32 %v3898_v61 }
 0x2ce   : > { %v2364_v9 = vpack.c.b16 %v3905_v1, %v3897_v59  ;;  %v3906_v52 = vtrunc.f32 %v2667_v3  ;;  %v3393_v8 = vand.u32 2147483648, %v5433_v29  ;;  %v1226_v0 = vmul.f32 0.01, %v1098_v62 }
 0x2cf   : > { %v3415_v18 = vcvt.s32.f32 %v3414_v5  ;;  %vm5448_vm9 = vcmp.lt.f32.partialorder %v3388_v2, 8388608.0  ;;  %v3422_v24 = vcvt.f32.s32 %v5441_v22  ;;  %v3387_v28 = vsel %vm5443_vm8, %v3386_v45, %v5429_v16 }
 0x2d0   : > { %v2365_v19 = vpack.c.b8 %v2364_v9, %v2363_v4  ;;  %v3907_v7 = vcvt.f32.s32 %v3906_v52  ;;  %v3394_v25 = vor.u32 %v3393_v8, %v3392_v37  ;;  %v3417_v56 = vand.u32 2147483648, %v1371_v63 }
 0x2d1   : > { %v3416_v6 = vand.u32 2147483647, %v3415_v18  ;;  %vm3413_vm10 = vcmp.lt.f32.partialorder %v3412_v10, 8388608.0  ;;  %v3423_v49 = vcvt.s32.f32 %v3422_v24  ;;  %v1375_v27 = vadd.f32 %v5180_v43, %v1225_v12 }
 0x2d2   : > { %2423 = vst [vmem:[%s4814_s4 + $0x90] sm:$0xff] %v2365_v19  ;;  %v2367_v31 = vpack.c.b16 %v3907_v7, %v3899_v15  ;;  %v3425_v38 = vand.u32 2147483648, %v5441_v22  ;;  %v1376_v4 = vadd.f32 %v5194_v35, %v1226_v0  ;;  %v1101_v34 = vcvt.s32.f32 %v4198_v13 }
 0x2d3   : > { %v3418_v23 = vor.u32 %v3417_v56, %v3416_v6  ;;  %v3424_v42 = vand.u32 2147483647, %v3423_v49  ;;  %v3446_v16 = vcvt.f32.s32 %v1375_v27  ;;  %v1102_v44 = vcvt.s32.f32 %v4199_v33 }
 0x2d4   : > { %v2368_v40 = vpack.c.b8 %v2367_v31, %v2366_v50  ;;  %v3395_v39 = vsel %vm5448_vm9, %v3394_v25, %v5433_v29  ;;  %v3420_v11 = vand.u32 2147483647, %v5441_v22  ;;  %v1623_v47 = vadd.f32 -5.0, %v3387_v28 }
 0x2d5   : > { %v3419_v14 = vsel %vm3413_vm10, %v3418_v23, %v1371_v63  ;;  %v3426_v60 = vor.u32 %v3425_v38, %v3424_v42  ;;  %v3447_v46 = vcvt.s32.f32 %v3446_v16  ;;  %v3444_v51 = vand.u32 2147483647, %v1375_v27  ;;  %v4201_v63 = vpop.add.s32.mrf.mxu0.mxu1 }
 0x2d6   : > { %2424 = vst [vmem:[%s4814_s4 + $0x98] sm:$0xff] %v2368_v40  ;;  %v1627_v26 = vadd.f32 -5.0, %v3419_v14  ;;  %v3454_v48 = vcvt.f32.s32 %v1376_v4  ;;  %v1229_v32 = vmul.f32 0.01, %v1101_v34  ;;  %v1624_v50 = vadd.f32 -5.0, %v3395_v39  ;;  %v4202_v15 = vpop.add.s32.mrf.mxu0.mxu1 }
 0x2d7   : > { %v3448_v41 = vand.u32 2147483647, %v3447_v46  ;;  %v3449_v55 = vand.u32 2147483648, %v1375_v27  ;;  %v1230_v57 = vmul.f32 0.01, %v1102_v44  ;;  %vm5465_vm11 = vcmp.lt.f32.partialorder %v3420_v11, 8388608.0  ;;  %v4203_v31 = vpop.add.s32.mrf.mxu0.mxu1 }
 0x2d8   : > { %v3452_v29 = vand.u32 2147483647, %v1376_v4  ;;  %v3455_v61 = vcvt.s32.f32 %v3454_v48  ;;  %v1379_v17 = vadd.f32 %v5180_v43, %v1229_v32  ;;  %v2674_v30 = vclampa-f32 %v1627_v26, -128, 127 }
 0x2d9   : > { %v3427_v21 = vsel %vm5465_vm11, %v3426_v60, %v5441_v22  ;;  %v3450_v59 = vor.u32 %v3449_v55, %v3448_v41  ;;  %v1380_v36 = vadd.f32 %v5194_v35, %v1230_v57  ;;  %vm5474_vm12 = vcmp.lt.f32.partialorder %v3444_v51, 8388608.0  ;;  %v4204_v51 = vpop.add.s32.mrf.mxu0.mxu1 }
 0x2da   : > { %v3456_v1 = vand.u32 2147483647, %v3455_v61  ;;  %v3457_v3 = vand.u32 2147483648, %v1376_v4  ;;  %v3478_v2 = vcvt.f32.s32 %v1379_v17  ;;  %v2670_v53 = vclampa-f32 %v1623_v47, -128, 127 }
 0x2db   : > { %v3451_v45 = vsel %vm5474_vm12, %v3450_v59, %v1375_v27  ;;  %v1105_v37 = vcvt.s32.f32 %v4200_v54  ;;  %v2671_v5 = vclampa-f32 %v1624_v50, -128, 127  ;;  %v1628_v9 = vadd.f32 -5.0, %v3427_v21 }
 0x2dc   : > { %v3458_v52 = vor.u32 %v3457_v3, %v3456_v1  ;;  %v1106_v22 = vcvt.s32.f32 %v4201_v63  ;;  %v3920_v10 = vtrunc.f32 %v2674_v30  ;;  %vm3453_vm13 = vcmp.lt.f32.partialorder %v3452_v29, 8388608.0 }
 0x2dd   : > { %v3479_v12 = vcvt.s32.f32 %v3478_v2  ;;  %v3486_v13 = vcvt.f32.s32 %v1380_v36  ;;  %v1631_v8 = vadd.f32 -5.0, %v3451_v45  ;;  %v3476_v0 = vand.u32 2147483647, %v1379_v17 }
 0x2de   : > { %v3459_v18 = vsel %vm3453_vm13, %v3458_v52, %v1376_v4  ;;  %v3481_v19 = vand.u32 2147483648, %v1379_v17  ;;  %v1233_v28 = vmul.f32 0.01, %v1105_v37  ;;  %v2675_v25 = vclampa-f32 %v1628_v9, -128, 127  ;;  %v4205_v9 = vpop.add.s32.mrf.mxu0.mxu1 }
 0x2df   : > { %v1632_v7 = vadd.f32 -5.0, %v3459_v18  ;;  %v3480_v20 = vand.u32 2147483647, %v3479_v12  ;;  %v3487_v24 = vcvt.s32.f32 %v3486_v13  ;;  %v3484_v6 = vand.u32 2147483647, %v1380_v36 }
 0x2e0   : > { %v1234_v56 = vmul.f32 0.01, %v1106_v22  ;;  %v1109_v33 = vcvt.s32.f32 %v4202_v15  ;;  %v3489_v23 = vand.u32 2147483648, %v1380_v36  ;;  %v5481_v38 = vadd.f32 %v5180_v43, %v1233_v28 }
 0x2e1   : > { %v3482_v49 = vor.u32 %v3481_v19, %v3480_v20  ;;  %v3488_v27 = vand.u32 2147483647, %v3487_v24  ;;  %v2678_v34 = vclampa-f32 %v1631_v8, -128, 127  ;;  %v2679_v40 = vclampa-f32 %v1632_v7, -128, 127  ;;  %v4206_v19 = vpop.add.s32.mrf.mxu0.mxu1 }
 0x2e2   : > { %vm3477_vm14 = vcmp.lt.f32.partialorder %v3476_v0, 8388608.0  ;;  %v5484_v4 = vadd.f32 %v5194_v35, %v1234_v56  ;;  %v1237_v44 = vmul.f32 0.01, %v1109_v33  ;;  %v1110_v39 = vcvt.s32.f32 %v4203_v31 }
 0x2e3   : > { %v3483_v42 = vsel %vm3477_vm14, %v3482_v49, %v1379_v17  ;;  %v3490_v16 = vor.u32 %v3489_v23, %v3488_v27  ;;  %vm3485_vm15 = vcmp.lt.f32.partialorder %v3484_v6, 8388608.0  ;;  %v3510_v11 = vcvt.f32.s32 %v5481_v38 }
 0x2e4   : > { %v1635_v14 = vadd.f32 -5.0, %v3483_v42  ;;  %v3912_v26 = vtrunc.f32 %v2670_v53  ;;  %v3914_v60 = vtrunc.f32 %v2671_v5  ;;  %v3922_v46 = vtrunc.f32 %v2675_v25 }
 0x2e5   : > { %v3491_v47 = vsel %vm3485_vm15, %v3490_v16, %v1380_v36  ;;  %v3921_v48 = vcvt.f32.s32 %v3920_v10  ;;  %v3928_v32 = vtrunc.f32 %v2678_v34  ;;  %v3930_v41 = vtrunc.f32 %v2679_v40  ;;  %v4207_v16 = vpop.add.s32.mrf.mxu0.mxu1 }
 0x2e6   : > { %v2682_v54 = vclampa-f32 %v1635_v14, -128, 127  ;;  %v1636_v50 = vadd.f32 -5.0, %v3491_v47  ;;  %v3518_v55 = vcvt.f32.s32 %v5484_v4  ;;  %v5489_v57 = vadd.f32 %v5180_v43, %v1237_v44 }
 0x2e7   : > { %v1238_v58 = vmul.f32 0.01, %v1110_v39  ;;  %v3511_v17 = vcvt.s32.f32 %v3510_v11  ;;  %v1113_v30 = vcvt.s32.f32 %v4204_v51  ;;  %v3913_v21 = vcvt.f32.s32 %v3912_v26 }
 0x2e8   : > { %v3936_v29 = vtrunc.f32 %v2682_v54  ;;  %v2683_v61 = vclampa-f32 %v1636_v50, -128, 127  ;;  %v3915_v59 = vcvt.f32.s32 %v3914_v60  ;;  %v3923_v63 = vcvt.f32.s32 %v3922_v46 }
 0x2e9   : > { %v3542_v36 = vcvt.f32.s32 %v5489_v57  ;;  %v3929_v62 = vcvt.f32.s32 %v3928_v32  ;;  %v5493_v2 = vadd.f32 %v5194_v35, %v1238_v58  ;;  %v2375_v53 = vpack.c.b16 %v3921_v48, %v3913_v21 }
 0x2ea   : > { %v3937_v1 = vcvt.f32.s32 %v3936_v29  ;;  %v3938_v3 = vtrunc.f32 %v2683_v61  ;;  %v3931_v45 = vcvt.f32.s32 %v3930_v41  ;;  %v3519_v37 = vcvt.s32.f32 %v3518_v55  ;;  %v4208_v29 = vpop.add.s32.mrf.mxu0.mxu1 }
 0x2eb   : > { %v3543_v5 = vcvt.s32.f32 %v3542_v36  ;;  %v3512_v10 = vand.u32 2147483647, %v3511_v17  ;;  %v1241_v12 = vmul.f32 0.01, %v1113_v30  ;;  %v3550_v13 = vcvt.f32.s32 %v5493_v2 }
 0x2ec   : > { %v2376_v52 = vpack.c.b16 %v3937_v1, %v3929_v62  ;;  %v3939_v22 = vcvt.f32.s32 %v3938_v3  ;;  %v2378_v15 = vpack.c.b16 %v3923_v63, %v3915_v59  ;;  %v3513_v0 = vand.u32 2147483648, %v5481_v38 }
 0x2ed   : > { %v3508_v7 = vand.u32 2147483647, %v5481_v38  ;;  %v3520_v20 = vand.u32 2147483647, %v3519_v37  ;;  %v3544_v24 = vand.u32 2147483647, %v3543_v5  ;;  %v3551_v28 = vcvt.s32.f32 %v3550_v13 }
 0x2ee   : > { %v2377_v8 = vpack.c.b8 %v2376_v52, %v2375_v53  ;;  %v2379_v18 = vpack.c.b16 %v3939_v22, %v3931_v45  ;;  %v3514_v6 = vor.u32 %v3513_v0, %v3512_v10  ;;  %v1391_v56 = vadd.f32 %v5180_v43, %v1241_v12  ;;  %v4209_v53 = vpop.add.s32.mrf.mxu0.mxu1 }
 0x2ef   : > { %v1114_v33 = vcvt.s32.f32 %v4205_v9  ;;  %v3521_v31 = vand.u32 2147483648, %v5484_v4  ;;  %v3545_v49 = vand.u32 2147483648, %v5489_v57  ;;  %v1117_v27 = vcvt.s32.f32 %v4206_v19 }
 0x2f0   : > { %2427 = vst [vmem:[%s4814_s4 + $0xb0] sm:$0xff] %v2377_v8  ;;  %v2380_v25 = vpack.c.b8 %v2379_v18, %v2378_v15  ;;  %v3516_v23 = vand.u32 2147483647, %v5484_v4  ;;  %v3540_v34 = vand.u32 2147483647, %v5489_v57  ;;  %v3574_v42 = vcvt.f32.s32 %v1391_v56  ;;  %v4210_v8 = vpop.add.s32.mrf.mxu0.mxu1 }
 0x2f1   : > { %v3552_v40 = vand.u32 2147483647, %v3551_v28  ;;  %vm5505_vm0 = vcmp.lt.f32.partialorder %v3508_v7, 8388608.0  ;;  %v3522_v39 = vor.u32 %v3521_v31, %v3520_v20  ;;  %v3546_v14 = vor.u32 %v3545_v49, %v3544_v24 }
 0x2f2   : > { %2428 = vst [vmem:[%s4814_s4 + $0xb8] sm:$0xff] %v2380_v25  ;;  %v1242_v11 = vmul.f32 0.01, %v1114_v33  ;;  %v3515_v26 = vsel %vm5505_vm0, %v3514_v6, %v5481_v38  ;;  %v3548_v60 = vand.u32 2147483647, %v5493_v2  ;;  %v3553_v46 = vand.u32 2147483648, %v5493_v2 }
 0x2f3   : > { %v3575_v47 = vcvt.s32.f32 %v3574_v42  ;;  %v3572_v51 = vand.u32 2147483647, %v1391_v56  ;;  %v1245_v32 = vmul.f32 0.01, %v1117_v27  ;;  %v1118_v54 = vcvt.s32.f32 %v4207_v16 }
 0x2f4   : > { %v1392_v48 = vadd.f32 %v5194_v35, %v1242_v11  ;;  %vm5515_vm1 = vcmp.lt.f32.partialorder %v3540_v34, 8388608.0  ;;  %v3554_v41 = vor.u32 %v3553_v46, %v3552_v40  ;;  %v3577_v58 = vand.u32 2147483648, %v1391_v56 }
 0x2f5   : > { %v3576_v55 = vand.u32 2147483647, %v3575_v47  ;;  %vm5519_vm2 = vcmp.lt.f32.partialorder %v3516_v23, 8388608.0  ;;  %v3547_v61 = vsel %vm5515_vm1, %v3546_v14, %v5489_v57  ;;  %v1395_v30 = vadd.f32 %v5180_v43, %v1245_v32  ;;  %v4211_v14 = vpop.add.s32.mrf.mxu0.mxu1 }
 0x2f6   : > { %v3582_v17 = vcvt.f32.s32 %v1392_v48  ;;  %v1639_v21 = vadd.f32 -5.0, %v3515_v26  ;;  %v3523_v59 = vsel %vm5519_vm2, %v3522_v39, %v5484_v4  ;;  %v1246_v36 = vmul.f32 0.01, %v1118_v54 }
 0x2f7   : > { %v3578_v63 = vor.u32 %v3577_v58, %v3576_v55  ;;  %vm5530_vm3 = vcmp.lt.f32.partialorder %v3548_v60, 8388608.0  ;;  %vm3573_vm4 = vcmp.lt.f32.partialorder %v3572_v51, 8388608.0  ;;  %v3606_v3 = vcvt.f32.s32 %v1395_v30 }
 0x2f8   : > { %v3583_v1 = vcvt.s32.f32 %v3582_v17  ;;  %v1643_v45 = vadd.f32 -5.0, %v3547_v61  ;;  %v3555_v57 = vsel %vm5530_vm3, %v3554_v41, %v5493_v2  ;;  %v3580_v5 = vand.u32 2147483647, %v1392_v48  ;;  %v4212_v61 = vpop.add.s32.mrf.mxu0.mxu1 }
 0x2f9   : > { %v3579_v37 = vsel %vm3573_vm4, %v3578_v63, %v1391_v56  ;;  %v3585_v4 = vand.u32 2147483648, %v1392_v48  ;;  %v3607_v22 = vcvt.s32.f32 %v3606_v3  ;;  %v1640_v10 = vadd.f32 -5.0, %v3523_v59 }
 0x2fa   : > { %v1647_v9 = vadd.f32 -5.0, %v3579_v37  ;;  %v3584_v52 = vand.u32 2147483647, %v3583_v1  ;;  %v3604_v12 = vand.u32 2147483647, %v1395_v30  ;;  %v1396_v13 = vadd.f32 %v5194_v35, %v1246_v36 }
 0x2fb   : > { %v1121_v15 = vcvt.s32.f32 %v4208_v29  ;;  %v2686_v18 = vclampa-f32 %v1639_v21, -128, 127  ;;  %v3608_v19 = vand.u32 2147483647, %v3607_v22  ;;  %v3609_v7 = vand.u32 2147483648, %v1395_v30 }
 0x2fc   : > { %v3586_v0 = vor.u32 %v3585_v4, %v3584_v52  ;;  %v2690_v20 = vclampa-f32 %v1643_v45, -128, 127  ;;  %v1644_v24 = vadd.f32 -5.0, %v3555_v57  ;;  %vm3581_vm5 = vcmp.lt.f32.partialorder %v3580_v5, 8388608.0  ;;  %v4213_v57 = vpop.add.s32.mrf.mxu0.mxu1 }
 0x2fd   : > { %v3614_v2 = vcvt.f32.s32 %v1396_v13  ;;  %v2694_v28 = vclampa-f32 %v1647_v9, -128, 127  ;;  %v3610_v6 = vor.u32 %v3609_v7, %v3608_v19  ;;  %v1125_v56 = vcvt.s32.f32 %v4210_v8 }
 0x2fe   : > { %v3587_v25 = vsel %vm3581_vm5, %v3586_v0, %v1392_v48  ;;  %vm3605_vm6 = vcmp.lt.f32.partialorder %v3604_v12, 8388608.0  ;;  %v1249_v31 = vmul.f32 0.01, %v1121_v15  ;;  %v1122_v49 = vcvt.s32.f32 %v4209_v53 }
 0x2ff   : > { %v3615_v33 = vcvt.s32.f32 %v3614_v2  ;;  %v2687_v27 = vclampa-f32 %v1640_v10, -128, 127  ;;  %v1648_v23 = vadd.f32 -5.0, %v3587_v25  ;;  %v3611_v34 = vsel %vm3605_vm6, %v3610_v6, %v1395_v30 }
 0x300   : > { %v3612_v40 = vand.u32 2147483647, %v1396_v13  ;;  %v3952_v42 = vtrunc.f32 %v2690_v20  ;;  %v1651_v16 = vadd.f32 -5.0, %v3611_v34  ;;  %v3617_v39 = vand.u32 2147483648, %v1396_v13  ;;  %v4214_v20 = vpop.add.s32.mrf.mxu0.mxu1 }
 0x301   : > { %v3616_v44 = vand.u32 2147483647, %v3615_v33  ;;  %v3944_v11 = vtrunc.f32 %v2686_v18  ;;  %v2691_v26 = vclampa-f32 %v1644_v24, -128, 127  ;;  %v3960_v60 = vtrunc.f32 %v2694_v28 }
 0x302   : > { %v1253_v46 = vmul.f32 0.01, %v1125_v56  ;;  %v2698_v47 = vclampa-f32 %v1651_v16, -128, 127  ;;  %v5539_v48 = vadd.f32 %v5180_v43, %v1249_v31  ;;  %v1250_v32 = vmul.f32 0.01, %v1122_v49 }
 0x303   : > { %v3618_v51 = vor.u32 %v3617_v39, %v3616_v44  ;;  %v3946_v54 = vtrunc.f32 %v2687_v27  ;;  %v2695_v50 = vclampa-f32 %v1648_v23, -128, 127  ;;  %vm3613_vm7 = vcmp.lt.f32.partialorder %v3612_v40, 8388608.0  ;;  %v4215_v27 = vpop.add.s32.mrf.mxu0.mxu1 }
 0x304   : > { %v1126_v41 = vcvt.s32.f32 %v4211_v14  ;;  %v3953_v55 = vcvt.f32.s32 %v3952_v42  ;;  %v3968_v58 = vtrunc.f32 %v2698_v47  ;;  %v5542_v38 = vadd.f32 %v5180_v43, %v1253_v46 }
 0x305   : > { %v3619_v29 = vsel %vm3613_vm7, %v3618_v51, %v1396_v13  ;;  %v3945_v17 = vcvt.f32.s32 %v3944_v11  ;;  %v3954_v30 = vtrunc.f32 %v2691_v26  ;;  %v3961_v59 = vcvt.f32.s32 %v3960_v60 }
 0x306   : > { %v1652_v21 = vadd.f32 -5.0, %v3619_v29  ;;  %v3969_v63 = vcvt.f32.s32 %v3968_v58  ;;  %v3638_v36 = vcvt.f32.s32 %v5539_v48  ;;  %v5546_v62 = vadd.f32 %v5194_v35, %v1250_v32 }
 0x307   : > { %v3962_v1 = vtrunc.f32 %v2695_v50  ;;  %v3670_v53 = vcvt.f32.s32 %v5542_v38  ;;  %v1254_v45 = vmul.f32 0.01, %v1126_v41  ;;  %v3947_v37 = vcvt.f32.s32 %v3946_v54 }
 0x308   : > { %v2699_v3 = vclampa-f32 %v1652_v21, -128, 127  ;;  %v2387_v5 = vpack.c.b16 %v3953_v55, %v3945_v17  ;;  %v2388_v9 = vpack.c.b16 %v3969_v63, %v3961_v59  ;;  %v3955_v52 = vcvt.f32.s32 %v3954_v30 }
 0x309   : > { %v5550_v22 = vadd.f32 %v5194_v35, %v1254_v45  ;;  %v1129_v10 = vcvt.s32.f32 %v4212_v61  ;;  %v3639_v13 = vcvt.s32.f32 %v3638_v36  ;;  %v3646_v15 = vcvt.f32.s32 %v5546_v62 }
 0x30a   : > { %v3970_v4 = vtrunc.f32 %v2699_v3  ;;  %v2389_v12 = vpack.c.b8 %v2388_v9, %v2387_v5  ;;  %v1130_v8 = vcvt.s32.f32 %v4213_v57  ;;  %v3963_v18 = vcvt.f32.s32 %v3962_v1 }
 0x30b   : > { %v3671_v19 = vcvt.s32.f32 %v3670_v53  ;;  %v3678_v7 = vcvt.f32.s32 %v5550_v22  ;;  %v3636_v24 = vand.u32 2147483647, %v5539_v48  ;;  %v2390_v2 = vpack.c.b16 %v3955_v52, %v3947_v37 }
 0x30c   : > { %v3971_v0 = vcvt.f32.s32 %v3970_v4  ;;  %2431 = vst [vmem:[%s4814_s4 + $0xd0] sm:$0xff] %v2389_v12  ;;  %v1257_v6 = vmul.f32 0.01, %v1129_v10  ;;  %v3640_v56 = vand.u32 2147483647, %v3639_v13  ;;  %v3641_v33 = vand.u32 2147483648, %v5539_v48 }
 0x30d   : > { %v3679_v25 = vcvt.s32.f32 %v3678_v7  ;;  %v3647_v31 = vcvt.s32.f32 %v3646_v15  ;;  %v1258_v49 = vmul.f32 0.01, %v1130_v8  ;;  %v3668_v34 = vand.u32 2147483647, %v5542_v38 }
 0x30e   : > { %v2391_v28 = vpack.c.b16 %v3971_v0, %v3963_v18  ;;  %v3672_v40 = vand.u32 2147483647, %v3671_v19  ;;  %v1407_v42 = vadd.f32 %v5180_v43, %v1257_v6  ;;  %vm5559_vm8 = vcmp.lt.f32.partialorder %v3636_v24, 8388608.0 }
 0x30f   : > { %v3644_v44 = vand.u32 2147483647, %v5546_v62  ;;  %v3673_v39 = vand.u32 2147483648, %v5542_v38  ;;  %v1408_v14 = vadd.f32 %v5194_v35, %v1258_v49  ;;  %v3680_v11 = vand.u32 2147483647, %v3679_v25 }
 0x310   : > { %v2392_v23 = vpack.c.b8 %v2391_v28, %v2390_v2  ;;  %v3702_v26 = vcvt.f32.s32 %v1407_v42  ;;  %v1133_v60 = vcvt.s32.f32 %v4214_v20  ;;  %v1134_v46 = vcvt.s32.f32 %v4215_v27 }
 0x311   : > { %v3642_v47 = vor.u32 %v3641_v33, %v3640_v56  ;;  %v3648_v51 = vand.u32 2147483647, %v3647_v31  ;;  %v3649_v32 = vand.u32 2147483648, %v5546_v62  ;;  %v3710_v54 = vcvt.f32.s32 %v1408_v14 }
 0x312   : > { %2432 = vst [vmem:[%s4814_s4 + $0xd8] sm:$0xff] %v2392_v23  ;;  %vm5568_vm9 = vcmp.lt.f32.partialorder %v3668_v34, 8388608.0  ;;  %v3674_v41 = vor.u32 %v3673_v39, %v3672_v40  ;;  %v3681_v55 = vand.u32 2147483648, %v5550_v22  ;;  %v3703_v58 = vcvt.s32.f32 %v3702_v26 }
 0x313   : > { %v3676_v29 = vand.u32 2147483647, %v5550_v22  ;;  %v3700_v61 = vand.u32 2147483647, %v1407_v42  ;;  %v3705_v17 = vand.u32 2147483648, %v1407_v42  ;;  %v3711_v30 = vcvt.s32.f32 %v3710_v54 }
 0x314   : > { %v3682_v21 = vor.u32 %v3681_v55, %v3680_v11  ;;  %v3704_v59 = vand.u32 2147483647, %v3703_v58  ;;  %v1261_v63 = vmul.f32 0.01, %v1133_v60  ;;  %v1262_v36 = vmul.f32 0.01, %v1134_v46 }
 0x315   : > { %v3650_v1 = vor.u32 %v3649_v32, %v3648_v51  ;;  %v3708_v3 = vand.u32 2147483647, %v1408_v14  ;;  %v3712_v53 = vand.u32 2147483647, %v3711_v30  ;;  %v3713_v45 = vand.u32 2147483648, %v1408_v14 }
 0x316   : > { %v3675_v57 = vsel %vm5568_vm9, %v3674_v41, %v5542_v38  ;;  %v3706_v37 = vor.u32 %v3705_v17, %v3704_v59  ;;  %v1411_v5 = vadd.f32 %v5180_v43, %v1261_v63  ;;  %v1412_v9 = vadd.f32 %v5194_v35, %v1262_v36 }
 0x317   : > { %v3643_v52 = vsel %vm5559_vm8, %v3642_v47, %v5539_v48  ;;  %vm3677_vm10 = vcmp.lt.f32.partialorder %v3676_v29, 8388608.0  ;;  %vm3701_vm11 = vcmp.lt.f32.partialorder %v3700_v61, 8388608.0  ;;  %v3714_v4 = vor.u32 %v3713_v45, %v3712_v53 }
 0x318   : > { %vm3645_vm12 = vcmp.lt.f32.partialorder %v3644_v44, 8388608.0  ;;  %v3683_v10 = vsel %vm3677_vm10, %v3682_v21, %v5550_v22  ;;  %v3707_v12 = vsel %vm3701_vm11, %v3706_v37, %v1407_v42  ;;  %v3734_v13 = vcvt.f32.s32 %v1411_v5 }
 0x319   : > { %v3651_v15 = vsel %vm3645_vm12, %v3650_v1, %v5546_v62  ;;  %v1659_v38 = vadd.f32 -5.0, %v3675_v57  ;;  %vm3709_vm13 = vcmp.lt.f32.partialorder %v3708_v3, 8388608.0  ;;  %v1655_v8 = vadd.f32 -5.0, %v3643_v52 }
 0x31a   : > { %v3715_v43 = vsel %vm3709_vm13, %v3714_v4, %v1408_v14  ;;  %v3735_v18 = vcvt.s32.f32 %v3734_v13  ;;  %v3742_v35 = vcvt.f32.s32 %v1412_v9  ;;  %v1660_v0 = vadd.f32 -5.0, %v3683_v10 }
 0x31b   : > { %v1663_v19 = vadd.f32 -5.0, %v3707_v12  ;;  %v3732_v7 = vand.u32 2147483647, %v1411_v5  ;;  %v1656_v48 = vadd.f32 -5.0, %v3651_v15  ;;  %v3737_v24 = vand.u32 2147483648, %v1411_v5 }
 0x31c   : > { %v3736_v20 = vand.u32 2147483647, %v3735_v18  ;;  %v3743_v2 = vcvt.s32.f32 %v3742_v35  ;;  %v2706_v28 = vclampa-f32 %v1659_v38, -128, 127  ;;  %v1664_v25 = vadd.f32 -5.0, %v3715_v43 }
 0x31d   : > { %v3740_v22 = vand.u32 2147483647, %v1412_v9  ;;  %v2702_v6 = vclampa-f32 %v1655_v8, -128, 127  ;;  %v3745_v62 = vand.u32 2147483648, %v1412_v9  ;;  %vm3733_vm14 = vcmp.lt.f32.partialorder %v3732_v7, 8388608.0 }
 0x31e   : > { %v3738_v56 = vor.u32 %v3737_v24, %v3736_v20  ;;  %v3744_v33 = vand.u32 2147483647, %v3743_v2  ;;  %v2707_v31 = vclampa-f32 %v1660_v0, -128, 127  ;;  %v2710_v49 = vclampa-f32 %v1663_v19, -128, 127 }
 0x31f   : > { %v2703_v27 = vclampa-f32 %v1656_v48, -128, 127  ;;  %v3984_v40 = vtrunc.f32 %v2706_v28  ;;  %v2711_v42 = vclampa-f32 %v1664_v25, -128, 127  ;;  %vm3741_vm15 = vcmp.lt.f32.partialorder %v3740_v22, 8388608.0 }
 0x320   : > { %v3739_v23 = vsel %vm3733_vm14, %v3738_v56, %v1411_v5  ;;  %v3746_v34 = vor.u32 %v3745_v62, %v3744_v33  ;;  %v3976_v44 = vtrunc.f32 %v2702_v6  ;;  %v3986_v14 = vtrunc.f32 %v2707_v31 }
 0x321   : > { %v1667_v16 = vadd.f32 -5.0, %v3739_v23  ;;  %v3992_v11 = vtrunc.f32 %v2710_v49  ;;  %v3978_v46 = vtrunc.f32 %v2703_v27  ;;  %v3985_v47 = vcvt.f32.s32 %v3984_v40 }
 0x322   : > { %v3747_v39 = vsel %vm3741_vm15, %v3746_v34, %v1412_v9  ;;  %v3994_v51 = vtrunc.f32 %v2711_v42  ;;  %v3977_v50 = vcvt.f32.s32 %v3976_v44  ;;  %v3987_v41 = vcvt.f32.s32 %v3986_v14 }
 0x323   : > { %v2714_v26 = vclampa-f32 %v1667_v16, -128, 127  ;;  %v1668_v60 = vadd.f32 -5.0, %v3747_v39  ;;  %v3993_v55 = vcvt.f32.s32 %v3992_v11  ;;  %v3979_v61 = vcvt.f32.s32 %v3978_v46 }
 0x324   : > { %v2399_v17 = vpack.c.b16 %v3985_v47, %v3977_v50  ;;  %v3995_v30 = vcvt.f32.s32 %v3994_v51 }
 0x325   : > { %v4000_v32 = vtrunc.f32 %v2714_v26  ;;  %v2715_v54 = vclampa-f32 %v1668_v60, -128, 127  ;;  %v2402_v63 = vpack.c.b16 %v3987_v41, %v3979_v61 }
 0x327   : > { %v4001_v58 = vcvt.f32.s32 %v4000_v32  ;;  %v4002_v29 = vtrunc.f32 %v2715_v54 }
 0x329   : > { %v2400_v21 = vpack.c.b16 %v4001_v58, %v3993_v55  ;;  %v4003_v59 = vcvt.f32.s32 %v4002_v29 }
 0x32b   : > { %v2401_v36 = vpack.c.b8 %v2400_v21, %v2399_v17  ;;  %v2403_v1 = vpack.c.b16 %v4003_v59, %v3995_v30 }
 0x32d   : > { %2435 = vst [vmem:[%s4814_s4 + $0xf0] sm:$0xff] %v2401_v36  ;;  %v2404_v3 = vpack.c.b8 %v2403_v1, %v2402_v63 }
 0x32f   : > { %2436 = vst [vmem:[%s4814_s4 + $0xf8] sm:$0xff] %v2404_v3 }
 0x330   : > { %4312 = shalt.err (!%p4309_p6)
}
 0x331   : > { %s4313_s20 = scalar_lea.hbm %s5589_s28, 4096  ;;  %s4317_s10 = scalar_lea.hbm %s5644_s3, 8192 }
 0x332   : > { %p4314_p9 = scmp.ne.s32.totalorder %s5589_s28, %s4313_s20  ;;  %p4318_p7 = scmp.lt.s32.totalorder %s5589_s28, %s5644_s3 }
 0x333   : > { %p4319_p5 = scmp.lt.s32.totalorder %s4317_s10, %s4313_s20 }
 0x334   : > { %p4315_p4 = pnand %p4314_p9, %p5838_p2 }
 0x335   : > { %p4320_p10 = por %p4319_p5, %p4318_p7 }
 0x336   : > { %p4316_p13 = pneg %p4315_p4 }
 0x338   : > { %p4321_p12 = pnand %p4320_p10, %p4316_p13 }
 0x33a   : > { %4324 = shalt.err (!%p4321_p12)
}
 0x33b   : > { %s4392_s29 = smov 512   ;;  %s4393_s4 = smov 1024  }
 0x33c   : > { %s4394_s11 = smov 32  }
 0x33d   : > { %4012 = dma.vmem_to_hbm [thread:$0]  (%p5838_p2), %s5591_s22, 4096, %s5589_s28, %s2438_s15, %s4392_s29, %s4393_s4, %s4394_s11  }
 0x33e PF: > { %s2469_s23 = sand.u32 1, %s4363_s12   ;;  %p5839_p3 = scmp.ne.s32.totalorder %s5656_s27, 0 }
 0x33f   : > { %p5840_p11 = scmp.ge.s32.totalorder %s4383_s17, 2  ;;  %s2470_s30 = scalar_lea.sflag [#allocation4], %s2469_s23 }
 0x341   : > { %p4026_p0 = pnand %p5840_p11, %p5839_p3 }
 0x343   : > { %p4027_p8 = pneg %p4026_p0 }
 0x345   : > { %4358 = dma.done.wait (%p4027_p8), %s2470_s30, 4096  }
 0x346   : > { %4360 = vsyncadd (%p4027_p8), %s2470_s30, 4294963200  ;;  %s20_s17 = sadd.s32 1, %s4383_s17   ;;  %s5841_s12 = smov %s4367_s13 }
 0x347   : > { %p17_p1 = scmp.ge.s32.totalorder %s20_s17, 4   ;;  %s5842_s13 = smov %s4371_s14 }
 0x348   : > { %s5843_s14 = smov %s4466_s24  ;;  %s5844_s15 = smov %s4379_s16 }
 0x349   : > { %s5845_s16 = smov %s5847_s18  ;;  %19 = sbr.rel (!%p17_p1) target bundleno = 9 (0x9), region = 94 }
 0x34e   :  { %2475 = vsyncpa [#allocation3], 1 }
 0x34f   :  { %2477 = vsyncpa [#allocation3 + $0x1], 1 }
 0x350   :  { %2478 = vsyncpa [#allocation6], 1 }
 0x351   :  { %2480 = vsyncpa [#allocation6 + $0x1], 1 }
 0x352   :  { %2481 = vsyncpa [#allocation4], 1 }
 0x353   :  { %2483 = vsyncpa [#allocation4 + $0x1], 1 }

</bundles_post_ra>
